<compile_context>
chip_gen: v5e
topology: v5e:2x2
jax: 0.10.0
libtpu: 0.0.40
codegen_flags: <defaults>
</compile_context>

<pallas_src>
import functools

import jax
import jax.numpy as jnp
from jax.experimental import pallas as pl
from jax.experimental.pallas import tpu as pltpu

EPS = 1e-5
LANES = 128


def _round_up(x, m):
    return ((x + m - 1) // m) * m


def _vmem_limit_bytes():
    """Generation-aware VMEM limit (leave headroom for compiler scratch)."""
    try:
        kind = jax.devices()[0].device_kind.lower()
    except Exception:  # pragma: no cover - device query best-effort
        kind = ""
    if "v7" in kind:                       # 64 MiB physical per TC
        return 48 * 1024 * 1024
    if "v6" in kind or "v5" in kind or "v4" in kind:   # 128 MiB physical
        return 100 * 1024 * 1024
    return 32 * 1024 * 1024                # conservative fallback


def _stage_vmem_bytes(th, w, cp, coutp):
    """Rough per-step live-set estimate of the conv stage (bytes)."""
    bf2 = 2
    inp = 2 * th * w * cp * bf2            # main input block (double-buffered)
    halo = 2 * 2 * w * cp * bf2            # two 1-row halos (double-buffered)
    wts = 2 * 9 * cp * coutp * bf2         # weights (still double-buffered)
    outp = 2 * th * w * coutp * bf2        # bf16 output block (double-buffered)
    xw = (th + 2) * (w + 2) * cp * bf2     # col-padded window
    scat = (th + 2) * w * 3 * cp * bf2     # kw-concatenated taps
    lhs = th * w * 3 * cp * bf2            # one kh slice fed to the MXU
    acc = 2 * th * w * coutp * 4           # f32 accumulator + matmul result
    return inp + halo + wts + outp + xw + scat + lhs + acc


def _pick_th(h, w, cp, coutp, vmem_limit):
    """Largest row-block <= 64 that divides H and fits half the VMEM budget."""
    budget = vmem_limit // 2
    for cand in range(min(h, 64), 0, -1):
        if h % cand == 0 and _stage_vmem_bytes(cand, w, cp, coutp) <= budget:
            return cand
    return 1


# ---------------------------------------------------------------------------
# Kernel: [optional fused BN+ReLU of the previous stage on the input rows]
#         -> 3x3 conv as 3 accumulating im2col MXU matmuls (one per kh tap)
#         -> raw bf16 conv output tile + per-(image, row-block) BN partials.
# ---------------------------------------------------------------------------
def _conv_bn_stats_kernel(x_ref, top_ref, bot_ref, w_ref, scale_ref, shift_ref,
                          y_ref, stats_ref, *, th, w_img, apply_input_act):
    """
    x_ref    : (TH, W, Cp)     bf16 main row block of the (unpadded) input
    top_ref  : (1,  W, Cp)     row just above the block (clamped at row 0)
    bot_ref  : (1,  W, Cp)     row just below the block (clamped at row H-1)
    w_ref    : (9*Cp, Coutp)   im2col-reordered conv weights (bf16, [kh][kw][ci])
    scale_ref: (1, Cp)         BN scale of the previous stage (f32)
    shift_ref: (1, Cp)         BN shift of the previous stage (f32)
    y_ref    : (TH, W, Coutp)  raw (pre-BN) conv output tile (bf16)
    stats_ref: (2, Coutp)      per-(image, row-block) [sum, sum_sq] (f32)
    """
    cp = x_ref.shape[-1]
    coutp = y_ref.shape[-1]
    i = pl.program_id(1)
    last = pl.num_programs(1) - 1

    main = x_ref[...]                       # (TH, W, Cp) bf16
    top = top_ref[...]                      # (1,  W, Cp) bf16
    bot = bot_ref[...]

    if apply_input_act:
        # Fused BatchNorm+ReLU of the previous stage (PyTorch pads the
        # *post*-ReLU activation with zeros, so the activation is applied
        # before the out-of-image halos are zeroed below).
        scale = scale_ref[...].reshape(1, 1, cp)
        shift = shift_ref[...].reshape(1, 1, cp)

        def act(v):
            v = v.astype(jnp.float32) * scale + shift
            return jnp.maximum(v, 0.0).astype(jnp.bfloat16)

        main = act(main)
        top = act(top)
        bot = act(bot)

    # Out-of-image halo rows (conv zero-padding) are zeroed in-register; the
    # clamped index_map only guarantees the DMA stays in bounds.
    zero_row = jnp.zeros_like(top)
    top = jnp.where(i == 0, zero_row, top)
    bot = jnp.where(i == last, zero_row, bot)

    rows = jnp.concatenate([top, main, bot], axis=0)          # (TH+2, W, Cp)
    zcol = jnp.zeros((th + 2, 1, cp), rows.dtype)
    xw = jnp.concatenate([zcol, rows, zcol], axis=1)          # (TH+2, W+2, Cp)

    # kw taps concatenated along the lane axis: layout [kw][cin].
    s_cat = jnp.concatenate(
        [xw[:, 0:w_img, :], xw[:, 1:w_img + 1, :], xw[:, 2:w_img + 2, :]],
        axis=-1)                                              # (TH+2, W, 3*Cp)

    # 3 accumulating MXU matmuls (one per kh tap), bf16 in / f32 accumulate.
    acc = None
    for kh in range(3):
        lhs = s_cat[kh:kh + th].reshape(th * w_img, 3 * cp)   # (TH*W, 3*Cp)
        rhs = w_ref[kh * 3 * cp:(kh + 1) * 3 * cp, :]         # (3*Cp, Coutp)
        part = jnp.dot(lhs, rhs, preferred_element_type=jnp.float32)
        acc = part if acc is None else acc + part

    # One-pass BN partials in f32 (from the f32 accumulator, so bf16 output
    # storage does not touch the statistics).
    # TODO(synk): consider a shifted / Welford-style combine in the wrapper if
    # conv outputs ever have mean >> std over very large N*H*W.
    stats_ref[...] = jnp.concatenate(
        [jnp.sum(acc, axis=0, keepdims=True),
         jnp.sum(acc * acc, axis=0, keepdims=True)], axis=0)

    y_ref[...] = acc.reshape(th, w_img, coutp).astype(y_ref.dtype)


def _conv_stage(x, w_k, scale_in, shift_in, *, h, w, th, apply_input_act,
                vmem_limit):
    """One conv stage on an unpadded, channel-padded NHWC bf16 input.

    Returns (y_raw, stats): raw conv output (N, H, W, Coutp) bf16 and the
    per-(image, row-block) [sum, sum_sq] partials (N, h_tiles, 2, Coutp) f32.
    """
    n, _, _, cp = x.shape
    coutp = w_k.shape[-1]
    h_tiles = h // th
    kernel = functools.partial(_conv_bn_stats_kernel, th=th, w_img=w,
                               apply_input_act=apply_input_act)

    # TODO(synk): mark the constant weight/scale/shift specs and sweep deeper
    # buffering (pl.Buffered) once the target generation is fixed.
    y, stats = pl.pallas_call(
        kernel,
        out_shape=(
            jax.ShapeDtypeStruct((n, h, w, coutp), jnp.bfloat16),
            jax.ShapeDtypeStruct((n, h_tiles, 2, coutp), jnp.float32),
        ),
        grid=(n, h_tiles),
        in_specs=[
            # main TH-row block
            pl.BlockSpec((None, th, w, cp), lambda b, i: (b, i, 0, 0)),
            # 1-row halo just above (clamped; zeroed in-kernel when i == 0)
            pl.BlockSpec((None, 1, w, cp),
                         lambda b, i: (b, jnp.maximum(i * th - 1, 0), 0, 0)),
            # 1-row halo just below (clamped; zeroed in-kernel when i == last)
            pl.BlockSpec((None, 1, w, cp),
                         lambda b, i: (b, jnp.minimum(i * th + th, h - 1), 0, 0)),
            # weights and previous-stage BN affine: constant block index
            pl.BlockSpec((9 * cp, coutp), lambda b, i: (0, 0)),
            pl.BlockSpec((1, cp), lambda b, i: (0, 0)),
            pl.BlockSpec((1, cp), lambda b, i: (0, 0)),
        ],
        out_specs=(
            pl.BlockSpec((None, th, w, coutp), lambda b, i: (b, i, 0, 0)),
            pl.BlockSpec((None, None, 2, coutp), lambda b, i: (b, i, 0, 0)),
        ),
        compiler_params=pltpu.CompilerParams(
            dimension_semantics=("parallel", "parallel"),
            vmem_limit_bytes=vmem_limit),
    )(x, x, x, w_k, scale_in, shift_in)
    return y, stats


# ---------------------------------------------------------------------------
# Final BatchNorm + ReLU (elementwise, lane-dense, bf16 input / f32 output).
# ---------------------------------------------------------------------------
def _bn_relu_kernel(y_ref, scale_ref, shift_ref, o_ref):
    y = y_ref[...].astype(jnp.float32)
    scale = scale_ref[...].reshape(1, 1, -1)
    shift = shift_ref[...].reshape(1, 1, -1)
    o_ref[...] = jnp.maximum(y * scale + shift, 0.0).astype(o_ref.dtype)


def _bn_relu(y, scale, shift, *, h, w, th, vmem_limit):
    n, _, _, cp = y.shape
    h_tiles = h // th
    return pl.pallas_call(
        _bn_relu_kernel,
        out_shape=jax.ShapeDtypeStruct((n, h, w, cp), jnp.float32),
        grid=(n, h_tiles),
        in_specs=[
            pl.BlockSpec((None, th, w, cp), lambda b, i: (b, i, 0, 0)),
            pl.BlockSpec((1, cp), lambda b, i: (0, 0)),
            pl.BlockSpec((1, cp), lambda b, i: (0, 0)),
        ],
        out_specs=pl.BlockSpec((None, th, w, cp), lambda b, i: (b, i, 0, 0)),
        compiler_params=pltpu.CompilerParams(
            dimension_semantics=("parallel", "parallel"),
            vmem_limit_bytes=vmem_limit),
    )(y, scale, shift)


# ---------------------------------------------------------------------------
# Wrapper-level glue and parameter handling.
# ---------------------------------------------------------------------------
def _bn_scale_shift(stats, gamma_p, beta_p, count):
    """Global training-mode BN (biased batch stats) from per-block partials."""
    total = jnp.sum(stats, axis=(0, 1))                # (2, Cp)
    mean = total[0] / count
    var = jnp.maximum(total[1] / count - mean * mean, 0.0)
    scale = gamma_p * jax.lax.rsqrt(var + EPS)
    shift = beta_p - mean * scale
    return scale.reshape(1, -1), shift.reshape(1, -1)


def _prep_weights(w_hwio, cin_p, cout_p):
    """(3,3,Cin,Cout) HWIO -> channel-padded, im2col-flattened (9*Cp, Coutp)."""
    kh, kw, cin, cout = w_hwio.shape
    w_p = jnp.pad(w_hwio, ((0, 0), (0, 0), (0, cin_p - cin), (0, cout_p - cout)))
    return w_p.reshape(kh * kw * cin_p, cout_p).astype(jnp.bfloat16)


def double_conv_forward(x_nchw, params, *, th=None):
    """DoubleConv forward (training-mode BatchNorm). NCHW in / NCHW out."""
    w1, gamma1, beta1, w2, gamma2, beta2 = params
    n, cin, h, w = x_nchw.shape
    cmid = w1.shape[-1]
    cout = w2.shape[-1]

    # TODO(synk): for tiny Cin (3/4) pack the stage-1 im2col K = 9*Cin into a
    # single 128-lane block instead of padding Cin to 128 per tap.
    cin_p = _round_up(cin, LANES)
    cmid_p = _round_up(cmid, LANES)
    cout_p = _round_up(cout, LANES)

    vmem_limit = _vmem_limit_bytes()
    if th is None:
        th = _pick_th(h, w, max(cin_p, cmid_p), max(cmid_p, cout_p), vmem_limit)
    assert h % th == 0, (h, th)

    # Layout glue (XLA): NCHW -> NHWC, channel pad to 128 lanes, bf16.
    # TODO(synk): fuse the final slice+transpose back to NCHW into the BN2
    # kernel's output layout to remove the trailing XLA relayout pass.
    x = jnp.transpose(x_nchw, (0, 2, 3, 1))
    x = jnp.pad(x, ((0, 0), (0, 0), (0, 0), (0, cin_p - cin)))
    x = x.astype(jnp.bfloat16)

    w1_k = _prep_weights(w1, cin_p, cmid_p)
    w2_k = _prep_weights(w2, cmid_p, cout_p)
    gamma1_p = jnp.pad(gamma1, (0, cmid_p - cmid))
    beta1_p = jnp.pad(beta1, (0, cmid_p - cmid))
    gamma2_p = jnp.pad(gamma2, (0, cout_p - cout))
    beta2_p = jnp.pad(beta2, (0, cout_p - cout))

    count = float(n * h * w)

    # Stage 1: conv1 + per-block BN1 partial stats.
    ident_scale = jnp.ones((1, cin_p), jnp.float32)
    ident_shift = jnp.zeros((1, cin_p), jnp.float32)
    y1, stats1 = _conv_stage(x, w1_k, ident_scale, ident_shift,
                             h=h, w=w, th=th, apply_input_act=False,
                             vmem_limit=vmem_limit)
    scale1, shift1 = _bn_scale_shift(stats1, gamma1_p, beta1_p, count)

    # Stage 2: BN1+ReLU fused into conv2's input read; conv2 + BN2 stats.
    y2, stats2 = _conv_stage(y1, w2_k, scale1, shift1,
                             h=h, w=w, th=th, apply_input_act=True,
                             vmem_limit=vmem_limit)
    scale2, shift2 = _bn_scale_shift(stats2, gamma2_p, beta2_p, count)

    # Final BN2 + ReLU.
    out = _bn_relu(y2, scale2, shift2, h=h, w=w, th=th, vmem_limit=vmem_limit)

    # Strip channel padding, back to NCHW.
    # TODO(synk): running_mean/running_var buffer updates of nn.BatchNorm2d
    # (module training-state side effect) are intentionally not produced.
    return jnp.transpose(out[..., :cout], (0, 3, 1, 2))


def make_double_conv_params(key, in_channels, out_channels, mid_channels=None):
    """Deterministic parameter init matching the module's __init__ shapes."""
    if not mid_channels:
        mid_channels = out_channels
    k1, k2 = jax.random.split(key)
    w1 = jax.random.normal(k1, (3, 3, in_channels, mid_channels), jnp.float32)
    w1 = w1 * (2.0 / (9 * in_channels)) ** 0.5
    w2 = jax.random.normal(k2, (3, 3, mid_channels, out_channels), jnp.float32)
    w2 = w2 * (2.0 / (9 * mid_channels)) ** 0.5
    gamma1 = jnp.ones((mid_channels,), jnp.float32)
    beta1 = jnp.zeros((mid_channels,), jnp.float32)
    gamma2 = jnp.ones((out_channels,), jnp.float32)
    beta2 = jnp.zeros((out_channels,), jnp.float32)
    return (w1, gamma1, beta1, w2, gamma2, beta2)


def _reference_double_conv(x_nchw, params):
    """Pure-JAX f32 reference (XLA conv) for numerical validation."""
    w1, gamma1, beta1, w2, gamma2, beta2 = params

    def stage(x, w, gamma, beta):
        y = jax.lax.conv_general_dilated(
            x, w, window_strides=(1, 1), padding=((1, 1), (1, 1)),
            dimension_numbers=("NCHW", "HWIO", "NCHW"))
        mean = jnp.mean(y, axis=(0, 2, 3), keepdims=True)
        var = jnp.mean((y - mean) ** 2, axis=(0, 2, 3), keepdims=True)
        g = gamma.reshape(1, -1, 1, 1)
        b = beta.reshape(1, -1, 1, 1)
        return jnp.maximum((y - mean) * g * jax.lax.rsqrt(var + EPS) + b, 0.0)

    return stage(stage(x_nchw, w1, gamma1, beta1), w2, gamma2, beta2)


if __name__ == "__main__":
    key = jax.random.PRNGKey(0)
    k_x, k_p = jax.random.split(key)

    N, CIN, H, W = 2, 4, 16, 16
    COUT = 8

    x = jax.random.normal(k_x, (N, CIN, H, W), jnp.float32)
    params = make_double_conv_params(k_p, CIN, COUT)

    fwd = jax.jit(lambda xx: double_conv_forward(xx, params))
    out = jax.block_until_ready(fwd(x))
    assert out.shape == (N, COUT, H, W), out.shape

    ref = _reference_double_conv(x, params)
    # bf16 MXU operands and bf16 intermediates -> compare against the f32 XLA
    # reference with bf16-level tolerance.
    max_err = float(jnp.max(jnp.abs(out - ref)))
    assert jnp.allclose(out, ref, rtol=1e-1, atol=5e-2), max_err

    print("KERNEL_OK")
</pallas_src>

<mosaic_0001>
module attributes {stable_mosaic.version = 11 : i64} {
  func.func @_conv_bn_stats_kernel(%arg0: i32, %arg1: i32, %arg2: memref<1x16x16x128xbf16, #tpu.memory_space<vmem>>, %arg3: memref<1x1x16x128xbf16, #tpu.memory_space<vmem>>, %arg4: memref<1x1x16x128xbf16, #tpu.memory_space<vmem>>, %arg5: memref<1152x128xbf16, #tpu.memory_space<vmem>>, %arg6: memref<1x128xf32, #tpu.memory_space<vmem>>, %arg7: memref<1x128xf32, #tpu.memory_space<vmem>>, %arg8: memref<1x16x16x128xbf16, #tpu.memory_space<vmem>>, %arg9: memref<1x1x2x128xf32, #tpu.memory_space<vmem>>) attributes {dimension_semantics = [#tpu.dimension_semantics<parallel>, #tpu.dimension_semantics<parallel>], iteration_bounds = array<i64: 2, 1>, scalar_prefetch = 0 : i64, scratch_operands = 0 : i64, tpu.core_type = #tpu.core_type<tc>, window_params = [{transform_indices = @transform_0, window_bounds = array<i64: 1, 16, 16, 128>}, {transform_indices = @transform_1, window_bounds = array<i64: 1, 1, 16, 128>}, {transform_indices = @transform_2, window_bounds = array<i64: 1, 1, 16, 128>}, {pipeline_mode = #tpu.pipeline_mode<synchronous>, transform_indices = @transform_3, window_bounds = array<i64: 1152, 128>}, {pipeline_mode = #tpu.pipeline_mode<synchronous>, transform_indices = @transform_4, window_bounds = array<i64: 1, 128>}, {pipeline_mode = #tpu.pipeline_mode<synchronous>, transform_indices = @transform_5, window_bounds = array<i64: 1, 128>}, {transform_indices = @transform_6, window_bounds = array<i64: 1, 16, 16, 128>}, {transform_indices = @transform_7, window_bounds = array<i64: 1, 1, 2, 128>}]} {
    %c0 = arith.constant 0 : index
    %c0_0 = arith.constant 0 : index
    %c0_1 = arith.constant 0 : index
    %c0_2 = arith.constant 0 : index
    %0 = vector.load %arg2[%c0, %c0_0, %c0_1, %c0_2] : memref<1x16x16x128xbf16, #tpu.memory_space<vmem>>, vector<1x16x16x128xbf16>
    %1 = vector.shape_cast %0 : vector<1x16x16x128xbf16> to vector<16x16x128xbf16>
    %c0_3 = arith.constant 0 : index
    %c0_4 = arith.constant 0 : index
    %c0_5 = arith.constant 0 : index
    %c0_6 = arith.constant 0 : index
    %2 = vector.load %arg3[%c0_3, %c0_4, %c0_5, %c0_6] : memref<1x1x16x128xbf16, #tpu.memory_space<vmem>>, vector<1x1x16x128xbf16>
    %3 = vector.shape_cast %2 : vector<1x1x16x128xbf16> to vector<1x16x128xbf16>
    %c0_7 = arith.constant 0 : index
    %c0_8 = arith.constant 0 : index
    %c0_9 = arith.constant 0 : index
    %c0_10 = arith.constant 0 : index
    %4 = vector.load %arg4[%c0_7, %c0_8, %c0_9, %c0_10] : memref<1x1x16x128xbf16, #tpu.memory_space<vmem>>, vector<1x1x16x128xbf16>
    %5 = vector.shape_cast %4 : vector<1x1x16x128xbf16> to vector<1x16x128xbf16>
    %cst = arith.constant 0.000000e+00 : bf16
    %6 = vector.broadcast %cst : bf16 to vector<1x16x128xbf16>
    %c0_i32 = arith.constant 0 : i32
    %7 = arith.cmpi eq, %arg1, %c0_i32 : i32
    %8 = arith.select %7, %6, %3 : vector<1x16x128xbf16>
    %c0_i32_11 = arith.constant 0 : i32
    %9 = arith.cmpi eq, %arg1, %c0_i32_11 : i32
    %10 = arith.select %9, %6, %5 : vector<1x16x128xbf16>
    %11 = tpu.concatenate %8, %1, %10 in 0 : vector<1x16x128xbf16>, vector<16x16x128xbf16>, vector<1x16x128xbf16> -> vector<18x16x128xbf16>
    %cst_12 = arith.constant 0.000000e+00 : bf16
    %12 = vector.broadcast %cst_12 : bf16 to vector<18x1x128xbf16>
    %13 = tpu.concatenate %12, %11, %12 in 1 : vector<18x1x128xbf16>, vector<18x16x128xbf16>, vector<18x1x128xbf16> -> vector<18x18x128xbf16>
    %14 = vector.extract_strided_slice %13 {offsets = [0, 0, 0], sizes = [18, 16, 128], strides = [1, 1, 1]} : vector<18x18x128xbf16> to vector<18x16x128xbf16>
    %15 = vector.extract_strided_slice %13 {offsets = [0, 1, 0], sizes = [18, 16, 128], strides = [1, 1, 1]} : vector<18x18x128xbf16> to vector<18x16x128xbf16>
    %16 = vector.extract_strided_slice %13 {offsets = [0, 2, 0], sizes = [18, 16, 128], strides = [1, 1, 1]} : vector<18x18x128xbf16> to vector<18x16x128xbf16>
    %17 = tpu.concatenate %14, %15, %16 in 2 : vector<18x16x128xbf16>, vector<18x16x128xbf16>, vector<18x16x128xbf16> -> vector<18x16x384xbf16>
    %18 = vector.extract_strided_slice %17 {offsets = [0, 0, 0], sizes = [16, 16, 384], strides = [1, 1, 1]} : vector<18x16x384xbf16> to vector<16x16x384xbf16>
    %19 = vector.shape_cast %18 : vector<16x16x384xbf16> to vector<256x384xbf16>
    %c0_13 = arith.constant 0 : index
    %c0_14 = arith.constant 0 : index
    %20 = vector.load %arg5[%c0_13, %c0_14] : memref<1152x128xbf16, #tpu.memory_space<vmem>>, vector<384x128xbf16>
    %cst_15 = arith.constant dense<0.000000e+00> : vector<256x128xf32>
    %21 = tpu.matmul %19, %20, %cst_15 {dimension_numbers = #tpu.dot_dimension_numbers<[1], [0], [0], [1], [0, 0, 1, 1], [], []>} : vector<256x384xbf16>, vector<384x128xbf16>, vector<256x128xf32> -> vector<256x128xf32>
    %22 = vector.extract_strided_slice %17 {offsets = [1, 0, 0], sizes = [16, 16, 384], strides = [1, 1, 1]} : vector<18x16x384xbf16> to vector<16x16x384xbf16>
    %23 = vector.shape_cast %22 : vector<16x16x384xbf16> to vector<256x384xbf16>
    %c384 = arith.constant 384 : index
    %c0_16 = arith.constant 0 : index
    %24 = vector.load %arg5[%c384, %c0_16] : memref<1152x128xbf16, #tpu.memory_space<vmem>>, vector<384x128xbf16>
    %cst_17 = arith.constant dense<0.000000e+00> : vector<256x128xf32>
    %25 = tpu.matmul %23, %24, %cst_17 {dimension_numbers = #tpu.dot_dimension_numbers<[1], [0], [0], [1], [0, 0, 1, 1], [], []>} : vector<256x384xbf16>, vector<384x128xbf16>, vector<256x128xf32> -> vector<256x128xf32>
    %26 = arith.addf %21, %25 : vector<256x128xf32>
    %27 = vector.extract_strided_slice %17 {offsets = [2, 0, 0], sizes = [16, 16, 384], strides = [1, 1, 1]} : vector<18x16x384xbf16> to vector<16x16x384xbf16>
    %28 = vector.shape_cast %27 : vector<16x16x384xbf16> to vector<256x384xbf16>
    %c768 = arith.constant 768 : index
    %c0_18 = arith.constant 0 : index
    %29 = vector.load %arg5[%c768, %c0_18] : memref<1152x128xbf16, #tpu.memory_space<vmem>>, vector<384x128xbf16>
    %cst_19 = arith.constant dense<0.000000e+00> : vector<256x128xf32>
    %30 = tpu.matmul %28, %29, %cst_19 {dimension_numbers = #tpu.dot_dimension_numbers<[1], [0], [0], [1], [0, 0, 1, 1], [], []>} : vector<256x384xbf16>, vector<384x128xbf16>, vector<256x128xf32> -> vector<256x128xf32>
    %31 = arith.addf %26, %30 : vector<256x128xf32>
    %cst_20 = arith.constant dense<0.000000e+00> : vector<128xf32>
    %32 = vector.multi_reduction <add>, %31, %cst_20 [0] : vector<256x128xf32> to vector<128xf32>
    %33 = vector.shape_cast %32 : vector<128xf32> to vector<1x128xf32>
    %34 = arith.mulf %31, %31 : vector<256x128xf32>
    %cst_21 = arith.constant dense<0.000000e+00> : vector<128xf32>
    %35 = vector.multi_reduction <add>, %34, %cst_21 [0] : vector<256x128xf32> to vector<128xf32>
    %36 = vector.shape_cast %35 : vector<128xf32> to vector<1x128xf32>
    %37 = tpu.concatenate %33, %36 in 0 : vector<1x128xf32>, vector<1x128xf32> -> vector<2x128xf32>
    %c0_22 = arith.constant 0 : index
    %c0_23 = arith.constant 0 : index
    %c0_24 = arith.constant 0 : index
    %c0_25 = arith.constant 0 : index
    %38 = vector.load %arg9[%c0_22, %c0_23, %c0_24, %c0_25] : memref<1x1x2x128xf32, #tpu.memory_space<vmem>>, vector<1x1x2x128xf32>
    %39 = vector.shape_cast %38 : vector<1x1x2x128xf32> to vector<2x128xf32>
    %40 = vector.shape_cast %37 : vector<2x128xf32> to vector<1x1x2x128xf32>
    tpu.vector_store %arg9[%c0_22, %c0_23, %c0_24, %c0_25], %40 {strides = array<i32>} : memref<1x1x2x128xf32, #tpu.memory_space<vmem>>, vector<1x1x2x128xf32>,
    %41 = vector.shape_cast %31 : vector<256x128xf32> to vector<16x16x128xf32>
    %42 = arith.truncf %41 : vector<16x16x128xf32> to vector<16x16x128xbf16>
    %c0_26 = arith.constant 0 : index
    %c0_27 = arith.constant 0 : index
    %c0_28 = arith.constant 0 : index
    %c0_29 = arith.constant 0 : index
    %43 = vector.load %arg8[%c0_26, %c0_27, %c0_28, %c0_29] : memref<1x16x16x128xbf16, #tpu.memory_space<vmem>>, vector<1x16x16x128xbf16>
    %44 = vector.shape_cast %43 : vector<1x16x16x128xbf16> to vector<16x16x128xbf16>
    %45 = vector.shape_cast %42 : vector<16x16x128xbf16> to vector<1x16x16x128xbf16>
    tpu.vector_store %arg8[%c0_26, %c0_27, %c0_28, %c0_29], %45 {strides = array<i32>} : memref<1x16x16x128xbf16, #tpu.memory_space<vmem>>, vector<1x16x16x128xbf16>,
    return
  }
  func.func @transform_0(%arg0: i32, %arg1: i32) -> (i32, i32, i32, i32) {
    %c0_i32 = arith.constant 0 : i32
    %c0_i32_0 = arith.constant 0 : i32
    %c0_i32_1 = arith.constant 0 : i32
    return %arg0, %arg1, %c0_i32, %c0_i32_0 : i32, i32, i32, i32
  }
  func.func @transform_1(%arg0: i32, %arg1: i32) -> (i32, i32, i32, i32) {
    %c16_i32 = arith.constant 16 : i32
    %0 = arith.muli %arg1, %c16_i32 : i32
    %c1_i32 = arith.constant 1 : i32
    %1 = arith.subi %0, %c1_i32 : i32
    %c0_i32 = arith.constant 0 : i32
    %2 = arith.maxsi %1, %c0_i32 : i32
    %c0_i32_0 = arith.constant 0 : i32
    %c0_i32_1 = arith.constant 0 : i32
    %c0_i32_2 = arith.constant 0 : i32
    return %arg0, %2, %c0_i32_0, %c0_i32_1 : i32, i32, i32, i32
  }
  func.func @transform_2(%arg0: i32, %arg1: i32) -> (i32, i32, i32, i32) {
    %c16_i32 = arith.constant 16 : i32
    %0 = arith.muli %arg1, %c16_i32 : i32
    %c16_i32_0 = arith.constant 16 : i32
    %1 = arith.addi %0, %c16_i32_0 : i32
    %c15_i32 = arith.constant 15 : i32
    %2 = arith.minsi %1, %c15_i32 : i32
    %c0_i32 = arith.constant 0 : i32
    %c0_i32_1 = arith.constant 0 : i32
    %c0_i32_2 = arith.constant 0 : i32
    return %arg0, %2, %c0_i32, %c0_i32_1 : i32, i32, i32, i32
  }
  func.func @transform_3(%arg0: i32, %arg1: i32) -> (i32, i32) {
    %c0_i32 = arith.constant 0 : i32
    %c0_i32_0 = arith.constant 0 : i32
    %c0_i32_1 = arith.constant 0 : i32
    return %c0_i32, %c0_i32_0 : i32, i32
  }
  func.func @transform_4(%arg0: i32, %arg1: i32) -> (i32, i32) {
    %c0_i32 = arith.constant 0 : i32
    %c0_i32_0 = arith.constant 0 : i32
    %c0_i32_1 = arith.constant 0 : i32
    return %c0_i32, %c0_i32_0 : i32, i32
  }
  func.func @transform_5(%arg0: i32, %arg1: i32) -> (i32, i32) {
    %c0_i32 = arith.constant 0 : i32
    %c0_i32_0 = arith.constant 0 : i32
    %c0_i32_1 = arith.constant 0 : i32
    return %c0_i32, %c0_i32_0 : i32, i32
  }
  func.func @transform_6(%arg0: i32, %arg1: i32) -> (i32, i32, i32, i32) {
    %c0_i32 = arith.constant 0 : i32
    %c0_i32_0 = arith.constant 0 : i32
    %c0_i32_1 = arith.constant 0 : i32
    return %arg0, %arg1, %c0_i32, %c0_i32_0 : i32, i32, i32, i32
  }
  func.func @transform_7(%arg0: i32, %arg1: i32) -> (i32, i32, i32, i32) {
    %c0_i32 = arith.constant 0 : i32
    %c0_i32_0 = arith.constant 0 : i32
    %c0_i32_1 = arith.constant 0 : i32
    return %arg0, %arg1, %c0_i32, %c0_i32_0 : i32, i32, i32, i32
  }
}

module attributes {stable_mosaic.version = 11 : i64} {
  func.func @_bn_relu_kernel(%arg0: i32, %arg1: i32, %arg2: memref<1x16x16x128xbf16, #tpu.memory_space<vmem>>, %arg3: memref<1x128xf32, #tpu.memory_space<vmem>>, %arg4: memref<1x128xf32, #tpu.memory_space<vmem>>, %arg5: memref<1x16x16x128xf32, #tpu.memory_space<vmem>>) attributes {dimension_semantics = [#tpu.dimension_semantics<parallel>, #tpu.dimension_semantics<parallel>], iteration_bounds = array<i64: 2, 1>, scalar_prefetch = 0 : i64, scratch_operands = 0 : i64, tpu.core_type = #tpu.core_type<tc>, window_params = [{transform_indices = @transform_0, window_bounds = array<i64: 1, 16, 16, 128>}, {pipeline_mode = #tpu.pipeline_mode<synchronous>, transform_indices = @transform_1, window_bounds = array<i64: 1, 128>}, {pipeline_mode = #tpu.pipeline_mode<synchronous>, transform_indices = @transform_2, window_bounds = array<i64: 1, 128>}, {transform_indices = @transform_3, window_bounds = array<i64: 1, 16, 16, 128>}]} {
    %c0 = arith.constant 0 : index
    %c0_0 = arith.constant 0 : index
    %c0_1 = arith.constant 0 : index
    %c0_2 = arith.constant 0 : index
    %0 = vector.load %arg2[%c0, %c0_0, %c0_1, %c0_2] : memref<1x16x16x128xbf16, #tpu.memory_space<vmem>>, vector<1x16x16x128xbf16>
    %1 = vector.shape_cast %0 : vector<1x16x16x128xbf16> to vector<16x16x128xbf16>
    %2 = arith.extf %1 : vector<16x16x128xbf16> to vector<16x16x128xf32>
    %c0_3 = arith.constant 0 : index
    %c0_4 = arith.constant 0 : index
    %3 = vector.load %arg3[%c0_3, %c0_4] : memref<1x128xf32, #tpu.memory_space<vmem>>, vector<1x128xf32>
    %4 = vector.shape_cast %3 : vector<1x128xf32> to vector<1x1x128xf32>
    %c0_5 = arith.constant 0 : index
    %c0_6 = arith.constant 0 : index
    %5 = vector.load %arg4[%c0_5, %c0_6] : memref<1x128xf32, #tpu.memory_space<vmem>>, vector<1x128xf32>
    %6 = vector.shape_cast %5 : vector<1x128xf32> to vector<1x1x128xf32>
    %7 = vector.broadcast %4 : vector<1x1x128xf32> to vector<16x16x128xf32>
    %8 = arith.mulf %2, %7 : vector<16x16x128xf32>
    %9 = vector.broadcast %6 : vector<1x1x128xf32> to vector<16x16x128xf32>
    %10 = arith.addf %8, %9 : vector<16x16x128xf32>
    %cst = arith.constant 0.000000e+00 : f32
    %11 = vector.broadcast %cst : f32 to vector<16x16x128xf32>
    %12 = arith.maximumf %10, %11 : vector<16x16x128xf32>
    %c0_7 = arith.constant 0 : index
    %c0_8 = arith.constant 0 : index
    %c0_9 = arith.constant 0 : index
    %c0_10 = arith.constant 0 : index
    %13 = vector.load %arg5[%c0_7, %c0_8, %c0_9, %c0_10] : memref<1x16x16x128xf32, #tpu.memory_space<vmem>>, vector<1x16x16x128xf32>
    %14 = vector.shape_cast %13 : vector<1x16x16x128xf32> to vector<16x16x128xf32>
    %15 = vector.shape_cast %12 : vector<16x16x128xf32> to vector<1x16x16x128xf32>
    tpu.vector_store %arg5[%c0_7, %c0_8, %c0_9, %c0_10], %15 {strides = array<i32>} : memref<1x16x16x128xf32, #tpu.memory_space<vmem>>, vector<1x16x16x128xf32>,
    return
  }
  func.func @transform_0(%arg0: i32, %arg1: i32) -> (i32, i32, i32, i32) {
    %c0_i32 = arith.constant 0 : i32
    %c0_i32_0 = arith.constant 0 : i32
    %c0_i32_1 = arith.constant 0 : i32
    return %arg0, %arg1, %c0_i32, %c0_i32_0 : i32, i32, i32, i32
  }
  func.func @transform_1(%arg0: i32, %arg1: i32) -> (i32, i32) {
    %c0_i32 = arith.constant 0 : i32
    %c0_i32_0 = arith.constant 0 : i32
    %c0_i32_1 = arith.constant 0 : i32
    return %c0_i32, %c0_i32_0 : i32, i32
  }
  func.func @transform_2(%arg0: i32, %arg1: i32) -> (i32, i32) {
    %c0_i32 = arith.constant 0 : i32
    %c0_i32_0 = arith.constant 0 : i32
    %c0_i32_1 = arith.constant 0 : i32
    return %c0_i32, %c0_i32_0 : i32, i32
  }
  func.func @transform_3(%arg0: i32, %arg1: i32) -> (i32, i32, i32, i32) {
    %c0_i32 = arith.constant 0 : i32
    %c0_i32_0 = arith.constant 0 : i32
    %c0_i32_1 = arith.constant 0 : i32
    return %arg0, %arg1, %c0_i32, %c0_i32_0 : i32, i32, i32, i32
  }
}

module attributes {stable_mosaic.version = 11 : i64} {
  func.func @_conv_bn_stats_kernel(%arg0: i32, %arg1: i32, %arg2: memref<1x16x16x128xbf16, #tpu.memory_space<vmem>>, %arg3: memref<1x1x16x128xbf16, #tpu.memory_space<vmem>>, %arg4: memref<1x1x16x128xbf16, #tpu.memory_space<vmem>>, %arg5: memref<1152x128xbf16, #tpu.memory_space<vmem>>, %arg6: memref<1x128xf32, #tpu.memory_space<vmem>>, %arg7: memref<1x128xf32, #tpu.memory_space<vmem>>, %arg8: memref<1x16x16x128xbf16, #tpu.memory_space<vmem>>, %arg9: memref<1x1x2x128xf32, #tpu.memory_space<vmem>>) attributes {dimension_semantics = [#tpu.dimension_semantics<parallel>, #tpu.dimension_semantics<parallel>], iteration_bounds = array<i64: 2, 1>, scalar_prefetch = 0 : i64, scratch_operands = 0 : i64, tpu.core_type = #tpu.core_type<tc>, window_params = [{transform_indices = @transform_0, window_bounds = array<i64: 1, 16, 16, 128>}, {transform_indices = @transform_1, window_bounds = array<i64: 1, 1, 16, 128>}, {transform_indices = @transform_2, window_bounds = array<i64: 1, 1, 16, 128>}, {pipeline_mode = #tpu.pipeline_mode<synchronous>, transform_indices = @transform_3, window_bounds = array<i64: 1152, 128>}, {pipeline_mode = #tpu.pipeline_mode<synchronous>, transform_indices = @transform_4, window_bounds = array<i64: 1, 128>}, {pipeline_mode = #tpu.pipeline_mode<synchronous>, transform_indices = @transform_5, window_bounds = array<i64: 1, 128>}, {transform_indices = @transform_6, window_bounds = array<i64: 1, 16, 16, 128>}, {transform_indices = @transform_7, window_bounds = array<i64: 1, 1, 2, 128>}]} {
    %c0 = arith.constant 0 : index
    %c0_0 = arith.constant 0 : index
    %c0_1 = arith.constant 0 : index
    %c0_2 = arith.constant 0 : index
    %0 = vector.load %arg2[%c0, %c0_0, %c0_1, %c0_2] : memref<1x16x16x128xbf16, #tpu.memory_space<vmem>>, vector<1x16x16x128xbf16>
    %1 = vector.shape_cast %0 : vector<1x16x16x128xbf16> to vector<16x16x128xbf16>
    %c0_3 = arith.constant 0 : index
    %c0_4 = arith.constant 0 : index
    %c0_5 = arith.constant 0 : index
    %c0_6 = arith.constant 0 : index
    %2 = vector.load %arg3[%c0_3, %c0_4, %c0_5, %c0_6] : memref<1x1x16x128xbf16, #tpu.memory_space<vmem>>, vector<1x1x16x128xbf16>
    %3 = vector.shape_cast %2 : vector<1x1x16x128xbf16> to vector<1x16x128xbf16>
    %c0_7 = arith.constant 0 : index
    %c0_8 = arith.constant 0 : index
    %c0_9 = arith.constant 0 : index
    %c0_10 = arith.constant 0 : index
    %4 = vector.load %arg4[%c0_7, %c0_8, %c0_9, %c0_10] : memref<1x1x16x128xbf16, #tpu.memory_space<vmem>>, vector<1x1x16x128xbf16>
    %5 = vector.shape_cast %4 : vector<1x1x16x128xbf16> to vector<1x16x128xbf16>
    %c0_11 = arith.constant 0 : index
    %c0_12 = arith.constant 0 : index
    %6 = vector.load %arg6[%c0_11, %c0_12] : memref<1x128xf32, #tpu.memory_space<vmem>>, vector<1x128xf32>
    %7 = vector.shape_cast %6 : vector<1x128xf32> to vector<1x1x128xf32>
    %c0_13 = arith.constant 0 : index
    %c0_14 = arith.constant 0 : index
    %8 = vector.load %arg7[%c0_13, %c0_14] : memref<1x128xf32, #tpu.memory_space<vmem>>, vector<1x128xf32>
    %9 = vector.shape_cast %8 : vector<1x128xf32> to vector<1x1x128xf32>
    %10 = arith.extf %1 : vector<16x16x128xbf16> to vector<16x16x128xf32>
    %11 = vector.broadcast %7 : vector<1x1x128xf32> to vector<16x16x128xf32>
    %12 = arith.mulf %10, %11 : vector<16x16x128xf32>
    %13 = vector.broadcast %9 : vector<1x1x128xf32> to vector<16x16x128xf32>
    %14 = arith.addf %12, %13 : vector<16x16x128xf32>
    %cst = arith.constant 0.000000e+00 : f32
    %15 = vector.broadcast %cst : f32 to vector<16x16x128xf32>
    %16 = arith.maximumf %14, %15 : vector<16x16x128xf32>
    %17 = arith.truncf %16 : vector<16x16x128xf32> to vector<16x16x128xbf16>
    %18 = arith.extf %3 : vector<1x16x128xbf16> to vector<1x16x128xf32>
    %19 = vector.broadcast %7 : vector<1x1x128xf32> to vector<1x16x128xf32>
    %20 = arith.mulf %18, %19 : vector<1x16x128xf32>
    %21 = vector.broadcast %9 : vector<1x1x128xf32> to vector<1x16x128xf32>
    %22 = arith.addf %20, %21 : vector<1x16x128xf32>
    %cst_15 = arith.constant 0.000000e+00 : f32
    %23 = vector.broadcast %cst_15 : f32 to vector<1x16x128xf32>
    %24 = arith.maximumf %22, %23 : vector<1x16x128xf32>
    %25 = arith.truncf %24 : vector<1x16x128xf32> to vector<1x16x128xbf16>
    %26 = arith.extf %5 : vector<1x16x128xbf16> to vector<1x16x128xf32>
    %27 = vector.broadcast %7 : vector<1x1x128xf32> to vector<1x16x128xf32>
    %28 = arith.mulf %26, %27 : vector<1x16x128xf32>
    %29 = vector.broadcast %9 : vector<1x1x128xf32> to vector<1x16x128xf32>
    %30 = arith.addf %28, %29 : vector<1x16x128xf32>
    %cst_16 = arith.constant 0.000000e+00 : f32
    %31 = vector.broadcast %cst_16 : f32 to vector<1x16x128xf32>
    %32 = arith.maximumf %30, %31 : vector<1x16x128xf32>
    %33 = arith.truncf %32 : vector<1x16x128xf32> to vector<1x16x128xbf16>
    %cst_17 = arith.constant 0.000000e+00 : bf16
    %34 = vector.broadcast %cst_17 : bf16 to vector<1x16x128xbf16>
    %c0_i32 = arith.constant 0 : i32
    %35 = arith.cmpi eq, %arg1, %c0_i32 : i32
    %36 = arith.select %35, %34, %25 : vector<1x16x128xbf16>
    %c0_i32_18 = arith.constant 0 : i32
    %37 = arith.cmpi eq, %arg1, %c0_i32_18 : i32
    %38 = arith.select %37, %34, %33 : vector<1x16x128xbf16>
    %39 = tpu.concatenate %36, %17, %38 in 0 : vector<1x16x128xbf16>, vector<16x16x128xbf16>, vector<1x16x128xbf16> -> vector<18x16x128xbf16>
    %cst_19 = arith.constant 0.000000e+00 : bf16
    %40 = vector.broadcast %cst_19 : bf16 to vector<18x1x128xbf16>
    %41 = tpu.concatenate %40, %39, %40 in 1 : vector<18x1x128xbf16>, vector<18x16x128xbf16>, vector<18x1x128xbf16> -> vector<18x18x128xbf16>
    %42 = vector.extract_strided_slice %41 {offsets = [0, 0, 0], sizes = [18, 16, 128], strides = [1, 1, 1]} : vector<18x18x128xbf16> to vector<18x16x128xbf16>
    %43 = vector.extract_strided_slice %41 {offsets = [0, 1, 0], sizes = [18, 16, 128], strides = [1, 1, 1]} : vector<18x18x128xbf16> to vector<18x16x128xbf16>
    %44 = vector.extract_strided_slice %41 {offsets = [0, 2, 0], sizes = [18, 16, 128], strides = [1, 1, 1]} : vector<18x18x128xbf16> to vector<18x16x128xbf16>
    %45 = tpu.concatenate %42, %43, %44 in 2 : vector<18x16x128xbf16>, vector<18x16x128xbf16>, vector<18x16x128xbf16> -> vector<18x16x384xbf16>
    %46 = vector.extract_strided_slice %45 {offsets = [0, 0, 0], sizes = [16, 16, 384], strides = [1, 1, 1]} : vector<18x16x384xbf16> to vector<16x16x384xbf16>
    %47 = vector.shape_cast %46 : vector<16x16x384xbf16> to vector<256x384xbf16>
    %c0_20 = arith.constant 0 : index
    %c0_21 = arith.constant 0 : index
    %48 = vector.load %arg5[%c0_20, %c0_21] : memref<1152x128xbf16, #tpu.memory_space<vmem>>, vector<384x128xbf16>
    %cst_22 = arith.constant dense<0.000000e+00> : vector<256x128xf32>
    %49 = tpu.matmul %47, %48, %cst_22 {dimension_numbers = #tpu.dot_dimension_numbers<[1], [0], [0], [1], [0, 0, 1, 1], [], []>} : vector<256x384xbf16>, vector<384x128xbf16>, vector<256x128xf32> -> vector<256x128xf32>
    %50 = vector.extract_strided_slice %45 {offsets = [1, 0, 0], sizes = [16, 16, 384], strides = [1, 1, 1]} : vector<18x16x384xbf16> to vector<16x16x384xbf16>
    %51 = vector.shape_cast %50 : vector<16x16x384xbf16> to vector<256x384xbf16>
    %c384 = arith.constant 384 : index
    %c0_23 = arith.constant 0 : index
    %52 = vector.load %arg5[%c384, %c0_23] : memref<1152x128xbf16, #tpu.memory_space<vmem>>, vector<384x128xbf16>
    %cst_24 = arith.constant dense<0.000000e+00> : vector<256x128xf32>
    %53 = tpu.matmul %51, %52, %cst_24 {dimension_numbers = #tpu.dot_dimension_numbers<[1], [0], [0], [1], [0, 0, 1, 1], [], []>} : vector<256x384xbf16>, vector<384x128xbf16>, vector<256x128xf32> -> vector<256x128xf32>
    %54 = arith.addf %49, %53 : vector<256x128xf32>
    %55 = vector.extract_strided_slice %45 {offsets = [2, 0, 0], sizes = [16, 16, 384], strides = [1, 1, 1]} : vector<18x16x384xbf16> to vector<16x16x384xbf16>
    %56 = vector.shape_cast %55 : vector<16x16x384xbf16> to vector<256x384xbf16>
    %c768 = arith.constant 768 : index
    %c0_25 = arith.constant 0 : index
    %57 = vector.load %arg5[%c768, %c0_25] : memref<1152x128xbf16, #tpu.memory_space<vmem>>, vector<384x128xbf16>
    %cst_26 = arith.constant dense<0.000000e+00> : vector<256x128xf32>
    %58 = tpu.matmul %56, %57, %cst_26 {dimension_numbers = #tpu.dot_dimension_numbers<[1], [0], [0], [1], [0, 0, 1, 1], [], []>} : vector<256x384xbf16>, vector<384x128xbf16>, vector<256x128xf32> -> vector<256x128xf32>
    %59 = arith.addf %54, %58 : vector<256x128xf32>
    %cst_27 = arith.constant dense<0.000000e+00> : vector<128xf32>
    %60 = vector.multi_reduction <add>, %59, %cst_27 [0] : vector<256x128xf32> to vector<128xf32>
    %61 = vector.shape_cast %60 : vector<128xf32> to vector<1x128xf32>
    %62 = arith.mulf %59, %59 : vector<256x128xf32>
    %cst_28 = arith.constant dense<0.000000e+00> : vector<128xf32>
    %63 = vector.multi_reduction <add>, %62, %cst_28 [0] : vector<256x128xf32> to vector<128xf32>
    %64 = vector.shape_cast %63 : vector<128xf32> to vector<1x128xf32>
    %65 = tpu.concatenate %61, %64 in 0 : vector<1x128xf32>, vector<1x128xf32> -> vector<2x128xf32>
    %c0_29 = arith.constant 0 : index
    %c0_30 = arith.constant 0 : index
    %c0_31 = arith.constant 0 : index
    %c0_32 = arith.constant 0 : index
    %66 = vector.load %arg9[%c0_29, %c0_30, %c0_31, %c0_32] : memref<1x1x2x128xf32, #tpu.memory_space<vmem>>, vector<1x1x2x128xf32>
    %67 = vector.shape_cast %66 : vector<1x1x2x128xf32> to vector<2x128xf32>
    %68 = vector.shape_cast %65 : vector<2x128xf32> to vector<1x1x2x128xf32>
    tpu.vector_store %arg9[%c0_29, %c0_30, %c0_31, %c0_32], %68 {strides = array<i32>} : memref<1x1x2x128xf32, #tpu.memory_space<vmem>>, vector<1x1x2x128xf32>,
    %69 = vector.shape_cast %59 : vector<256x128xf32> to vector<16x16x128xf32>
    %70 = arith.truncf %69 : vector<16x16x128xf32> to vector<16x16x128xbf16>
    %c0_33 = arith.constant 0 : index
    %c0_34 = arith.constant 0 : index
    %c0_35 = arith.constant 0 : index
    %c0_36 = arith.constant 0 : index
    %71 = vector.load %arg8[%c0_33, %c0_34, %c0_35, %c0_36] : memref<1x16x16x128xbf16, #tpu.memory_space<vmem>>, vector<1x16x16x128xbf16>
    %72 = vector.shape_cast %71 : vector<1x16x16x128xbf16> to vector<16x16x128xbf16>
    %73 = vector.shape_cast %70 : vector<16x16x128xbf16> to vector<1x16x16x128xbf16>
    tpu.vector_store %arg8[%c0_33, %c0_34, %c0_35, %c0_36], %73 {strides = array<i32>} : memref<1x16x16x128xbf16, #tpu.memory_space<vmem>>, vector<1x16x16x128xbf16>,
    return
  }
  func.func @transform_0(%arg0: i32, %arg1: i32) -> (i32, i32, i32, i32) {
    %c0_i32 = arith.constant 0 : i32
    %c0_i32_0 = arith.constant 0 : i32
    %c0_i32_1 = arith.constant 0 : i32
    return %arg0, %arg1, %c0_i32, %c0_i32_0 : i32, i32, i32, i32
  }
  func.func @transform_1(%arg0: i32, %arg1: i32) -> (i32, i32, i32, i32) {
    %c16_i32 = arith.constant 16 : i32
    %0 = arith.muli %arg1, %c16_i32 : i32
    %c1_i32 = arith.constant 1 : i32
    %1 = arith.subi %0, %c1_i32 : i32
    %c0_i32 = arith.constant 0 : i32
    %2 = arith.maxsi %1, %c0_i32 : i32
    %c0_i32_0 = arith.constant 0 : i32
    %c0_i32_1 = arith.constant 0 : i32
    %c0_i32_2 = arith.constant 0 : i32
    return %arg0, %2, %c0_i32_0, %c0_i32_1 : i32, i32, i32, i32
  }
  func.func @transform_2(%arg0: i32, %arg1: i32) -> (i32, i32, i32, i32) {
    %c16_i32 = arith.constant 16 : i32
    %0 = arith.muli %arg1, %c16_i32 : i32
    %c16_i32_0 = arith.constant 16 : i32
    %1 = arith.addi %0, %c16_i32_0 : i32
    %c15_i32 = arith.constant 15 : i32
    %2 = arith.minsi %1, %c15_i32 : i32
    %c0_i32 = arith.constant 0 : i32
    %c0_i32_1 = arith.constant 0 : i32
    %c0_i32_2 = arith.constant 0 : i32
    return %arg0, %2, %c0_i32, %c0_i32_1 : i32, i32, i32, i32
  }
  func.func @transform_3(%arg0: i32, %arg1: i32) -> (i32, i32) {
    %c0_i32 = arith.constant 0 : i32
    %c0_i32_0 = arith.constant 0 : i32
    %c0_i32_1 = arith.constant 0 : i32
    return %c0_i32, %c0_i32_0 : i32, i32
  }
  func.func @transform_4(%arg0: i32, %arg1: i32) -> (i32, i32) {
    %c0_i32 = arith.constant 0 : i32
    %c0_i32_0 = arith.constant 0 : i32
    %c0_i32_1 = arith.constant 0 : i32
    return %c0_i32, %c0_i32_0 : i32, i32
  }
  func.func @transform_5(%arg0: i32, %arg1: i32) -> (i32, i32) {
    %c0_i32 = arith.constant 0 : i32
    %c0_i32_0 = arith.constant 0 : i32
    %c0_i32_1 = arith.constant 0 : i32
    return %c0_i32, %c0_i32_0 : i32, i32
  }
  func.func @transform_6(%arg0: i32, %arg1: i32) -> (i32, i32, i32, i32) {
    %c0_i32 = arith.constant 0 : i32
    %c0_i32_0 = arith.constant 0 : i32
    %c0_i32_1 = arith.constant 0 : i32
    return %arg0, %arg1, %c0_i32, %c0_i32_0 : i32, i32, i32, i32
  }
  func.func @transform_7(%arg0: i32, %arg1: i32) -> (i32, i32, i32, i32) {
    %c0_i32 = arith.constant 0 : i32
    %c0_i32_0 = arith.constant 0 : i32
    %c0_i32_1 = arith.constant 0 : i32
    return %arg0, %arg1, %c0_i32, %c0_i32_0 : i32, i32, i32, i32
  }
}

</mosaic_0001>

<bundles_post_ra>
// kernel: _lambda_.5
= control target key start
LH: loop header
LB: loop body
LE: loop exit
PB: predicated region body
PF: predicated region fallthrough
CT: control target
= control target key end

     0   :  { %s673_s12 = smov 0   ;;  %s675_s13 = smov 0   ;;  %s836_s0 = inlined_call_operand.vmem [shape: bf16[2,16,16,128], index: 0, kind: input, shape index: {}]   ;;  %s837_s1 = inlined_call_operand.vmem [shape: f32[1,128], index: 1, kind: input, shape index: {}]   ;;  %s838_s2 = inlined_call_operand.vmem [shape: f32[1,128], index: 2, kind: input, shape index: {}]   ;;  %s839_s3 = inlined_call_operand.vmem [shape: f32[2,16,16,128], index: 3, kind: output, shape index: {}]  }
   0x1   :  { %s677_s14 = smov 0  }
   0x2 LB: > { %s25_s15 = sadd.s32 1, %s647_s13  ;;  %p515_p0 = scmp.ge.s32.totalorder %s651_s14, 1  ;;  %s651_s14 = sphi %s677_s14, %s13_s14   ;;  %s647_s13 = sphi %s675_s13, %s841_s13   ;;  %s643_s12 = sphi %s673_s12, %s840_s12  }
   0x3   : > { %p27_p1 = scmp.ge.s32.totalorder %s25_s15, 2  ;;  %p159_p2 = scmp.lt.s32.totalorder %s651_s14, 3 }
   0x5   : > { %s843_s15 = smov (%p27_p1, %s25_s15), 0  ;;  %p160_p3 = pnand %p515_p0, %p159_p2 }
   0x6   : > { %p194_p4 = scmp.lt.s32.totalorder (!%p160_p3), %s643_s12, 1 }
   0x7   : > { %163 = sbr.rel (%p160_p3) target bundleno = 56 (0x38), region = 32 }
   0xc   : > { %s845_s12 = smov (!%p194_p4, %s643_s12), 1  ;;  %v702_v0 = vld [vmem:[%s837_s1] ss:$0 sm:$0xff] }
   0xd   : > { %s522_s16 = sshll.u32 %s845_s12, 7  ;;  %v710_v5 = vld [vmem:[%s838_s2] ss:$0 sm:$0xff]  ;;  %s523_s24 = sshll.u32 %s845_s12, 8 }
   0xe   : > { %s697_s19 = scalar_lea.vmem %s836_s0, %s522_s16  ;;  %s729_s27 = scalar_lea.vmem %s839_s3, %s523_s24 }
   0xf   : > { %v525_v1 = vld [vmem:[%s697_s19] sm:$0xff]   ;;  %v588_v2 = vld [vmem:[%s697_s19 + $0x8] sm:$0xff]   ;;  %v589_v3 = vld [vmem:[%s697_s19 + $0x10] sm:$0xff]  }
  0x10   : > { %v526_v4 = vunpack.c.l.bf16 %v525_v1  ;;  %v527_v6 = vunpack.c.h.bf16 %v525_v1  ;;  %v530_v7 = vunpack.c.l.bf16 %v588_v2  ;;  %v531_v8 = vunpack.c.h.bf16 %v588_v2  ;;  %v590_v9 = vld [vmem:[%s697_s19 + $0x18] sm:$0xff]   ;;  %v591_v30 = vld [vmem:[%s697_s19 + $0x20] sm:$0xff]   ;;  %v592_v31 = vld [vmem:[%s697_s19 + $0x28] sm:$0xff]  }
  0x11   : > { %v534_v10 = vunpack.c.l.bf16 %v589_v3  ;;  %v535_v11 = vunpack.c.h.bf16 %v589_v3  ;;  %v538_v12 = vunpack.c.l.bf16 %v590_v9  ;;  %v539_v13 = vunpack.c.h.bf16 %v590_v9  ;;  %v593_v36 = vld [vmem:[%s697_s19 + $0x30] sm:$0xff]   ;;  %v594_v37 = vld [vmem:[%s697_s19 + $0x38] sm:$0xff]   ;;  %v595_v3 = vld [vmem:[%s697_s19 + $0x40] sm:$0xff]  }
  0x12   : > { %v284_v14 = vmul.f32 %v702_v0, %v526_v4  ;;  %v285_v15 = vmul.f32 %v702_v0, %v527_v6  ;;  %v286_v16 = vmul.f32 %v702_v0, %v530_v7  ;;  %v287_v17 = vmul.f32 %v702_v0, %v531_v8  ;;  %v596_v4 = vld [vmem:[%s697_s19 + $0x48] sm:$0xff]   ;;  %v597_v6 = vld [vmem:[%s697_s19 + $0x50] sm:$0xff]  }
  0x13   : > { %v288_v18 = vmul.f32 %v702_v0, %v534_v10  ;;  %v289_v19 = vmul.f32 %v702_v0, %v535_v11  ;;  %v290_v20 = vmul.f32 %v702_v0, %v538_v12  ;;  %v291_v21 = vmul.f32 %v702_v0, %v539_v13  ;;  %v598_v11 = vld [vmem:[%s697_s19 + $0x58] sm:$0xff]  }
  0x14   : > { %v319_v22 = vadd.f32 %v710_v5, %v284_v14  ;;  %v320_v23 = vadd.f32 %v710_v5, %v285_v15  ;;  %v321_v24 = vadd.f32 %v710_v5, %v286_v16  ;;  %v322_v25 = vadd.f32 %v710_v5, %v287_v17 }
  0x15   : > { %v323_v26 = vadd.f32 %v710_v5, %v288_v18  ;;  %v324_v27 = vadd.f32 %v710_v5, %v289_v19  ;;  %v325_v28 = vadd.f32 %v710_v5, %v290_v20  ;;  %v326_v29 = vadd.f32 %v710_v5, %v291_v21 }
  0x16   : > { %v351_v32 = vmax.f32 %v319_v22, 0.0  ;;  %v352_v33 = vmax.f32 %v320_v23, 0.0  ;;  %v353_v34 = vmax.f32 %v321_v24, 0.0  ;;  %v354_v35 = vmax.f32 %v322_v25, 0.0 }
  0x17   : > { %v355_v38 = vmax.f32 %v323_v26, 0.0  ;;  %v356_v39 = vmax.f32 %v324_v27, 0.0  ;;  %v357_v40 = vmax.f32 %v325_v28, 0.0  ;;  %v358_v41 = vmax.f32 %v326_v29, 0.0 }
  0x18   : > { %383 = vst [vmem:[%s729_s27] sm:$0xff] %v351_v32  ;;  %v542_v42 = vunpack.c.l.bf16 %v591_v30  ;;  %v543_v43 = vunpack.c.h.bf16 %v591_v30  ;;  %v546_v44 = vunpack.c.l.bf16 %v592_v31  ;;  %v547_v45 = vunpack.c.h.bf16 %v592_v31 }
  0x19   : > { %384 = vst [vmem:[%s729_s27 + $0x8] sm:$0xff] %v352_v33  ;;  %v550_v46 = vunpack.c.l.bf16 %v593_v36  ;;  %v551_v47 = vunpack.c.h.bf16 %v593_v36  ;;  %v554_v48 = vunpack.c.l.bf16 %v594_v37  ;;  %v555_v49 = vunpack.c.h.bf16 %v594_v37 }
  0x1a   : > { %385 = vst [vmem:[%s729_s27 + $0x10] sm:$0xff] %v353_v34  ;;  %v292_v50 = vmul.f32 %v702_v0, %v542_v42  ;;  %v293_v51 = vmul.f32 %v702_v0, %v543_v43  ;;  %v294_v52 = vmul.f32 %v702_v0, %v546_v44  ;;  %v295_v53 = vmul.f32 %v702_v0, %v547_v45  ;;  %v601_v42 = vld [vmem:[%s697_s19 + $0x70] sm:$0xff]  }
  0x1b   : > { %386 = vst [vmem:[%s729_s27 + $0x18] sm:$0xff] %v354_v35  ;;  %v296_v54 = vmul.f32 %v702_v0, %v550_v46  ;;  %v297_v55 = vmul.f32 %v702_v0, %v551_v47  ;;  %v298_v56 = vmul.f32 %v702_v0, %v554_v48  ;;  %v299_v57 = vmul.f32 %v702_v0, %v555_v49  ;;  %v602_v47 = vld [vmem:[%s697_s19 + $0x78] sm:$0xff]  }
  0x1c   : > { %387 = vst [vmem:[%s729_s27 + $0x20] sm:$0xff] %v355_v38  ;;  %v327_v58 = vadd.f32 %v710_v5, %v292_v50  ;;  %v328_v59 = vadd.f32 %v710_v5, %v293_v51  ;;  %v329_v60 = vadd.f32 %v710_v5, %v294_v52  ;;  %v330_v61 = vadd.f32 %v710_v5, %v295_v53 }
  0x1d   : > { %388 = vst [vmem:[%s729_s27 + $0x28] sm:$0xff] %v356_v39  ;;  %v331_v62 = vadd.f32 %v710_v5, %v296_v54  ;;  %v332_v63 = vadd.f32 %v710_v5, %v297_v55  ;;  %v333_v1 = vadd.f32 %v710_v5, %v298_v56  ;;  %v334_v2 = vadd.f32 %v710_v5, %v299_v57 }
  0x1e   : > { %389 = vst [vmem:[%s729_s27 + $0x30] sm:$0xff] %v357_v40  ;;  %v359_v7 = vmax.f32 %v327_v58, 0.0  ;;  %v360_v8 = vmax.f32 %v328_v59, 0.0  ;;  %v361_v9 = vmax.f32 %v329_v60, 0.0  ;;  %v362_v10 = vmax.f32 %v330_v61, 0.0  ;;  %v599_v40 = vld [vmem:[%s697_s19 + $0x60] sm:$0xff]  }
  0x1f   : > { %390 = vst [vmem:[%s729_s27 + $0x38] sm:$0xff] %v358_v41  ;;  %v363_v12 = vmax.f32 %v331_v62, 0.0  ;;  %v364_v13 = vmax.f32 %v332_v63, 0.0  ;;  %v365_v14 = vmax.f32 %v333_v1, 0.0  ;;  %v366_v15 = vmax.f32 %v334_v2, 0.0  ;;  %v600_v41 = vld [vmem:[%s697_s19 + $0x68] sm:$0xff]  }
  0x20   : > { %391 = vst [vmem:[%s729_s27 + $0x40] sm:$0xff] %v359_v7  ;;  %v558_v16 = vunpack.c.l.bf16 %v595_v3  ;;  %v559_v17 = vunpack.c.h.bf16 %v595_v3  ;;  %v562_v18 = vunpack.c.l.bf16 %v596_v4  ;;  %v563_v19 = vunpack.c.h.bf16 %v596_v4 }
  0x21   : > { %392 = vst [vmem:[%s729_s27 + $0x48] sm:$0xff] %v360_v8  ;;  %v566_v20 = vunpack.c.l.bf16 %v597_v6  ;;  %v567_v21 = vunpack.c.h.bf16 %v597_v6  ;;  %v570_v22 = vunpack.c.l.bf16 %v598_v11  ;;  %v571_v23 = vunpack.c.h.bf16 %v598_v11 }
  0x22   : > { %393 = vst [vmem:[%s729_s27 + $0x50] sm:$0xff] %v361_v9  ;;  %v300_v24 = vmul.f32 %v702_v0, %v558_v16  ;;  %v301_v25 = vmul.f32 %v702_v0, %v559_v17  ;;  %v302_v26 = vmul.f32 %v702_v0, %v562_v18  ;;  %v303_v27 = vmul.f32 %v702_v0, %v563_v19 }
  0x23   : > { %394 = vst [vmem:[%s729_s27 + $0x58] sm:$0xff] %v362_v10  ;;  %v304_v28 = vmul.f32 %v702_v0, %v566_v20  ;;  %v305_v29 = vmul.f32 %v702_v0, %v567_v21  ;;  %v306_v30 = vmul.f32 %v702_v0, %v570_v22  ;;  %v307_v31 = vmul.f32 %v702_v0, %v571_v23 }
  0x24   : > { %395 = vst [vmem:[%s729_s27 + $0x60] sm:$0xff] %v363_v12  ;;  %v335_v32 = vadd.f32 %v710_v5, %v300_v24  ;;  %v336_v33 = vadd.f32 %v710_v5, %v301_v25  ;;  %v337_v34 = vadd.f32 %v710_v5, %v302_v26  ;;  %v338_v35 = vadd.f32 %v710_v5, %v303_v27 }
  0x25   : > { %396 = vst [vmem:[%s729_s27 + $0x68] sm:$0xff] %v364_v13  ;;  %v339_v36 = vadd.f32 %v710_v5, %v304_v28  ;;  %v340_v37 = vadd.f32 %v710_v5, %v305_v29  ;;  %v341_v38 = vadd.f32 %v710_v5, %v306_v30  ;;  %v342_v39 = vadd.f32 %v710_v5, %v307_v31 }
  0x26   : > { %397 = vst [vmem:[%s729_s27 + $0x70] sm:$0xff] %v365_v14  ;;  %v367_v43 = vmax.f32 %v335_v32, 0.0  ;;  %v368_v44 = vmax.f32 %v336_v33, 0.0  ;;  %v369_v45 = vmax.f32 %v337_v34, 0.0  ;;  %v370_v46 = vmax.f32 %v338_v35, 0.0 }
  0x27   : > { %398 = vst [vmem:[%s729_s27 + $0x78] sm:$0xff] %v366_v15  ;;  %v371_v48 = vmax.f32 %v339_v36, 0.0  ;;  %v372_v49 = vmax.f32 %v340_v37, 0.0  ;;  %v373_v50 = vmax.f32 %v341_v38, 0.0  ;;  %v374_v51 = vmax.f32 %v342_v39, 0.0 }
  0x28   : > { %399 = vst [vmem:[%s729_s27 + $0x80] sm:$0xff] %v367_v43  ;;  %v574_v52 = vunpack.c.l.bf16 %v599_v40  ;;  %v575_v53 = vunpack.c.h.bf16 %v599_v40  ;;  %v578_v54 = vunpack.c.l.bf16 %v600_v41  ;;  %v579_v55 = vunpack.c.h.bf16 %v600_v41 }
  0x29   : > { %400 = vst [vmem:[%s729_s27 + $0x88] sm:$0xff] %v368_v44  ;;  %v582_v56 = vunpack.c.l.bf16 %v601_v42  ;;  %v583_v57 = vunpack.c.h.bf16 %v601_v42  ;;  %v586_v58 = vunpack.c.l.bf16 %v602_v47  ;;  %v587_v59 = vunpack.c.h.bf16 %v602_v47 }
  0x2a   : > { %401 = vst [vmem:[%s729_s27 + $0x90] sm:$0xff] %v369_v45  ;;  %v308_v60 = vmul.f32 %v702_v0, %v574_v52  ;;  %v309_v61 = vmul.f32 %v702_v0, %v575_v53  ;;  %v310_v62 = vmul.f32 %v702_v0, %v578_v54  ;;  %v311_v63 = vmul.f32 %v702_v0, %v579_v55 }
  0x2b   : > { %402 = vst [vmem:[%s729_s27 + $0x98] sm:$0xff] %v370_v46  ;;  %v312_v1 = vmul.f32 %v702_v0, %v582_v56  ;;  %v313_v2 = vmul.f32 %v702_v0, %v583_v57  ;;  %v314_v3 = vmul.f32 %v702_v0, %v586_v58  ;;  %v315_v4 = vmul.f32 %v702_v0, %v587_v59 }
  0x2c   : > { %403 = vst [vmem:[%s729_s27 + $0xa0] sm:$0xff] %v371_v48  ;;  %v343_v6 = vadd.f32 %v710_v5, %v308_v60  ;;  %v344_v7 = vadd.f32 %v710_v5, %v309_v61  ;;  %v345_v8 = vadd.f32 %v710_v5, %v310_v62  ;;  %v346_v9 = vadd.f32 %v710_v5, %v311_v63 }
  0x2d   : > { %404 = vst [vmem:[%s729_s27 + $0xa8] sm:$0xff] %v372_v49  ;;  %v347_v10 = vadd.f32 %v710_v5, %v312_v1  ;;  %v348_v11 = vadd.f32 %v710_v5, %v313_v2  ;;  %v349_v14 = vadd.f32 %v710_v5, %v314_v3  ;;  %v350_v16 = vadd.f32 %v710_v5, %v315_v4 }
  0x2e   : > { %405 = vst [vmem:[%s729_s27 + $0xb0] sm:$0xff] %v373_v50  ;;  %v375_v0 = vmax.f32 %v343_v6, 0.0  ;;  %v376_v12 = vmax.f32 %v344_v7, 0.0  ;;  %v377_v13 = vmax.f32 %v345_v8, 0.0  ;;  %v378_v15 = vmax.f32 %v346_v9, 0.0 }
  0x2f   : > { %406 = vst [vmem:[%s729_s27 + $0xb8] sm:$0xff] %v374_v51  ;;  %v379_v17 = vmax.f32 %v347_v10, 0.0  ;;  %v380_v18 = vmax.f32 %v348_v11, 0.0  ;;  %v381_v19 = vmax.f32 %v349_v14, 0.0  ;;  %v382_v20 = vmax.f32 %v350_v16, 0.0 }
  0x30   : > { %407 = vst [vmem:[%s729_s27 + $0xc0] sm:$0xff] %v375_v0 }
  0x31   : > { %408 = vst [vmem:[%s729_s27 + $0xc8] sm:$0xff] %v376_v12 }
  0x32   : > { %409 = vst [vmem:[%s729_s27 + $0xd0] sm:$0xff] %v377_v13 }
  0x33   : > { %410 = vst [vmem:[%s729_s27 + $0xd8] sm:$0xff] %v378_v15 }
  0x34   : > { %411 = vst [vmem:[%s729_s27 + $0xe0] sm:$0xff] %v379_v17 }
  0x35   : > { %412 = vst [vmem:[%s729_s27 + $0xe8] sm:$0xff] %v380_v18 }
  0x36   : > { %413 = vst [vmem:[%s729_s27 + $0xf0] sm:$0xff] %v381_v19 }
  0x37   : > { %414 = vst [vmem:[%s729_s27 + $0xf8] sm:$0xff] %v382_v20 }
  0x38 PF: > { %s13_s14 = sadd.s32 1, %s651_s14   ;;  %s840_s12 = smov %s647_s13 }
  0x39   : > { %p10_p5 = scmp.ge.s32.totalorder %s13_s14, 4   ;;  %s841_s13 = smov %s843_s15 }
  0x3b   :  { %12 = sbr.rel (!%p10_p5) target bundleno = 2 (0x2), region = 62 }

// kernel: _lambda_.4
= control target key start
LH: loop header
LB: loop body
LE: loop exit
PB: predicated region body
PF: predicated region fallthrough
CT: control target
= control target key end

     0   :  { %s3766_s24 = smov 0   ;;  %s3768_s1 = smov 0   ;;  %s4802_s0 = inlined_call_operand.vmem [shape: bf16[2,16,16,128], index: 0, kind: input, shape index: {}, may-alias: {0,1,2}]   ;;  %s4803_s1 = inlined_call_operand.vmem [shape: bf16[2,16,16,128], index: 1, kind: input, shape index: {}, may-alias: {0,1,2}]   ;;  %s4804_s2 = inlined_call_operand.vmem [shape: bf16[2,16,16,128], index: 2, kind: input, shape index: {}, may-alias: {0,1,2}]   ;;  %s4805_s3 = inlined_call_operand.vmem [shape: bf16[1152,128], index: 3, kind: input, shape index: {}]   ;;  %s4806_s4 = inlined_call_operand.vmem [shape: f32[1,128], index: 4, kind: input, shape index: {}]   ;;  %s4807_s5 = inlined_call_operand.vmem [shape: f32[1,128], index: 5, kind: input, shape index: {}]   ;;  %s4808_s6 = inlined_call_operand.vmem [shape: bf16[2,16,16,128], index: 6, kind: output, shape index: {0}]   ;;  %s4809_s7 = inlined_call_operand.vmem [shape: f32[2,1,2,128], index: 7, kind: output, shape index: {1}]  }
   0x1   :  { %s3770_s2 = smov 0  }
   0x2 LB: > { %s30_s25 = sadd.s32 1, %s3719_s1  ;;  %p3099_p0 = scmp.ge.s32.totalorder %s3723_s2, 1  ;;  %s3723_s2 = sphi %s3770_s2, %s18_s2   ;;  %s3719_s1 = sphi %s3768_s1, %s4925_s1   ;;  %s3715_s24 = sphi %s3766_s24, %s4924_s24  }
   0x3   : > { %p32_p1 = scmp.ge.s32.totalorder %s30_s25, 2  ;;  %p328_p2 = scmp.lt.s32.totalorder %s3723_s2, 3 }
   0x5   : > { %s4927_s25 = smov (%p32_p1, %s30_s25), 0  ;;  %p329_p3 = pnand %p3099_p0, %p328_p2 }
   0x7   : > { %332 = sbr.rel (%p329_p3) target bundleno = 777 (0x309), region = 44 }
   0xc   : > { %v3435_v0 = vld [vmem:[%s4805_s3 + $0xf8] sm:$0xff]  ;;  %p404_p4 = scmp.lt.s32.totalorder %s3715_s24, 1  ;;  %v3434_v1 = vld [vmem:[%s4805_s3 + $0xf0] sm:$0xff]  ;;  %v3433_v2 = vld [vmem:[%s4805_s3 + $0xe8] sm:$0xff]  ;;  %vm951_vm0 = vcmask 1040384   ;;  %vm1261_vm4 = vcmask 1046528  }
   0xd   : > { %1574 = vmatpush.bf16.msra.mxu0 %v3435_v0  ;;  %3650 = vmatpush.bf16.msra.mxu1 %v3435_v0  ;;  %v3806_v3 = vld [vmem:[%s4806_s4] ss:$0 sm:$0xff]  ;;  %vm952_vm1 = vsmask.f32 256  ;;  %v3431_v39 = vld [vmem:[%s4805_s3 + $0xd8] sm:$0xff]  ;;  %v3430_v57 = vld [vmem:[%s4805_s3 + $0xd0] sm:$0xff] }
   0xe   : > { %s4929_s24 = smov (!%p404_p4, %s3715_s24), 1  ;;  %3651 = vmatpush.bf16.msra.mxu2 %v3435_v0  ;;  %3652 = vmatpush.bf16.msra.mxu3 %v3435_v0  ;;  %v3814_v9 = vld [vmem:[%s4807_s5] ss:$0 sm:$0xff]  ;;  %vm3860_vm2 = vmand %vm951_vm0, %vm952_vm1  ;;  %vm990_vm3 = vsmask.f32 7424 }
   0xf   : > { %s3399_s30 = sshll.u32 %s4929_s24, 7  ;;  %v3432_v22 = vld [vmem:[%s4805_s3 + $0xe0] sm:$0xff] }
  0x10   : > { %s3801_s12 = scalar_lea.vmem %s4802_s0, %s3399_s30  ;;  %s4716_s20 = scalar_lea.vmem %s4808_s6, %s3399_s30 }
  0x11   : > { %1575 = vmatpush.bf16.msra.mxu0 %v3434_v1  ;;  %3653 = vmatpush.bf16.msra.mxu1 %v3434_v1  ;;  %v3477_v4 = vld [vmem:[%s3801_s12] sm:$0xff]   ;;  %v3818_v13 = vld [vmem:[%s3801_s12 + $0x8] sm:$0xff]   ;;  %s3108_s30 = sshll.u32 %s4929_s24, 1 }
  0x12   : > { %v3623_v5 = vld [vmem:[%s3801_s12 + $0x20] sm:$0xff]   ;;  %3654 = vmatpush.bf16.msra.mxu2 %v3434_v1  ;;  %3655 = vmatpush.bf16.msra.mxu3 %v3434_v1  ;;  %v3478_v7 = vunpack.c.l.bf16 %v3477_v4  ;;  %v3479_v8 = vunpack.c.h.bf16 %v3477_v4  ;;  %v3482_v26 = vunpack.c.l.bf16 %v3818_v13  ;;  %v3483_v30 = vunpack.c.h.bf16 %v3818_v13  ;;  %v3624_v56 = vld [vmem:[%s3801_s12 + $0x28] sm:$0xff]   ;;  %s465_s23 = scalar_lea.vmem %s4809_s7, %s3108_s30 }
  0x13   : > { %v3627_v6 = vld [vmem:[%s3801_s12 + $0x40] sm:$0xff]   ;;  %v3494_v10 = vunpack.c.l.bf16 %v3623_v5  ;;  %v3495_v11 = vunpack.c.h.bf16 %v3623_v5 }
  0x14   : > { %v3631_v12 = vld [vmem:[%s3801_s12 + $0x60] sm:$0xff]   ;;  %v3510_v14 = vunpack.c.l.bf16 %v3627_v6  ;;  %v3511_v15 = vunpack.c.h.bf16 %v3627_v6  ;;  %v540_v18 = vmul.f32 %v3806_v3, %v3478_v7  ;;  %v541_v19 = vmul.f32 %v3806_v3, %v3479_v8 }
  0x15   : > { %v3526_v16 = vunpack.c.l.bf16 %v3631_v12  ;;  %v3527_v17 = vunpack.c.h.bf16 %v3631_v12  ;;  %v548_v20 = vmul.f32 %v3806_v3, %v3494_v10  ;;  %v549_v21 = vmul.f32 %v3806_v3, %v3495_v11  ;;  %1576 = vmatpush.bf16.msra.mxu0 %v3433_v2  ;;  %3656 = vmatpush.bf16.msra.mxu1 %v3433_v2  ;;  %v3429_v12 = vld [vmem:[%s4805_s3 + $0xc8] sm:$0xff] }
  0x16   : > { %v556_v23 = vmul.f32 %v3806_v3, %v3510_v14  ;;  %v557_v24 = vmul.f32 %v3806_v3, %v3511_v15  ;;  %3657 = vmatpush.bf16.msra.mxu2 %v3433_v2  ;;  %3658 = vmatpush.bf16.msra.mxu3 %v3433_v2  ;;  %v575_v27 = vadd.f32 %v3814_v9, %v540_v18  ;;  %v3498_v6 = vunpack.c.l.bf16 %v3624_v56 }
  0x17   : > { %v564_v25 = vmul.f32 %v3806_v3, %v3526_v16  ;;  %v576_v28 = vadd.f32 %v3814_v9, %v541_v19  ;;  %v583_v29 = vadd.f32 %v3814_v9, %v548_v20  ;;  %v584_v31 = vadd.f32 %v3814_v9, %v549_v21  ;;  %v3628_v21 = vld [vmem:[%s3801_s12 + $0x48] sm:$0xff]  }
  0x18   : > { %v591_v32 = vadd.f32 %v3814_v9, %v556_v23  ;;  %v592_v33 = vadd.f32 %v3814_v9, %v557_v24  ;;  %v565_v34 = vmul.f32 %v3806_v3, %v3527_v17  ;;  %v607_v35 = vmax.f32 %v575_v27, 0.0 }
  0x19   : > { %v608_v36 = vmax.f32 %v576_v28, 0.0  ;;  %v615_v37 = vmax.f32 %v583_v29, 0.0  ;;  %v599_v38 = vadd.f32 %v3814_v9, %v564_v25  ;;  %1577 = vmatpush.bf16.msra.mxu0 %v3432_v22  ;;  %3659 = vmatpush.bf16.msra.mxu1 %v3432_v22  ;;  %v616_v40 = vmax.f32 %v584_v31, 0.0  ;;  %v3428_v31 = vld [vmem:[%s4805_s3 + $0xc0] sm:$0xff] }
  0x1a   : > { %v623_v41 = vmax.f32 %v591_v32, 0.0  ;;  %v624_v42 = vmax.f32 %v592_v33, 0.0  ;;  %v600_v43 = vadd.f32 %v3814_v9, %v565_v34  ;;  %3660 = vmatpush.bf16.msra.mxu2 %v3432_v22  ;;  %3661 = vmatpush.bf16.msra.mxu3 %v3432_v22  ;;  %v639_v44 = vpack.c.bf16 %v607_v35, %v607_v35 }
  0x1b   : > { %v640_v45 = vpack.c.bf16 %v608_v36, %v608_v36  ;;  %v647_v46 = vpack.c.bf16 %v615_v37, %v615_v37  ;;  %v631_v47 = vmax.f32 %v599_v38, 0.0  ;;  %v648_v48 = vpack.c.bf16 %v616_v40, %v616_v40  ;;  %v3632_v40 = vld [vmem:[%s3801_s12 + $0x68] sm:$0xff]  }
  0x1c   : > { %v655_v49 = vpack.c.bf16 %v623_v41, %v623_v41  ;;  %v656_v50 = vpack.c.bf16 %v624_v42, %v624_v42  ;;  %v632_v51 = vmax.f32 %v600_v43, 0.0  ;;  %v737_v52 = vunpack.c.l.b16 %v639_v44  ;;  %v3451_v43 = vld [vmem:[%s4805_s3 + $0x178] sm:$0xff] }
  0x1d   : > { %v738_v53 = vunpack.c.l.b16 %v640_v45  ;;  %v745_v54 = vunpack.c.l.b16 %v647_v46  ;;  %v663_v55 = vpack.c.bf16 %v631_v47, %v631_v47  ;;  %1578 = vmatpush.bf16.msra.mxu0 %v3431_v39  ;;  %3662 = vmatpush.bf16.msra.mxu1 %v3431_v39  ;;  %v746_v58 = vunpack.c.l.b16 %v648_v48  ;;  %v3411_v44 = vld [vmem:[%s4805_s3 + $0x38] sm:$0xff] }
  0x1e   : > { %v753_v59 = vunpack.c.l.b16 %v655_v49  ;;  %v754_v60 = vunpack.c.l.b16 %v656_v50  ;;  %v664_v61 = vpack.c.bf16 %v632_v51, %v632_v51  ;;  %3663 = vmatpush.bf16.msra.mxu2 %v3431_v39  ;;  %3664 = vmatpush.bf16.msra.mxu3 %v3431_v39  ;;  %v542_v0 = vmul.f32 %v3806_v3, %v3482_v26 }
  0x1f   : > { %v772_v62 = vpack.c.b16 %v738_v53, %v737_v52  ;;  %v761_v63 = vunpack.c.l.b16 %v663_v55  ;;  %v543_v1 = vmul.f32 %v3806_v3, %v3483_v30  ;;  %v776_v2 = vpack.c.b16 %v746_v58, %v745_v54 }
  0x20   : > { %v780_v4 = vpack.c.b16 %v754_v60, %v753_v59  ;;  %v762_v5 = vunpack.c.l.b16 %v664_v61  ;;  %v577_v10 = vadd.f32 %v3814_v9, %v542_v0  ;;  %v3499_v25 = vunpack.c.h.bf16 %v3624_v56  ;;  %v3443_v56 = vld [vmem:[%s4805_s3 + $0x138] sm:$0xff]  ;;  %v3621_v61 = vld [vmem:[%s3801_s12 + $0x10] sm:$0xff]  }
  0x21   : > { %v797_v7 = vshrl.u32 %v772_v62, 16  ;;  %v800_v8 = vshll.u32 %v772_v62, 16  ;;  %v578_v11 = vadd.f32 %v3814_v9, %v543_v1  ;;  %1579 = vmatpush.bf16.msra.mxu0 %v3430_v57  ;;  %3665 = vmatpush.bf16.msra.mxu1 %v3430_v57  ;;  %v825_v13 = vshrl.u32 %v776_v2, 16  ;;  %v3450_v62 = vld [vmem:[%s4805_s3 + $0x170] sm:$0xff] }
  0x22   : > { %v828_v14 = vshll.u32 %v776_v2, 16  ;;  %v853_v15 = vshrl.u32 %v780_v4, 16  ;;  %v856_v16 = vshll.u32 %v780_v4, 16  ;;  %3666 = vmatpush.bf16.msra.mxu2 %v3430_v57  ;;  %3667 = vmatpush.bf16.msra.mxu3 %v3430_v57  ;;  %v784_v18 = vpack.c.b16 %v762_v5, %v761_v63  ;;  %v3419_v57 = vld [vmem:[%s4805_s3 + $0x78] sm:$0xff]  ;;  %v3410_v63 = vld [vmem:[%s4805_s3 + $0x30] sm:$0xff] }
  0x23   : > { %v3855_v17 = vrot.slane %v797_v7, 7  ;;  %v609_v19 = vmax.f32 %v577_v10, 0.0  ;;  %v610_v20 = vmax.f32 %v578_v11, 0.0  ;;  %v3864_v23 = vrot.slane %v825_v13, 7 }
  0x24   : > { %v3866_v24 = vrot.slane %v853_v15, 7  ;;  %v550_v26 = vmul.f32 %v3806_v3, %v3498_v6  ;;  %v881_v28 = vshrl.u32 %v784_v18, 16  ;;  %v884_v29 = vshll.u32 %v784_v18, 16 }
  0x25   : > { %v802_v27 = vor.u32 %v800_v8, %v3855_v17  ;;  %v641_v30 = vpack.c.bf16 %v609_v19, %v609_v19  ;;  %1580 = vmatpush.bf16.msra.mxu0 %v3429_v12  ;;  %3668 = vmatpush.bf16.msra.mxu1 %v3429_v12  ;;  %v830_v32 = vor.u32 %v828_v14, %v3864_v23  ;;  %v3514_v35 = vunpack.c.l.bf16 %v3628_v21  ;;  %v3442_v19 = vld [vmem:[%s4805_s3 + $0x130] sm:$0xff] }
  0x26   : > { %v858_v33 = vor.u32 %v856_v16, %v3866_v24  ;;  %v642_v34 = vpack.c.bf16 %v610_v20, %v610_v20  ;;  %3669 = vmatpush.bf16.msra.mxu2 %v3429_v12  ;;  %3670 = vmatpush.bf16.msra.mxu3 %v3429_v12  ;;  %v3879_v37 = vrot.slane %v881_v28, 7  ;;  %v551_v39 = vmul.f32 %v3806_v3, %v3499_v25  ;;  %v3418_v20 = vld [vmem:[%s4805_s3 + $0x70] sm:$0xff] }
  0x27   : > { %v3877_v36 = vsel %vm3860_vm2, 0, %v802_v27  ;;  %v739_v38 = vunpack.c.l.b16 %v641_v30  ;;  %v3885_v41 = vsel %vm3860_vm2, 0, %v830_v32  ;;  %v585_v46 = vadd.f32 %v3814_v9, %v550_v26  ;;  %v3449_v26 = vld [vmem:[%s4805_s3 + $0x168] sm:$0xff] }
  0x28   : > { %4840 = vst [vmem:[#allocation2_spill] sm:$0xff] %v3885_v41  ;;  %v3889_v42 = vsel %vm3860_vm2, 0, %v858_v33  ;;  %v740_v45 = vunpack.c.l.b16 %v642_v34  ;;  %v886_v47 = vor.u32 %v884_v29, %v3879_v37  ;;  %v586_v48 = vadd.f32 %v3814_v9, %v551_v39  ;;  %v3409_v27 = vld [vmem:[%s4805_s3 + $0x28] sm:$0xff]  ;;  %v3625_v34 = vld [vmem:[%s3801_s12 + $0x30] sm:$0xff]  }
  0x29   : > { %v3515_v49 = vunpack.c.h.bf16 %v3628_v21  ;;  %v558_v50 = vmul.f32 %v3806_v3, %v3514_v35  ;;  %1581 = vmatpush.bf16.msra.mxu0 %v3428_v31  ;;  %3671 = vmatpush.bf16.msra.mxu1 %v3428_v31  ;;  %v617_v52 = vmax.f32 %v585_v46, 0.0  ;;  %v3530_v53 = vunpack.c.l.bf16 %v3632_v40 }
  0x2a   : > { %v773_v51 = vpack.c.b16 %v740_v45, %v739_v38  ;;  %v3531_v54 = vunpack.c.h.bf16 %v3632_v40  ;;  %3672 = vmatpush.bf16.msra.mxu2 %v3428_v31  ;;  %3673 = vmatpush.bf16.msra.mxu3 %v3428_v31  ;;  %v3903_v55 = vsel %vm3860_vm2, 0, %v886_v47  ;;  %v618_v58 = vmax.f32 %v586_v48, 0.0  ;;  %v3441_v47 = vld [vmem:[%s4805_s3 + $0x128] sm:$0xff] }
  0x2b   : > { %v559_v59 = vmul.f32 %v3806_v3, %v3515_v49  ;;  %v593_v60 = vadd.f32 %v3814_v9, %v558_v50  ;;  %v649_v2 = vpack.c.bf16 %v617_v52, %v617_v52  ;;  %v566_v4 = vmul.f32 %v3806_v3, %v3530_v53  ;;  %v3417_v48 = vld [vmem:[%s4805_s3 + $0x68] sm:$0xff]  ;;  %v3629_v49 = vld [vmem:[%s3801_s12 + $0x50] sm:$0xff]   ;;  %v3408_v52 = vld [vmem:[%s4805_s3 + $0x20] sm:$0xff] }
  0x2c   : > { %v804_v0 = vshrl.u32 %v773_v51, 16  ;;  %v807_v1 = vshll.u32 %v773_v51, 16  ;;  %1582 = vmatmul.bf16.vlgmr.msra.gmra.mxu0 %v3877_v36  ;;  %1602 = vmatmul.bf16.vlgmr.msra.gmra.mxu1 %v3885_v41  ;;  %v650_v5 = vpack.c.bf16 %v618_v58, %v618_v58  ;;  %v567_v8 = vmul.f32 %v3806_v3, %v3531_v54  ;;  %v3448_v51 = vld [vmem:[%s4805_s3 + $0x160] sm:$0xff] }
  0x2d   : > { %v594_v6 = vadd.f32 %v3814_v9, %v559_v59  ;;  %v625_v7 = vmax.f32 %v593_v60, 0.0  ;;  %1622 = vmatmul.bf16.vlgmr.msra.gmra.mxu2 %v3889_v42  ;;  %1642 = vmatmul.bf16.vlgmr.msra.gmra.mxu3 %v3903_v55  ;;  %v747_v11 = vunpack.c.l.b16 %v649_v2  ;;  %v601_v12 = vadd.f32 %v3814_v9, %v566_v4 }
  0x2e   : > { %1752 = vmatpush.bf16.msrb.mxu2 %v3451_v43  ;;  %1985 = vmatpush.bf16.msrb.mxu3 %v3411_v44  ;;  %v3927_v10 = vrot.slane %v804_v0, 7  ;;  %v3486_v13 = vunpack.c.l.bf16 %v3621_v61  ;;  %v748_v14 = vunpack.c.l.b16 %v650_v5  ;;  %v602_v18 = vadd.f32 %v3814_v9, %v567_v8 }
  0x2f   : > { %1663 = vmatpush.bf16.msrb.mxu1 %v3443_v56  ;;  %2074 = vmatpush.bf16.msrb.mxu0 %v3419_v57  ;;  %v626_v15 = vmax.f32 %v594_v6, 0.0  ;;  %v657_v16 = vpack.c.bf16 %v625_v7, %v625_v7  ;;  %v633_v25 = vmax.f32 %v601_v12, 0.0  ;;  %v3487_v28 = vunpack.c.h.bf16 %v3621_v61  ;;  %v3440_v6 = vld [vmem:[%s4805_s3 + $0x120] sm:$0xff] }
  0x30   : > { %v809_v21 = vor.u32 %v807_v1, %v3927_v10  ;;  %v544_v29 = vmul.f32 %v3806_v3, %v3486_v13  ;;  %v777_v30 = vpack.c.b16 %v748_v14, %v747_v11  ;;  %v634_v33 = vmax.f32 %v602_v18, 0.0  ;;  %v3416_v7 = vld [vmem:[%s4805_s3 + $0x60] sm:$0xff]  ;;  %v3633_v14 = vld [vmem:[%s3801_s12 + $0x70] sm:$0xff]  }
  0x31   : > { %v658_v31 = vpack.c.bf16 %v626_v15, %v626_v15  ;;  %v755_v32 = vunpack.c.l.b16 %v657_v16  ;;  %v665_v38 = vpack.c.bf16 %v633_v25, %v633_v25  ;;  %v545_v39 = vmul.f32 %v3806_v3, %v3487_v28  ;;  %v3447_v15 = vld [vmem:[%s4805_s3 + $0x158] sm:$0xff] }
  0x32   : > { %1753 = vmatpush.bf16.msrb.mxu2 %v3450_v62  ;;  %1986 = vmatpush.bf16.msrb.mxu3 %v3410_v63  ;;  %v3948_v35 = vsel %vm3860_vm2, 0, %v809_v21  ;;  %v579_v40 = vadd.f32 %v3814_v9, %v544_v29  ;;  %v832_v43 = vshrl.u32 %v777_v30, 16  ;;  %v835_v44 = vshll.u32 %v777_v30, 16  ;;  %v3407_v16 = vld [vmem:[%s4805_s3 + $0x18] sm:$0xff] }
  0x33   : > { %v756_v45 = vunpack.c.l.b16 %v658_v31  ;;  %v666_v46 = vpack.c.bf16 %v634_v33, %v634_v33  ;;  %1664 = vmatpush.bf16.msrb.mxu1 %v3442_v19  ;;  %2075 = vmatpush.bf16.msrb.mxu0 %v3418_v20  ;;  %v763_v50 = vunpack.c.l.b16 %v665_v38  ;;  %v580_v53 = vadd.f32 %v3814_v9, %v545_v39  ;;  %v3439_v33 = vld [vmem:[%s4805_s3 + $0x118] sm:$0xff] }
  0x34   : > { %v611_v54 = vmax.f32 %v579_v40, 0.0  ;;  %v3502_v56 = vunpack.c.l.bf16 %v3625_v34  ;;  %v3966_v57 = vrot.slane %v832_v43, 7  ;;  %v3503_v60 = vunpack.c.h.bf16 %v3625_v34  ;;  %v3415_v34 = vld [vmem:[%s4805_s3 + $0x58] sm:$0xff] }
  0x35   : > { %v781_v58 = vpack.c.b16 %v756_v45, %v755_v32  ;;  %v764_v59 = vunpack.c.l.b16 %v666_v46  ;;  %v612_v61 = vmax.f32 %v580_v53, 0.0  ;;  %v3518_v0 = vunpack.c.l.bf16 %v3629_v49 }
  0x36   : > { %1754 = vmatpush.bf16.msrb.mxu2 %v3449_v26  ;;  %1987 = vmatpush.bf16.msrb.mxu3 %v3409_v27  ;;  %v643_v62 = vpack.c.bf16 %v611_v54, %v611_v54  ;;  %v552_v63 = vmul.f32 %v3806_v3, %v3502_v56  ;;  %v837_v1 = vor.u32 %v835_v44, %v3966_v57  ;;  %v3519_v28 = vunpack.c.h.bf16 %v3629_v49  ;;  %v3446_v44 = vld [vmem:[%s4805_s3 + $0x150] sm:$0xff] }
  0x37   : > { %v860_v2 = vshrl.u32 %v781_v58, 16  ;;  %v863_v4 = vshll.u32 %v781_v58, 16  ;;  %v785_v5 = vpack.c.b16 %v764_v59, %v763_v50  ;;  %1665 = vmatpush.bf16.msrb.mxu1 %v3441_v47  ;;  %2076 = vmatpush.bf16.msrb.mxu0 %v3417_v48  ;;  %v644_v8 = vpack.c.bf16 %v612_v61, %v612_v61  ;;  %v3406_v49 = vld [vmem:[%s4805_s3 + $0x10] sm:$0xff]  ;;  %v3622_v50 = vld [vmem:[%s3801_s12 + $0x18] sm:$0xff]  }
  0x38   : > { %v741_v11 = vunpack.c.l.b16 %v643_v62  ;;  %v553_v12 = vmul.f32 %v3806_v3, %v3503_v60  ;;  %v587_v13 = vadd.f32 %v3814_v9, %v552_v63  ;;  %v3987_v18 = vsel %vm3860_vm2, 0, %v837_v1 }
  0x39   : > { %4841 = vst [vmem:[#allocation3_spill] sm:$0xff] %v3987_v18  ;;  %v3989_v19 = vrot.slane %v860_v2, 7  ;;  %v888_v20 = vshrl.u32 %v785_v5, 16  ;;  %v891_v21 = vshll.u32 %v785_v5, 16  ;;  %v742_v25 = vunpack.c.l.b16 %v644_v8 }
  0x3a   : > { %1755 = vmatpush.bf16.msrb.mxu2 %v3448_v51  ;;  %1988 = vmatpush.bf16.msrb.mxu3 %v3408_v52  ;;  %v588_v26 = vadd.f32 %v3814_v9, %v553_v12  ;;  %v619_v27 = vmax.f32 %v587_v13, 0.0  ;;  %v560_v31 = vmul.f32 %v3806_v3, %v3518_v0  ;;  %v3534_v32 = vunpack.c.l.bf16 %v3633_v14 }
  0x3b   : > { %v865_v29 = vor.u32 %v863_v4, %v3989_v19  ;;  %v3993_v30 = vrot.slane %v888_v20, 7  ;;  %1666 = vmatpush.bf16.msrb.mxu1 %v3440_v6  ;;  %2077 = vmatpush.bf16.msrb.mxu0 %v3416_v7  ;;  %v774_v38 = vpack.c.b16 %v742_v25, %v741_v11  ;;  %v561_v43 = vmul.f32 %v3806_v3, %v3519_v28 }
  0x3c   : > { %v620_v39 = vmax.f32 %v588_v26, 0.0  ;;  %v651_v40 = vpack.c.bf16 %v619_v27, %v619_v27  ;;  %1587 = vmatmul.bf16.gmra.mxu0 %v3948_v35  ;;  %1607 = vmatmul.bf16.gmra.mxu1 %v3987_v18  ;;  %v595_v47 = vadd.f32 %v3814_v9, %v560_v31  ;;  %v3535_v48 = vunpack.c.h.bf16 %v3633_v14 }
  0x3d   : > { %v4010_v45 = vsel %vm3860_vm2, 0, %v865_v29  ;;  %v893_v46 = vor.u32 %v891_v21, %v3993_v30  ;;  %v811_v51 = vshrl.u32 %v774_v38, 16  ;;  %v814_v52 = vshll.u32 %v774_v38, 16 }
  0x3e   : > { %1756 = vmatpush.bf16.msrb.mxu2 %v3447_v15  ;;  %1989 = vmatpush.bf16.msrb.mxu3 %v3407_v16  ;;  %v652_v53 = vpack.c.bf16 %v620_v39, %v620_v39  ;;  %v749_v54 = vunpack.c.l.b16 %v651_v40  ;;  %v596_v58 = vadd.f32 %v3814_v9, %v561_v43  ;;  %v627_v59 = vmax.f32 %v595_v47, 0.0  ;;  %v3626_v16 = vld [vmem:[%s3801_s12 + $0x38] sm:$0xff]   ;;  %v3438_v39 = vld [vmem:[%s4805_s3 + $0x110] sm:$0xff]  ;;  %v3445_v40 = vld [vmem:[%s4805_s3 + $0x148] sm:$0xff] }
  0x3f   : > { %1627 = vmatmul.bf16.gmra.mxu2 %v4010_v45  ;;  %v4021_v56 = vsel %vm3860_vm2, 0, %v893_v46  ;;  %v568_v60 = vmul.f32 %v3806_v3, %v3534_v32  ;;  %1667 = vmatpush.bf16.msrb.mxu1 %v3439_v33  ;;  %v4026_v61 = vrot.slane %v811_v51, 7  ;;  %v569_v63 = vmul.f32 %v3806_v3, %v3535_v48  ;;  %v3405_v43 = vld [vmem:[%s4805_s3 + $0x8] sm:$0xff] }
  0x40   : > { %2078 = vmatpush.bf16.msrb.mxu0 %v3415_v34  ;;  %1647 = vmatmul.bf16.gmra.mxu3 %v4021_v56  ;;  %v750_v62 = vunpack.c.l.b16 %v652_v53  ;;  %v3490_v0 = vunpack.c.l.bf16 %v3622_v50  ;;  %v628_v1 = vmax.f32 %v596_v58, 0.0  ;;  %v659_v2 = vpack.c.bf16 %v627_v59, %v627_v59  ;;  %v3437_v58 = vld [vmem:[%s4805_s3 + $0x108] sm:$0xff]  ;;  %v3444_v59 = vld [vmem:[%s4805_s3 + $0x140] sm:$0xff] }
  0x41   : > { %v603_v4 = vadd.f32 %v3814_v9, %v568_v60  ;;  %v3491_v5 = vunpack.c.h.bf16 %v3622_v50  ;;  %v816_v6 = vor.u32 %v814_v52, %v4026_v61  ;;  %v604_v8 = vadd.f32 %v3814_v9, %v569_v63 }
  0x42   : > { %1757 = vmatpush.bf16.msrb.mxu2 %v3446_v44  ;;  %1990 = vmatpush.bf16.msrb.mxu3 %v3406_v49  ;;  %v778_v7 = vpack.c.b16 %v750_v62, %v749_v54  ;;  %v546_v11 = vmul.f32 %v3806_v3, %v3490_v0  ;;  %v660_v12 = vpack.c.bf16 %v628_v1, %v628_v1  ;;  %v757_v13 = vunpack.c.l.b16 %v659_v2  ;;  %v3414_v49 = vld [vmem:[%s4805_s3 + $0x50] sm:$0xff]  ;;  %v3630_v54 = vld [vmem:[%s3801_s12 + $0x58] sm:$0xff]  }
  0x43   : > { %v635_v14 = vmax.f32 %v603_v4, 0.0  ;;  %v547_v15 = vmul.f32 %v3806_v3, %v3491_v5  ;;  %v4037_v20 = vsel %vm3860_vm2, 0, %v816_v6  ;;  %v636_v26 = vmax.f32 %v604_v8, 0.0  ;;  %1668 = vmatpush.bf16.msrb.mxu1 %v3438_v39  ;;  %v3404_v6 = vld [vmem:[%s4805_s3] sm:$0xff] }
  0x44   : > { %v839_v21 = vshrl.u32 %v778_v7, 16  ;;  %v842_v25 = vshll.u32 %v778_v7, 16  ;;  %v758_v27 = vunpack.c.l.b16 %v660_v12  ;;  %v581_v29 = vadd.f32 %v3814_v9, %v546_v11  ;;  %2079 = vmatpush.bf16.msrb.mxu0 %v3414_v49  ;;  %v3413_v7 = vld [vmem:[%s4805_s3 + $0x48] sm:$0xff] }
  0x45   : > { %v667_v28 = vpack.c.bf16 %v635_v14, %v635_v14  ;;  %v582_v31 = vadd.f32 %v3814_v9, %v547_v15  ;;  %v668_v33 = vpack.c.bf16 %v636_v26, %v636_v26  ;;  %v3506_v34 = vunpack.c.l.bf16 %v3626_v16  ;;  %v3634_v14 = vld [vmem:[%s3801_s12 + $0x78] sm:$0xff]   ;;  %v3436_v26 = vld [vmem:[%s4805_s3 + $0x100] sm:$0xff] }
  0x46   : > { %v4041_v32 = vrot.slane %v839_v21, 7  ;;  %v3507_v38 = vunpack.c.h.bf16 %v3626_v16  ;;  %v782_v44 = vpack.c.b16 %v758_v27, %v757_v13  ;;  %v613_v47 = vmax.f32 %v581_v29, 0.0  ;;  %1758 = vmatpush.bf16.msrb.mxu2 %v3445_v40  ;;  %1991 = vmatpush.bf16.msrb.mxu3 %v3405_v43  ;;  %v3412_v40 = vld [vmem:[%s4805_s3 + $0x40] sm:$0xff] }
  0x47   : > { %v765_v46 = vunpack.c.l.b16 %v667_v28  ;;  %v614_v48 = vmax.f32 %v582_v31, 0.0  ;;  %v766_v51 = vunpack.c.l.b16 %v668_v33  ;;  %v554_v52 = vmul.f32 %v3806_v3, %v3506_v34  ;;  %1669 = vmatpush.bf16.msrb.mxu1 %v3437_v58 }
  0x48   : > { %v844_v50 = vor.u32 %v842_v25, %v4041_v32  ;;  %v555_v53 = vmul.f32 %v3806_v3, %v3507_v38  ;;  %v867_v60 = vshrl.u32 %v782_v44, 16  ;;  %v870_v62 = vshll.u32 %v782_v44, 16  ;;  %2080 = vmatpush.bf16.msrb.mxu0 %v3413_v7 }
  0x49   : > { %v645_v63 = vpack.c.bf16 %v613_v47, %v613_v47  ;;  %v646_v0 = vpack.c.bf16 %v614_v48, %v614_v48  ;;  %v786_v2 = vpack.c.b16 %v766_v51, %v765_v46  ;;  %v589_v4 = vadd.f32 %v3814_v9, %v554_v52 }
  0x4a   : > { %v4067_v1 = vsel %vm3860_vm2, 0, %v844_v50  ;;  %v590_v5 = vadd.f32 %v3814_v9, %v555_v53  ;;  %v4077_v8 = vrot.slane %v867_v60, 7  ;;  %v3522_v13 = vunpack.c.l.bf16 %v3630_v54  ;;  %1759 = vmatpush.bf16.msrb.mxu2 %v3444_v59  ;;  %1992 = vmatpush.bf16.msrb.mxu3 %v3404_v6 }
  0x4b   : > { %4842 = vst [vmem:[#allocation4_spill] sm:$0xff] %v4067_v1  ;;  %v743_v11 = vunpack.c.l.b16 %v645_v63  ;;  %v744_v12 = vunpack.c.l.b16 %v646_v0  ;;  %v895_v15 = vshrl.u32 %v786_v2, 16  ;;  %v898_v16 = vshll.u32 %v786_v2, 16  ;;  %1670 = vmatpush.bf16.msrb.mxu1 %v3436_v26 }
  0x4c   : > { %v621_v21 = vmax.f32 %v589_v4, 0.0  ;;  %v622_v25 = vmax.f32 %v590_v5, 0.0  ;;  %1592 = vmatmul.bf16.gmra.mxu0 %v4037_v20  ;;  %1612 = vmatmul.bf16.gmra.mxu1 %v4067_v1  ;;  %v872_v27 = vor.u32 %v870_v62, %v4077_v8  ;;  %v3523_v29 = vunpack.c.h.bf16 %v3630_v54 }
  0x4d   : > { %v775_v28 = vpack.c.b16 %v744_v12, %v743_v11  ;;  %v562_v31 = vmul.f32 %v3806_v3, %v3522_v13  ;;  %v4087_v33 = vrot.slane %v895_v15, 7  ;;  %v3538_v39 = vunpack.c.l.bf16 %v3634_v14  ;;  %2081 = vmatpush.bf16.msrb.mxu0 %v3412_v40 }
  0x4e   : > { %v653_v34 = vpack.c.bf16 %v621_v21, %v621_v21  ;;  %v654_v38 = vpack.c.bf16 %v622_v25, %v622_v25  ;;  %v4094_v43 = vsel %vm3860_vm2, 0, %v872_v27  ;;  %v563_v46 = vmul.f32 %v3806_v3, %v3523_v29  ;;  %v3427_v21 = vld [vmem:[%s4805_s3 + $0xb8] sm:$0xff] }
  0x4f   : > { %v818_v44 = vshrl.u32 %v775_v28, 16  ;;  %1632 = vmatmul.bf16.gmra.mxu2 %v4094_v43  ;;  %v900_v47 = vor.u32 %v898_v16, %v4087_v33  ;;  %v597_v50 = vadd.f32 %v3814_v9, %v562_v31  ;;  %v821_v51 = vshll.u32 %v775_v28, 16  ;;  %v3459_v16 = vld [vmem:[%s4805_s3 + $0x1b8] sm:$0xff]  ;;  %2163 = vmatpush.bf16.msra.mxu1 %v3427_v21 }
  0x50   : > { %v751_v48 = vunpack.c.l.b16 %v653_v34  ;;  %v752_v49 = vunpack.c.l.b16 %v654_v38  ;;  %v598_v52 = vadd.f32 %v3814_v9, %v563_v46  ;;  %v3539_v53 = vunpack.c.h.bf16 %v3634_v14  ;;  %v3475_v27 = vld [vmem:[%s4805_s3 + $0x238] sm:$0xff]  ;;  %2444 = vmatpush.bf16.msra.mxu2 %v3459_v16 }
  0x51   : > { %v570_v54 = vmul.f32 %v3806_v3, %v3538_v39  ;;  %v4104_v58 = vsel %vm3860_vm2, 0, %v900_v47  ;;  %v4106_v59 = vrot.slane %v818_v44, 7  ;;  %v629_v62 = vmax.f32 %v597_v50, 0.0  ;;  %2622 = vmatpush.bf16.msra.mxu0 %v3475_v27 }
  0x52   : > { %v779_v60 = vpack.c.b16 %v752_v49, %v751_v48  ;;  %1652 = vmatmul.bf16.gmra.mxu3 %v4104_v58  ;;  %v630_v63 = vmax.f32 %v598_v52, 0.0  ;;  %v571_v0 = vmul.f32 %v3806_v3, %v3539_v53  ;;  %v3467_v3 = vld [vmem:[%s4805_s3 + $0x1f8] sm:$0xff]  ;;  %v3725_v47 = vmov 0  }
  0x53   : > { %v605_v2 = vadd.f32 %v3814_v9, %v570_v54  ;;  %v661_v6 = vpack.c.bf16 %v629_v62, %v629_v62  ;;  %v823_v13 = vor.u32 %v821_v51, %v4106_v59  ;;  %2533 = vmatpush.bf16.msra.mxu3 %v3467_v3  ;;  %v735_v48 = vunpack.c.l.b16 %v3725_v47 }
  0x54   : > { %v846_v4 = vshrl.u32 %v779_v60, 16  ;;  %v849_v5 = vshll.u32 %v779_v60, 16  ;;  %v662_v7 = vpack.c.bf16 %v630_v63, %v630_v63  ;;  %v606_v11 = vadd.f32 %v3814_v9, %v571_v0 }
  0x55   : > { %v637_v12 = vmax.f32 %v605_v2, 0.0  ;;  %v759_v15 = vunpack.c.l.b16 %v661_v6  ;;  %v4130_v38 = vsel %vm3860_vm2, 0, %v823_v13  ;;  %v771_v51 = vpack.c.b16 %v735_v48, %v735_v48 }
  0x56   : > { %v4113_v14 = vrot.slane %v846_v4, 7  ;;  %v760_v25 = vunpack.c.l.b16 %v662_v7  ;;  %v638_v9 = vmax.f32 %v606_v11, 0.0  ;;  %4843 = vst [vmem:[#allocation5_spill] sm:$0xff] %v4130_v38  ;;  %v973_v52 = vsel %vm3860_vm2, %v3855_v17, 0 }
  0x57   : > { %v669_v26 = vpack.c.bf16 %v637_v12, %v637_v12  ;;  %v1006_v53 = vshll.u32 %v3877_v36, 16  ;;  %v790_v63 = vshrl.u32 %v771_v51, 16  ;;  %v793_v0 = vshll.u32 %v771_v51, 16 }
  0x58   : > { %v851_v28 = vor.u32 %v849_v5, %v4113_v14  ;;  %v783_v29 = vpack.c.b16 %v760_v25, %v759_v15  ;;  %v670_v31 = vpack.c.bf16 %v638_v9, %v638_v9  ;;  %v1004_v6 = vshrl.u32 %v3877_v36, 16 }
  0x59   : > { %v767_v34 = vunpack.c.l.b16 %v669_v26  ;;  %v792_v5 = vrot.slane %v790_v63, 7  ;;  %v1008_v17 = vrot.slane %v1006_v53, 1  ;;  %v1011_v7 = vshll.u32 %v973_v52, 16  ;;  %v3474_v63 = vld [vmem:[%s4805_s3 + $0x230] sm:$0xff] }
  0x5a   : > { %v4134_v39 = vsel %vm3860_vm2, 0, %v851_v28  ;;  %v874_v40 = vshrl.u32 %v783_v29, 16  ;;  %v877_v44 = vshll.u32 %v783_v29, 16  ;;  %v768_v46 = vunpack.c.l.b16 %v670_v31  ;;  %2623 = vmatpush.bf16.msra.mxu0 %v3474_v63 }
  0x5b   : > { %4844 = vst [vmem:[#allocation6_spill] sm:$0xff] %v4134_v39  ;;  %v795_v12 = vor.u32 %v793_v0, %v792_v5  ;;  %v4156_v13 = vsel %vm3860_vm2, %v792_v5, 0  ;;  %v1009_v21 = vor.u32 %v1008_v17, %v1004_v6  ;;  %v1013_v25 = vrot.slane %v1011_v7, 1 }
  0x5c   : > { %1597 = vmatmul.bf16.gmra.mxu0 %v4130_v38  ;;  %1617 = vmatmul.bf16.gmra.mxu1 %v4134_v39  ;;  %v4138_v49 = vrot.slane %v874_v40, 7  ;;  %v787_v50 = vpack.c.b16 %v768_v46, %v767_v34  ;;  %v999_v15 = vshll.u32 %v4156_v13, 16  ;;  %v1265_v34 = vrot.slane %v3877_v36, 1 }
  0x5d   : > { %v4165_v3 = vsel %vm3860_vm2, 0, %v795_v12  ;;  %v1014_v29 = vsel %vm990_vm3, %v1009_v21, %v1013_v25  ;;  %v1266_v40 = vrot.slane %v973_v52, 1  ;;  %v1018_v46 = vshll.u32 %v3948_v35, 16 }
  0x5e   : > { %v879_v54 = vor.u32 %v877_v44, %v4138_v49  ;;  %v902_v60 = vshrl.u32 %v787_v50, 16  ;;  %v905_v62 = vshll.u32 %v787_v50, 16  ;;  %v992_v9 = vshrl.u32 %v4165_v3, 16 }
  0x5f   : > { %v994_v26 = vshll.u32 %v4165_v3, 16  ;;  %v1001_v28 = vrot.slane %v999_v15, 1  ;;  %v4178_v47 = vsel %vm1261_vm4, %v1265_v34, %v1266_v40  ;;  %v974_v48 = vsel %vm3860_vm2, %v3927_v10, 0  ;;  %v3426_v10 = vld [vmem:[%s4805_s3 + $0xb0] sm:$0xff] }
  0x60   : > { %v4147_v2 = vsel %vm3860_vm2, 0, %v879_v54  ;;  %v4149_v4 = vrot.slane %v902_v60, 7  ;;  %v1016_v50 = vshrl.u32 %v3948_v35, 16  ;;  %v1020_v51 = vrot.slane %v1018_v46, 1  ;;  %v3458_v60 = vld [vmem:[%s4805_s3 + $0x1b0] sm:$0xff]  ;;  %2164 = vmatpush.bf16.msra.mxu1 %v3426_v10 }
  0x61   : > { %1637 = vmatmul.bf16.gmra.mxu2 %v4147_v2  ;;  %v996_v27 = vrot.slane %v994_v26, 1  ;;  %v1023_v52 = vshll.u32 %v974_v48, 16  ;;  %v1268_v5 = vrot.slane %v3948_v35, 1  ;;  %v1269_v6 = vrot.slane %v974_v48, 1 }
  0x62   : > { %v907_v11 = vor.u32 %v905_v62, %v4149_v4  ;;  %v1021_v53 = vor.u32 %v1020_v51, %v1016_v50  ;;  %v3466_v62 = vld [vmem:[%s4805_s3 + $0x1f0] sm:$0xff]  ;;  %2445 = vmatpush.bf16.msra.mxu2 %v3458_v60  ;;  %v1030_v17 = vshll.u32 %v4037_v20, 16  ;;  %v1028_v12 = vshrl.u32 %v4037_v20, 16  ;;  %v3457_v50 = vld [vmem:[%s4805_s3 + $0x1a8] sm:$0xff] }
  0x63   : > { %v997_v31 = vor.u32 %v996_v27, %v992_v9  ;;  %v1025_v54 = vrot.slane %v1023_v52, 1  ;;  %2534 = vmatpush.bf16.msra.mxu3 %v3466_v62  ;;  %v4205_v7 = vsel %vm1261_vm4, %v1268_v5, %v1269_v6  ;;  %v1271_v27 = vrot.slane %v4037_v20, 1  ;;  %v3465_v51 = vld [vmem:[%s4805_s3 + $0x1e8] sm:$0xff] }
  0x64   : > { %v4161_v16 = vsel %vm3860_vm2, 0, %v907_v11  ;;  %v975_v11 = vsel %vm3860_vm2, %v4026_v61, 0  ;;  %v1032_v15 = vrot.slane %v1030_v17, 1  ;;  %v1042_v61 = vshll.u32 %v4130_v38, 16  ;;  %v3473_v52 = vld [vmem:[%s4805_s3 + $0x228] sm:$0xff] }
  0x65   : > { %1657 = vmatmul.bf16.gmra.mxu3 %v4161_v16  ;;  %v4173_v44 = vsel %vm990_vm3, %v997_v31, %v1001_v28  ;;  %v4199_v0 = vsel %vm990_vm3, %v1021_v53, %v1025_v54  ;;  %v1035_v21 = vshll.u32 %v975_v11, 16  ;;  %v1272_v28 = vrot.slane %v975_v11, 1  ;;  %2624 = vmatpush.bf16.msra.mxu0 %v3473_v52  ;;  %v3464_v52 = vld [vmem:[%s4805_s3 + $0x1e0] sm:$0xff] }
  0x66   : > { %4845 = vst [vmem:[#allocation7_spill] sm:$0xff] %v4173_v44  ;;  %v1033_v25 = vor.u32 %v1032_v15, %v1028_v12  ;;  %v1040_v31 = vshrl.u32 %v4130_v38, 16  ;;  %v1044_v34 = vrot.slane %v1042_v61, 1  ;;  %2446 = vmatpush.bf16.msra.mxu2 %v3457_v50  ;;  %v1274_v54 = vrot.slane %v4130_v38, 1 }
  0x67   : > { %v1037_v9 = vrot.slane %v1035_v21, 1  ;;  %2535 = vmatpush.bf16.msra.mxu3 %v3465_v51  ;;  %v1054_v62 = vshll.u32 %v3885_v41, 16  ;;  %v977_v63 = vsel %vm3860_vm2, %v3864_v23, 0  ;;  %v1052_v5 = vshrl.u32 %v3885_v41, 16 }
  0x68   : > { %v1045_v46 = vor.u32 %v1044_v34, %v1040_v31  ;;  %v1059_v17 = vshll.u32 %v977_v63, 16  ;;  %v1278_v23 = vrot.slane %v977_v63, 1  ;;  %v978_v61 = vsel %vm3860_vm2, %v3966_v57, 0  ;;  %v3456_v57 = vld [vmem:[%s4805_s3 + $0x1a0] sm:$0xff] }
  0x69   : > { %v4214_v26 = vsel %vm990_vm3, %v1033_v25, %v1037_v9  ;;  %v1056_v6 = vrot.slane %v1054_v62, 1  ;;  %v1277_v9 = vrot.slane %v3885_v41, 1  ;;  %v1071_v50 = vshll.u32 %v978_v61, 16 }
  0x6a   : > { %v1061_v12 = vrot.slane %v1059_v17, 1  ;;  %2447 = vmatpush.bf16.msra.mxu2 %v3456_v57 }
  0x6b   : > { %v1057_v11 = vor.u32 %v1056_v6, %v1052_v5  ;;  %2536 = vmatpush.bf16.msra.mxu3 %v3464_v52 }
  0x6c   : > { %1671 = vmatmul.bf16.vlgmr.msrb.gmra.mxu1 %v1014_v29  ;;  %2082 = vmatmul.bf16.vlgmr.msrb.gmra.mxu0 %v4173_v44  ;;  %v1283_v44 = vrot.slane %v4067_v1, 1 }
  0x6d   : > { %v4262_v25 = vsel %vm990_vm3, %v1057_v11, %v1061_v12  ;;  %v1280_v11 = vrot.slane %v3987_v18, 1  ;;  %v1281_v12 = vrot.slane %v978_v61, 1 }
  0x6e   : > { %4848 = vst [vmem:[#allocation10_spill] sm:$0xff] %v4262_v25 }
  0x71   : > { %1760 = vmatmul.bf16.vlgmr.msrb.gmra.mxu2 %v4178_v47 }
  0x75   : > { %1993 = vmatmul.bf16.vlgmr.msrb.gmra.mxu3 %v4165_v3 }
  0x7c   : > { %1676 = vmatmul.bf16.gmra.mxu1 %v4199_v0  ;;  %2087 = vmatmul.bf16.gmra.mxu0 %v1014_v29  ;;  %v4221_v29 = vsel %vm1261_vm4, %v1271_v27, %v1272_v28  ;;  %v1066_v27 = vshll.u32 %v3987_v18, 16  ;;  %v4269_v28 = vsel %vm1261_vm4, %v1277_v9, %v1278_v23  ;;  %v1078_v9 = vshll.u32 %v4067_v1, 16 }
  0x7d   : > { %4849 = vst [vmem:[#allocation11_spill] sm:$0xff] %v4269_v28  ;;  %v4313_v23 = vsel %vm1261_vm4, %v1280_v11, %v1281_v12 }
  0x7e   : > { %4853 = vst [vmem:[#allocation15_spill] sm:$0xff] %v4313_v23 }
  0x81   : > { %1765 = vmatmul.bf16.gmra.mxu2 %v4205_v7 }
  0x85   : > { %1998 = vmatmul.bf16.gmra.mxu3 %v3877_v36  ;;  %v976_v36 = vsel %vm3860_vm2, %v4106_v59, 0  ;;  %v3425_v59 = vld [vmem:[%s4805_s3 + $0xa8] sm:$0xff] }
  0x86   : > { %v1047_v40 = vshll.u32 %v976_v36, 16  ;;  %2165 = vmatpush.bf16.msra.mxu1 %v3425_v59  ;;  %v1275_v60 = vrot.slane %v976_v36, 1  ;;  %v1073_v59 = vrot.slane %v1071_v50, 1  ;;  %v1076_v50 = vshrl.u32 %v4067_v1, 16 }
  0x88   : > { %v1049_v48 = vrot.slane %v1047_v40, 1  ;;  %v4249_v10 = vsel %vm1261_vm4, %v1274_v54, %v1275_v60  ;;  %v3424_v54 = vld [vmem:[%s4805_s3 + $0xa0] sm:$0xff] }
  0x89   : > { %4847 = vst [vmem:[#allocation9_spill] sm:$0xff] %v4249_v10  ;;  %v3472_v60 = vld [vmem:[%s4805_s3 + $0x220] sm:$0xff] }
  0x8a   : > { %v4242_v53 = vsel %vm990_vm3, %v1045_v46, %v1049_v48  ;;  %v1064_v46 = vshrl.u32 %v3987_v18, 16  ;;  %v1068_v48 = vrot.slane %v1066_v27, 1  ;;  %2166 = vmatpush.bf16.msra.mxu1 %v3424_v54  ;;  %2625 = vmatpush.bf16.msra.mxu0 %v3472_v60  ;;  %v979_v27 = vsel %vm3860_vm2, %v4041_v32, 0 }
  0x8b   : > { %4846 = vst [vmem:[#allocation8_spill] sm:$0xff] %v4242_v53 }
  0x8c   : > { %1681 = vmatmul.bf16.gmra.mxu1 %v4214_v26  ;;  %2092 = vmatmul.bf16.gmra.mxu0 %v4199_v0  ;;  %v1069_v51 = vor.u32 %v1068_v48, %v1064_v46 }
  0x8e   : > { %v4306_v17 = vsel %vm990_vm3, %v1069_v51, %v1073_v59  ;;  %v1080_v51 = vrot.slane %v1078_v9, 1  ;;  %v1083_v59 = vshll.u32 %v979_v27, 16 }
  0x8f   : > { %4852 = vst [vmem:[#allocation14_spill] sm:$0xff] %v4306_v17 }
  0x90   : > { %v1081_v52 = vor.u32 %v1080_v51, %v1076_v50  ;;  %v1085_v54 = vrot.slane %v1083_v59, 1  ;;  %v1090_v50 = vshll.u32 %v4134_v39, 16  ;;  %v980_v59 = vsel %vm3860_vm2, %v4113_v14, 0  ;;  %v3455_v14 = vld [vmem:[%s4805_s3 + $0x198] sm:$0xff] }
  0x91   : > { %1770 = vmatmul.bf16.gmra.mxu2 %v4221_v29 }
  0x92   : > { %v4336_v12 = vsel %vm990_vm3, %v1081_v52, %v1085_v54  ;;  %v1088_v54 = vshrl.u32 %v4134_v39, 16  ;;  %2448 = vmatpush.bf16.msra.mxu2 %v3455_v14  ;;  %v1286_v14 = vrot.slane %v4134_v39, 1 }
  0x93   : > { %4855 = vst [vmem:[#allocation17_spill] sm:$0xff] %v4336_v12 }
  0x95   : > { %2003 = vmatmul.bf16.gmra.mxu3 %v3948_v35 }
  0x9c   : > { %1686 = vmatmul.bf16.gmra.mxu1 %v4242_v53  ;;  %2097 = vmatmul.bf16.gmra.mxu0 %v4214_v26 }
  0xa1   : > { %1775 = vmatmul.bf16.gmra.mxu2 %v4249_v10  ;;  %v1295_v10 = vrot.slane %v4094_v43, 1 }
  0xa5   : > { %2008 = vmatmul.bf16.gmra.mxu3 %v4037_v20 }
  0xa9   : > { %v4257_v15 = vpop.f32.mrf.mxu0  ;;  %v4259_v21 = vpop.f32.mrf.mxu1 }
  0xac   : > { %1691 = vmatmul.bf16.gmra.mxu1 %v4262_v25  ;;  %2102 = vmatmul.bf16.gmra.mxu0 %v4242_v53 }
  0xb0   : > { %v4274_v36 = vpop.f32.mrf.mxu2  ;;  %v4276_v31 = vpop.f32.mrf.mxu3 }
  0xb1   : > { %4850 = vst [vmem:[#allocation12_spill] sm:$0xff] %v4276_v31  ;;  %1780 = vmatmul.bf16.gmra.mxu2 %v4269_v28  ;;  %v4279_v34 = vpop.f32.mrf.mxu0  ;;  %v4281_v40 = vpop.f32.mrf.mxu1 }
  0xb5   : > { %2013 = vmatmul.bf16.gmra.mxu3 %v4130_v38 }
  0xb8   : > { %v4297_v62 = vpop.f32.mrf.mxu2  ;;  %v4299_v63 = vpop.f32.mrf.mxu3 }
  0xb9   : > { %4851 = vst [vmem:[#allocation13_spill] sm:$0xff] %v4299_v63  ;;  %v4301_v5 = vpop.f32.mrf.mxu0  ;;  %v4303_v6 = vpop.f32.mrf.mxu1  ;;  %v1284_v63 = vrot.slane %v979_v27, 1 }
  0xbb   : > { %v4345_v51 = vsel %vm1261_vm4, %v1283_v44, %v1284_v63 }
  0xbc   : > { %1696 = vmatmul.bf16.gmra.mxu1 %v4306_v17  ;;  %2107 = vmatmul.bf16.gmra.mxu0 %v4262_v25  ;;  %4857 = vst [vmem:[#allocation19_spill] sm:$0xff] %v4345_v51  ;;  %v981_v25 = vsel %vm3860_vm2, %v3866_v24, 0 }
  0xbd   : > { %v1290_v38 = vrot.slane %v981_v25, 1 }
  0xc1   : > { %1785 = vmatmul.bf16.gmra.mxu2 %v4313_v23  ;;  %v4321_v48 = vpop.f32.mrf.mxu0  ;;  %v4323_v61 = vpop.f32.mrf.mxu1 }
  0xc2   : > { %v4318_v46 = vpop.f32.mrf.mxu2 }
  0xc3   : > { %v4326_v57 = vpop.f32.mrf.mxu3 }
  0xc4   : > { %4854 = vst [vmem:[#allocation16_spill] sm:$0xff] %v4326_v57  ;;  %v1095_v57 = vshll.u32 %v980_v59, 16 }
  0xc5   : > { %2018 = vmatmul.bf16.gmra.mxu3 %v3885_v41  ;;  %v1107_v41 = vshll.u32 %v981_v25, 16 }
  0xc6   : > { %v1097_v31 = vrot.slane %v1095_v57, 1  ;;  %v3423_v57 = vld [vmem:[%s4805_s3 + $0x98] sm:$0xff] }
  0xc7   : > { %2167 = vmatpush.bf16.msra.mxu1 %v3423_v57 }
  0xc9   : > { %v4331_v32 = vpop.f32.mrf.mxu0  ;;  %v4333_v11 = vpop.f32.mrf.mxu1 }
  0xca   : > { %v4329_v60 = vpop.f32.mrf.mxu2 }
  0xcb   : > { %v4339_v9 = vpop.f32.mrf.mxu3 }
  0xcc   : > { %4856 = vst [vmem:[#allocation18_spill] sm:$0xff] %v4339_v9  ;;  %1701 = vmatmul.bf16.gmra.mxu1 %v4336_v12  ;;  %2112 = vmatmul.bf16.gmra.mxu0 %v4306_v17  ;;  %v1092_v9 = vrot.slane %v1090_v50, 1 }
  0xce   : > { %v1093_v63 = vor.u32 %v1092_v9, %v1088_v54  ;;  %v3471_v9 = vld [vmem:[%s4805_s3 + $0x218] sm:$0xff] }
  0xcf   : > { %2626 = vmatpush.bf16.msra.mxu0 %v3471_v9  ;;  %v1100_v9 = vshrl.u32 %v3889_v42, 16 }
  0xd1   : > { %1790 = vmatmul.bf16.gmra.mxu2 %v4345_v51  ;;  %v4351_v52 = vpop.f32.mrf.mxu0  ;;  %v4353_v27 = vpop.f32.mrf.mxu1  ;;  %v3463_v51 = vld [vmem:[%s4805_s3 + $0x1d8] sm:$0xff] }
  0xd2   : > { %v4356_v17 = vpop.f32.mrf.mxu2  ;;  %2537 = vmatpush.bf16.msra.mxu3 %v3463_v51  ;;  %v1287_v51 = vrot.slane %v980_v59, 1 }
  0xd3   : > { %4858 = vst [vmem:[#allocation20_spill] sm:$0xff] %v4356_v17  ;;  %v1289_v17 = vrot.slane %v3889_v42, 1 }
  0xd5   : > { %2023 = vmatmul.bf16.gmra.mxu3 %v3987_v18  ;;  %v4359_v44 = vpop.f32.mrf.mxu3  ;;  %v4372_v18 = vsel %vm990_vm3, %v1093_v63, %v1097_v31  ;;  %v1102_v31 = vshll.u32 %v3889_v42, 16 }
  0xd6   : > { %4859 = vst [vmem:[#allocation21_spill] sm:$0xff] %v4359_v44  ;;  %v4389_v44 = vsel %vm1261_vm4, %v1286_v14, %v1287_v51  ;;  %v1109_v51 = vrot.slane %v1107_v41, 1  ;;  %v1114_v41 = vshll.u32 %v4010_v45, 16 }
  0xd7   : > { %4860 = vst [vmem:[#allocation22_spill] sm:$0xff] %v4372_v18 }
  0xd8   : > { %4863 = vst [vmem:[#allocation25_spill] sm:$0xff] %v4389_v44 }
  0xd9   : > { %v4367_v50 = vpop.f32.mrf.mxu0  ;;  %v4369_v23 = vpop.f32.mrf.mxu1 }
  0xda   : > { %v4380_v54 = vpop.f32.mrf.mxu2 }
  0xdb   : > { %4861 = vst [vmem:[#allocation23_spill] sm:$0xff] %v4380_v54 }
  0xdc   : > { %1706 = vmatmul.bf16.gmra.mxu1 %v4372_v18  ;;  %2117 = vmatmul.bf16.gmra.mxu0 %v4336_v12  ;;  %v1104_v12 = vrot.slane %v1102_v31, 1 }
  0xdd   : > { %v4386_v63 = vpop.f32.mrf.mxu3 }
  0xde   : > { %4862 = vst [vmem:[#allocation24_spill] sm:$0xff] %v4386_v63  ;;  %v1105_v14 = vor.u32 %v1104_v12, %v1100_v9  ;;  %v4416_v12 = vsel %vm1261_vm4, %v1289_v17, %v1290_v38  ;;  %v982_v9 = vsel %vm3860_vm2, %v3989_v19, 0  ;;  %v3454_v19 = vld [vmem:[%s4805_s3 + $0x190] sm:$0xff] }
  0xdf   : > { %4868 = vst [vmem:[#allocation30_spill] sm:$0xff] %v4416_v12  ;;  %2449 = vmatpush.bf16.msra.mxu2 %v3454_v19 }
  0xe1   : > { %1795 = vmatmul.bf16.gmra.mxu2 %v4389_v44  ;;  %v4395_v59 = vpop.f32.mrf.mxu0  ;;  %v4397_v57 = vpop.f32.mrf.mxu1  ;;  %v4406_v44 = vsel %vm990_vm3, %v1105_v14, %v1109_v51  ;;  %v1116_v51 = vrot.slane %v1114_v41, 1 }
  0xe2   : > { %4866 = vst [vmem:[#allocation28_spill] sm:$0xff] %v4406_v44 }
  0xe4   : > { %v4400_v28 = vpop.f32.mrf.mxu2 }
  0xe5   : > { %4864 = vst [vmem:[#allocation26_spill] sm:$0xff] %v4400_v28  ;;  %2028 = vmatmul.bf16.gmra.mxu3 %v4067_v1 }
  0xe8   : > { %v4403_v63 = vpop.f32.mrf.mxu3 }
  0xe9   : > { %4865 = vst [vmem:[#allocation27_spill] sm:$0xff] %v4403_v63  ;;  %v1672_v54 = vpop.f32.mrf.mxu1  ;;  %v2083_v24 = vpop.f32.mrf.mxu0  ;;  %v1119_v63 = vshll.u32 %v982_v9, 16 }
  0xea   : > { %v1673_v53 = vadd.f32 %v1672_v54, %v4257_v15  ;;  %v1112_v54 = vshrl.u32 %v4010_v45, 16 }
  0xec   : > { %v4410_v31 = vpop.f32.mrf.mxu2  ;;  %1711 = vmatmul.bf16.gmra.mxu1 %v4406_v44  ;;  %2122 = vmatmul.bf16.gmra.mxu0 %v4372_v18  ;;  %v1117_v17 = vor.u32 %v1116_v51, %v1112_v54  ;;  %v1292_v54 = vrot.slane %v4010_v45, 1 }
  0xed   : > { %4867 = vst [vmem:[#allocation29_spill] sm:$0xff] %v4410_v31  ;;  %v1121_v31 = vrot.slane %v1119_v63, 1 }
  0xf0   : > { %v4421_v14 = vpop.f32.mrf.mxu3 }
  0xf1   : > { %4869 = vst [vmem:[#allocation31_spill] sm:$0xff] %v4421_v14  ;;  %1800 = vmatmul.bf16.gmra.mxu2 %v4416_v12  ;;  %v1674_v15 = vpop.f32.mrf.mxu1  ;;  %v2085_v25 = vpop.f32.mrf.mxu0  ;;  %v3462_v14 = vld [vmem:[%s4805_s3 + $0x1d0] sm:$0xff] }
  0xf2   : > { %v1675_v18 = vadd.f32 %v1674_v15, %v4279_v34  ;;  %2538 = vmatpush.bf16.msra.mxu3 %v3462_v14  ;;  %v4434_v15 = vsel %vm990_vm3, %v1117_v17, %v1121_v31  ;;  %v1293_v14 = vrot.slane %v982_v9, 1  ;;  %v1126_v17 = vshll.u32 %v4094_v43, 16 }
  0xf4   : > { %v1761_v1 = vpop.f32.mrf.mxu2  ;;  %v4450_v19 = vsel %vm1261_vm4, %v1292_v54, %v1293_v14 }
  0xf5   : > { %2033 = vmatmul.bf16.gmra.mxu3 %v4134_v39  ;;  %v1762_v38 = vadd.f32 %v1761_v1, %v1673_v53  ;;  %v3422_v1 = vld [vmem:[%s4805_s3 + $0x90] sm:$0xff]  ;;  %4871 = vst [vmem:[#allocation33_spill] sm:$0xff] %v4450_v19 }
  0xf6   : > { %v3470_v53 = vld [vmem:[%s4805_s3 + $0x210] sm:$0xff]  ;;  %2168 = vmatpush.bf16.msra.mxu1 %v3422_v1  ;;  %v1128_v1 = vrot.slane %v1126_v17, 1 }
  0xf7   : > { %2627 = vmatpush.bf16.msra.mxu0 %v3470_v53 }
  0xf8   : > { %v1994_v41 = vpop.f32.mrf.mxu3 }
  0xf9   : > { %v1995_v12 = vadd.f32 %v1994_v41, %v1762_v38  ;;  %v1677_v28 = vpop.f32.mrf.mxu1  ;;  %v2088_v34 = vpop.f32.mrf.mxu0  ;;  %v1124_v41 = vshrl.u32 %v4094_v43, 16 }
  0xfa   : > { %v1678_v63 = vadd.f32 %v1677_v28, %v4301_v5  ;;  %v983_v28 = vsel %vm3860_vm2, %v4077_v8, 0 }
  0xfb   : > { %v4444_v51 = vadd.f32 %v2083_v24, %v1995_v12  ;;  %v1131_v53 = vshll.u32 %v983_v28, 16 }
  0xfc   : > { %v1763_v38 = vpop.f32.mrf.mxu2  ;;  %1716 = vmatmul.bf16.gmra.mxu1 %v4434_v15  ;;  %2127 = vmatmul.bf16.gmra.mxu0 %v4406_v44 }
  0xfd   : > { %4870 = vst [vmem:[#allocation32_spill] sm:$0xff] %v4444_v51  ;;  %v1764_v31 = vadd.f32 %v1763_v38, %v1675_v18  ;;  %v1129_v51 = vor.u32 %v1128_v1, %v1124_v41  ;;  %v1133_v8 = vrot.slane %v1131_v53, 1  ;;  %v1136_v1 = vshrl.u32 %v4147_v2, 16 }
  0xff   : > { %v4462_v39 = vsel %vm990_vm3, %v1129_v51, %v1133_v8 }
 0x100   : > { %v1996_v5 = vpop.f32.mrf.mxu3 }
 0x101   : > { %v1997_v9 = vadd.f32 %v1996_v5, %v1764_v31  ;;  %1805 = vmatmul.bf16.gmra.mxu2 %v4450_v19  ;;  %v1679_v24 = vpop.f32.mrf.mxu1  ;;  %v2090_v12 = vpop.f32.mrf.mxu0 }
 0x102   : > { %v1680_v18 = vadd.f32 %v1679_v24, %v4321_v48  ;;  %v1296_v48 = vrot.slane %v983_v28, 1 }
 0x103   : > { %v4458_v38 = vadd.f32 %v2085_v25, %v1997_v9 }
 0x104   : > { %v1766_v54 = vpop.f32.mrf.mxu2  ;;  %v4472_v24 = vsel %vm1261_vm4, %v1295_v10, %v1296_v48  ;;  %v3461_v48 = vld [vmem:[%s4805_s3 + $0x1c8] sm:$0xff] }
 0x105   : > { %2038 = vmatmul.bf16.gmra.mxu3 %v3889_v42  ;;  %v1767_v14 = vadd.f32 %v1766_v54, %v1678_v63 }
 0x106   : > { %2539 = vmatpush.bf16.msra.mxu3 %v3461_v48  ;;  %v1148_v48 = vshrl.u32 %v3903_v55, 16 }
 0x108   : > { %v1999_v44 = vpop.f32.mrf.mxu3 }
 0x109   : > { %v2000_v31 = vadd.f32 %v1999_v44, %v1767_v14  ;;  %v1682_v5 = vpop.f32.mrf.mxu1  ;;  %v2093_v19 = vpop.f32.mrf.mxu0  ;;  %v1138_v44 = vshll.u32 %v4147_v2, 16 }
 0x10a   : > { %v1683_v17 = vadd.f32 %v1682_v5, %v4331_v32  ;;  %v984_v32 = vsel %vm3860_vm2, %v4138_v49, 0  ;;  %v3453_v5 = vld [vmem:[%s4805_s3 + $0x188] sm:$0xff] }
 0x10b   : > { %v4466_v25 = vadd.f32 %v2088_v34, %v2000_v31  ;;  %v1140_v53 = vrot.slane %v1138_v44, 1  ;;  %v1143_v54 = vshll.u32 %v984_v32, 16  ;;  %2450 = vmatpush.bf16.msra.mxu2 %v3453_v5 }
 0x10c   : > { %v1768_v9 = vpop.f32.mrf.mxu2  ;;  %1721 = vmatmul.bf16.gmra.mxu1 %v4462_v39  ;;  %2132 = vmatmul.bf16.gmra.mxu0 %v4434_v15 }
 0x10d   : > { %v1769_v63 = vadd.f32 %v1768_v9, %v1680_v18  ;;  %v1141_v31 = vor.u32 %v1140_v53, %v1136_v1  ;;  %v1145_v49 = vrot.slane %v1143_v54, 1  ;;  %v1299_v1 = vrot.slane %v984_v32, 1 }
 0x10f   : > { %v4490_v44 = vsel %vm990_vm3, %v1141_v31, %v1145_v49 }
 0x110   : > { %v2001_v51 = vpop.f32.mrf.mxu3 }
 0x111   : > { %v2002_v41 = vadd.f32 %v2001_v51, %v1769_v63  ;;  %1810 = vmatmul.bf16.gmra.mxu2 %v4472_v24  ;;  %v1684_v34 = vpop.f32.mrf.mxu1  ;;  %v2095_v28 = vpop.f32.mrf.mxu0  ;;  %v3469_v51 = vld [vmem:[%s4805_s3 + $0x208] sm:$0xff] }
 0x112   : > { %v1685_v18 = vadd.f32 %v1684_v34, %v4351_v52  ;;  %v1298_v34 = vrot.slane %v4147_v2, 1  ;;  %2628 = vmatpush.bf16.msra.mxu0 %v3469_v51 }
 0x113   : > { %v4480_v14 = vadd.f32 %v2090_v12, %v2002_v41 }
 0x114   : > { %v1771_v10 = vpop.f32.mrf.mxu2  ;;  %v4506_v31 = vsel %vm1261_vm4, %v1298_v34, %v1299_v1 }
 0x115   : > { %4872 = vst [vmem:[#allocation34_spill] sm:$0xff] %v4480_v14  ;;  %2043 = vmatmul.bf16.gmra.mxu3 %v4010_v45  ;;  %v1772_v8 = vadd.f32 %v1771_v10, %v1683_v17  ;;  %v3421_v17 = vld [vmem:[%s4805_s3 + $0x88] sm:$0xff] }
 0x116   : > { %2169 = vmatpush.bf16.msra.mxu1 %v3421_v17  ;;  %4874 = vst [vmem:[#allocation36_spill] sm:$0xff] %v4506_v31 }
 0x118   : > { %v2004_v9 = vpop.f32.mrf.mxu3 }
 0x119   : > { %v2005_v52 = vadd.f32 %v2004_v9, %v1772_v8  ;;  %v1687_v12 = vpop.f32.mrf.mxu1  ;;  %v2098_v63 = vpop.f32.mrf.mxu0  ;;  %v1150_v8 = vshll.u32 %v3903_v55, 16 }
 0x11a   : > { %v1688_v41 = vadd.f32 %v1687_v12, %v4367_v50  ;;  %v985_v50 = vsel %vm3860_vm2, %v3879_v37, 0 }
 0x11b   : > { %v4500_v53 = vadd.f32 %v2093_v19, %v2005_v52  ;;  %v1152_v9 = vrot.slane %v1150_v8, 1  ;;  %v1155_v52 = vshll.u32 %v985_v50, 16  ;;  %v1301_v8 = vrot.slane %v3903_v55, 1 }
 0x11c   : > { %v1773_v54 = vpop.f32.mrf.mxu2  ;;  %1726 = vmatmul.bf16.gmra.mxu1 %v4490_v44  ;;  %2137 = vmatmul.bf16.gmra.mxu0 %v4462_v39  ;;  %v1302_v14 = vrot.slane %v985_v50, 1 }
 0x11d   : > { %4873 = vst [vmem:[#allocation35_spill] sm:$0xff] %v4500_v53  ;;  %v1774_v10 = vadd.f32 %v1773_v54, %v1685_v18  ;;  %v1153_v34 = vor.u32 %v1152_v9, %v1148_v48  ;;  %v1157_v37 = vrot.slane %v1155_v52, 1  ;;  %v1160_v52 = vshrl.u32 %v4021_v56, 16 }
 0x11f   : > { %v4518_v53 = vsel %vm990_vm3, %v1153_v34, %v1157_v37 }
 0x120   : > { %v2006_v32 = vpop.f32.mrf.mxu3 }
 0x121   : > { %v2007_v49 = vadd.f32 %v2006_v32, %v1774_v10  ;;  %1815 = vmatmul.bf16.gmra.mxu2 %v4506_v31  ;;  %v1689_v19 = vpop.f32.mrf.mxu1  ;;  %v2100_v5 = vpop.f32.mrf.mxu0 }
 0x122   : > { %v1690_v18 = vadd.f32 %v1689_v19, %v4395_v59  ;;  %v986_v19 = vsel %vm3860_vm2, %v3993_v30, 0 }
 0x123   : > { %v4514_v12 = vadd.f32 %v2095_v28, %v2007_v49  ;;  %v4527_v49 = vsel %vm1261_vm4, %v1301_v8, %v1302_v14  ;;  %v3460_v8 = vld [vmem:[%s4805_s3 + $0x1c0] sm:$0xff] }
 0x124   : > { %v1776_v17 = vpop.f32.mrf.mxu2  ;;  %2540 = vmatpush.bf16.msra.mxu3 %v3460_v8 }
 0x125   : > { %2048 = vmatmul.bf16.gmra.mxu3 %v4094_v43  ;;  %v1777_v51 = vadd.f32 %v1776_v17, %v1688_v41  ;;  %v1162_v41 = vshll.u32 %v4021_v56, 16 }
 0x127   : > { %v1164_v17 = vrot.slane %v1162_v41, 1  ;;  %v3420_v41 = vld [vmem:[%s4805_s3 + $0x80] sm:$0xff] }
 0x128   : > { %v2009_v1 = vpop.f32.mrf.mxu3  ;;  %2170 = vmatpush.bf16.msra.mxu1 %v3420_v41 }
 0x129   : > { %v2010_v54 = vadd.f32 %v2009_v1, %v1777_v51  ;;  %v1692_v10 = vpop.f32.mrf.mxu1  ;;  %v2103_v32 = vpop.f32.mrf.mxu0  ;;  %v1167_v51 = vshll.u32 %v986_v19, 16  ;;  %v1165_v1 = vor.u32 %v1164_v17, %v1160_v52  ;;  %v1305_v52 = vrot.slane %v986_v19, 1 }
 0x12a   : > { %v987_v19 = vsel %vm3860_vm2, %v4087_v33, 0 }
 0x12b   : > { %v4521_v31 = vadd.f32 %v2098_v63, %v2010_v54  ;;  %v1169_v30 = vrot.slane %v1167_v51, 1  ;;  %v3452_v54 = vld [vmem:[%s4805_s3 + $0x180] sm:$0xff] }
 0x12c   : > { %v1778_v59 = vpop.f32.mrf.mxu2  ;;  %1731 = vmatmul.bf16.gmra.mxu1 %v4518_v53  ;;  %2142 = vmatmul.bf16.gmra.mxu0 %v4490_v44 }
 0x12d   : > { %v1779_v28 = vadd.f32 %v1778_v59, %v1690_v18  ;;  %v1693_v18 = vadd.f32 %v1692_v10, %v4259_v21  ;;  %2451 = vmatpush.bf16.msra.mxu2 %v3452_v54  ;;  %v1172_v54 = vshrl.u32 %v4104_v58, 16 }
 0x130   : > { %v2011_v48 = vpop.f32.mrf.mxu3 }
 0x131   : > { %v2012_v9 = vadd.f32 %v2011_v48, %v1779_v28  ;;  %1820 = vmatmul.bf16.gmra.mxu2 %v4527_v49  ;;  %v1694_v63 = vpop.f32.mrf.mxu1  ;;  %v2105_v50 = vpop.f32.mrf.mxu0  ;;  %v4545_v28 = vsel %vm990_vm3, %v1165_v1, %v1169_v30  ;;  %v3468_v48 = vld [vmem:[%s4805_s3 + $0x200] sm:$0xff] }
 0x132   : > { %v1695_v17 = vadd.f32 %v1694_v63, %v4281_v40  ;;  %2629 = vmatpush.bf16.msra.mxu0 %v3468_v48 }
 0x133   : > { %v4535_v34 = vadd.f32 %v2100_v5, %v2012_v9  ;;  %v1304_v9 = vrot.slane %v4021_v56, 1 }
 0x134   : > { %v1781_v14 = vpop.f32.mrf.mxu2 }
 0x135   : > { %4875 = vst [vmem:[#allocation37_spill] sm:$0xff] %v4535_v34  ;;  %2053 = vmatmul.bf16.gmra.mxu3 %v4147_v2  ;;  %v1782_v37 = vadd.f32 %v1781_v14, %v1693_v18  ;;  %v4561_v1 = vsel %vm1261_vm4, %v1304_v9, %v1305_v52  ;;  %v1308_v34 = vrot.slane %v987_v19, 1 }
 0x138   : > { %v2014_v59 = vpop.f32.mrf.mxu3 }
 0x139   : > { %v2015_v21 = vadd.f32 %v2014_v59, %v1782_v37  ;;  %v1697_v5 = vpop.f32.mrf.mxu1  ;;  %v2108_v10 = vpop.f32.mrf.mxu0  ;;  %v1174_v37 = vshll.u32 %v4104_v58, 16  ;;  %v1179_v59 = vshll.u32 %v987_v19, 16 }
 0x13b   : > { %v4555_v51 = vadd.f32 %v2103_v32, %v2015_v21  ;;  %v1176_v8 = vrot.slane %v1174_v37, 1  ;;  %v1698_v21 = vadd.f32 %v1697_v5, %v4303_v6  ;;  %v1181_v33 = vrot.slane %v1179_v59, 1 }
 0x13c   : > { %v1783_v18 = vpop.f32.mrf.mxu2  ;;  %1736 = vmatmul.bf16.gmra.mxu1 %v4545_v28  ;;  %2147 = vmatmul.bf16.gmra.mxu0 %v4518_v53  ;;  %v1307_v37 = vrot.slane %v4104_v58, 1  ;;  %v988_v59 = vsel %vm3860_vm2, %v4149_v4, 0 }
 0x13d   : > { %4876 = vst [vmem:[#allocation38_spill] sm:$0xff] %v4555_v51  ;;  %v1784_v14 = vadd.f32 %v1783_v18, %v1695_v17  ;;  %v1177_v52 = vor.u32 %v1176_v8, %v1172_v54  ;;  %v1186_v54 = vshll.u32 %v4161_v16, 16 }
 0x13e   : > { %v4583_v8 = vsel %vm1261_vm4, %v1307_v37, %v1308_v34 }
 0x13f   : > { %v4573_v51 = vsel %vm990_vm3, %v1177_v52, %v1181_v33 }
 0x140   : > { %v2016_v40 = vpop.f32.mrf.mxu3 }
 0x141   : > { %v2017_v63 = vadd.f32 %v2016_v40, %v1784_v14  ;;  %1825 = vmatmul.bf16.gmra.mxu2 %v4561_v1  ;;  %v1699_v32 = vpop.f32.mrf.mxu1  ;;  %v2110_v30 = vpop.f32.mrf.mxu0 }
 0x142   : > { %v1700_v6 = vadd.f32 %v1699_v32, %v4323_v61  ;;  %v1184_v32 = vshrl.u32 %v4161_v16, 16 }
 0x143   : > { %v4569_v41 = vadd.f32 %v2105_v50, %v2017_v63 }
 0x144   : > { %v1786_v48 = vpop.f32.mrf.mxu2 }
 0x145   : > { %2058 = vmatmul.bf16.gmra.mxu3 %v3903_v55  ;;  %v1787_v9 = vadd.f32 %v1786_v48, %v1698_v21  ;;  %v1188_v48 = vrot.slane %v1186_v54, 1  ;;  %v1310_v54 = vrot.slane %v4161_v16, 1 }
 0x147   : > { %v1189_v22 = vor.u32 %v1188_v48, %v1184_v32 }
 0x148   : > { %v2019_v17 = vpop.f32.mrf.mxu3 }
 0x149   : > { %v2020_v18 = vadd.f32 %v2019_v17, %v1787_v9  ;;  %v1702_v14 = vpop.f32.mrf.mxu1  ;;  %v2113_v40 = vpop.f32.mrf.mxu0  ;;  %v1191_v9 = vshll.u32 %v988_v59, 16 }
 0x14a   : > { %v1703_v52 = vadd.f32 %v1702_v14, %v4333_v11 }
 0x14b   : > { %v4577_v50 = vadd.f32 %v2108_v10, %v2020_v18  ;;  %v1193_v4 = vrot.slane %v1191_v9, 1 }
 0x14c   : > { %v1788_v5 = vpop.f32.mrf.mxu2  ;;  %1741 = vmatmul.bf16.gmra.mxu1 %v4573_v51  ;;  %2152 = vmatmul.bf16.gmra.mxu0 %v4545_v28 }
 0x14d   : > { %v1789_v63 = vadd.f32 %v1788_v5, %v1700_v6 }
 0x150   : > { %v2021_v19 = vpop.f32.mrf.mxu3 }
 0x151   : > { %v2022_v21 = vadd.f32 %v2021_v19, %v1789_v63  ;;  %1830 = vmatmul.bf16.gmra.mxu2 %v4583_v8  ;;  %v1704_v61 = vpop.f32.mrf.mxu1  ;;  %v2115_v10 = vpop.f32.mrf.mxu0  ;;  %v4595_v63 = vsel %vm990_vm3, %v1189_v22, %v1193_v4  ;;  %v1311_v19 = vrot.slane %v988_v59, 1  ;;  %v1262_v22 = vrot.slane %v4165_v3, 1 }
 0x152   : > { %v1705_v11 = vadd.f32 %v1704_v61, %v4353_v27  ;;  %v1263_v61 = vrot.slane %v4156_v13, 1 }
 0x153   : > { %v4591_v33 = vadd.f32 %v2110_v30, %v2022_v21  ;;  %v4604_v32 = vsel %vm1261_vm4, %v1310_v54, %v1311_v19 }
 0x154   : > { %v1791_v34 = vpop.f32.mrf.mxu2  ;;  %v4614_v19 = vsel %vm1261_vm4, %v1262_v22, %v1263_v61 }
 0x155   : > { %2063 = vmatmul.bf16.gmra.mxu3 %v4021_v56  ;;  %v1792_v17 = vadd.f32 %v1791_v34, %v1703_v52 }
 0x158   : > { %v2024_v18 = vpop.f32.mrf.mxu3 }
 0x159   : > { %v2025_v37 = vadd.f32 %v2024_v18, %v1792_v17  ;;  %v1707_v6 = vpop.f32.mrf.mxu1  ;;  %v2118_v5 = vpop.f32.mrf.mxu0 }
 0x15a   : > { %v1708_v59 = vadd.f32 %v1707_v6, %v4369_v23 }
 0x15b   : > { %v4599_v30 = vadd.f32 %v2113_v40, %v2025_v37 }
 0x15c   : > { %v1793_v14 = vpop.f32.mrf.mxu2  ;;  %1746 = vmatmul.bf16.gmra.mxu1 %v4595_v63  ;;  %2157 = vmatmul.bf16.gmra.mxu0 %v4573_v51 }
 0x15d   : > { %v1794_v21 = vadd.f32 %v1793_v14, %v1705_v11 }
 0x160   : > { %v2026_v48 = vpop.f32.mrf.mxu3 }
 0x161   : > { %v2027_v9 = vadd.f32 %v2026_v48, %v1794_v21  ;;  %1835 = vmatmul.bf16.gmra.mxu2 %v4604_v32  ;;  %v1709_v52 = vpop.f32.mrf.mxu1  ;;  %v2120_v34 = vpop.f32.mrf.mxu0 }
 0x162   : > { %v1710_v11 = vadd.f32 %v1709_v52, %v4397_v57 }
 0x163   : > { %v4608_v27 = vadd.f32 %v2115_v10, %v2027_v9 }
 0x164   : > { %v1796_v40 = vpop.f32.mrf.mxu2 }
 0x165   : > { %2068 = vmatmul.bf16.gmra.mxu3 %v4104_v58  ;;  %v1797_v17 = vadd.f32 %v1796_v40, %v1708_v59 }
 0x168   : > { %v2029_v4 = vpop.f32.mrf.mxu3 }
 0x169   : > { %v2030_v18 = vadd.f32 %v2029_v4, %v1797_v17  ;;  %v1712_v37 = vpop.f32.mrf.mxu1  ;;  %v2123_v54 = vpop.f32.mrf.mxu0 }
 0x16a   : > { %v1713_v9 = vadd.f32 %v1712_v37, %v4274_v36 }
 0x16b   : > { %v4617_v23 = vadd.f32 %v2118_v5, %v2030_v18 }
 0x16c   : > { %v1798_v10 = vpop.f32.mrf.mxu2  ;;  %2171 = vmatmul.bf16.vlgmr.msra.gmra.mxu1 %v4614_v19  ;;  %2630 = vmatmul.bf16.vlgmr.msra.gmra.mxu0 %v4205_v7 }
 0x16d   : > { %v1799_v13 = vadd.f32 %v1798_v10, %v1710_v11 }
 0x170   : > { %v2031_v6 = vpop.f32.mrf.mxu3 }
 0x171   : > { %v2032_v14 = vadd.f32 %v2031_v6, %v1799_v13  ;;  %2452 = vmatmul.bf16.vlgmr.msra.gmra.mxu2 %v3948_v35  ;;  %v1714_v21 = vpop.f32.mrf.mxu1  ;;  %v2125_v48 = vpop.f32.mrf.mxu0 }
 0x172   : > { %v1715_v22 = vadd.f32 %v1714_v21, %v4297_v62 }
 0x173   : > { %v4623_v59 = vadd.f32 %v2120_v34, %v2032_v14 }
 0x174   : > { %v1801_v40 = vpop.f32.mrf.mxu2 }
 0x175   : > { %2541 = vmatmul.bf16.vlgmr.msra.gmra.mxu3 %v4199_v0  ;;  %v1802_v57 = vadd.f32 %v1801_v40, %v1713_v9 }
 0x178   : > { %v2034_v5 = vpop.f32.mrf.mxu3 }
 0x179   : > { %v2035_v52 = vadd.f32 %v2034_v5, %v1802_v57  ;;  %v1717_v61 = vpop.f32.mrf.mxu1  ;;  %v2128_v17 = vpop.f32.mrf.mxu0  ;;  %v4878_v5 = vld [vmem:[#allocation5_spill] sm:$0xff] }
 0x17a   : > { %v1718_v11 = vadd.f32 %v1717_v61, %v4318_v46  ;;  %v4879_v61 = vld [vmem:[#allocation20_spill] sm:$0xff] }
 0x17b   : > { %v4627_v4 = vadd.f32 %v2123_v54, %v2035_v52 }
 0x17c   : > { %v1803_v18 = vpop.f32.mrf.mxu2  ;;  %2176 = vmatmul.bf16.gmra.mxu1 %v4178_v47  ;;  %2635 = vmatmul.bf16.gmra.mxu0 %v4221_v29 }
 0x17d   : > { %v1804_v35 = vadd.f32 %v1803_v18, %v1715_v22 }
 0x180   : > { %v2036_v36 = vpop.f32.mrf.mxu3 }
 0x181   : > { %v2037_v34 = vadd.f32 %v2036_v36, %v1804_v35  ;;  %2457 = vmatmul.bf16.gmra.mxu2 %v4037_v20  ;;  %v1719_v0 = vpop.f32.mrf.mxu1  ;;  %v2130_v37 = vpop.f32.mrf.mxu0  ;;  %v4877_v20 = vld [vmem:[#allocation9_spill] sm:$0xff] }
 0x182   : > { %v1720_v21 = vadd.f32 %v1719_v0, %v4329_v60  ;;  %v4880_v60 = vld [vmem:[#allocation8_spill] sm:$0xff] }
 0x183   : > { %v4633_v10 = vadd.f32 %v2125_v48, %v2037_v34 }
 0x184   : > { %v1806_v13 = vpop.f32.mrf.mxu2 }
 0x185   : > { %2546 = vmatmul.bf16.gmra.mxu3 %v4214_v26  ;;  %v1807_v62 = vadd.f32 %v1806_v13, %v1718_v11  ;;  %v4881_v11 = vld [vmem:[#allocation23_spill] sm:$0xff] }
 0x188   : > { %v2039_v54 = vpop.f32.mrf.mxu3 }
 0x189   : > { %v2040_v6 = vadd.f32 %v2039_v54, %v1807_v62  ;;  %v1722_v47 = vpop.f32.mrf.mxu1  ;;  %v2133_v14 = vpop.f32.mrf.mxu0 }
 0x18a   : > { %v1723_v22 = vadd.f32 %v1722_v47, %v4879_v61 }
 0x18b   : > { %v4637_v9 = vadd.f32 %v2128_v17, %v2040_v6  ;;  %v4882_v6 = vld [vmem:[#allocation11_spill] sm:$0xff] }
 0x18c   : > { %v1808_v40 = vpop.f32.mrf.mxu2  ;;  %2181 = vmatmul.bf16.gmra.mxu1 %v4205_v7  ;;  %2640 = vmatmul.bf16.gmra.mxu0 %v4877_v20 }
 0x18d   : > { %v1809_v46 = vadd.f32 %v1808_v40, %v1720_v21  ;;  %v4883_v40 = vld [vmem:[#allocation2_spill] sm:$0xff] }
 0x190   : > { %v2041_v48 = vpop.f32.mrf.mxu3 }
 0x191   : > { %v2042_v57 = vadd.f32 %v2041_v48, %v1809_v46  ;;  %2462 = vmatmul.bf16.gmra.mxu2 %v4878_v5  ;;  %v1724_v26 = vpop.f32.mrf.mxu1  ;;  %v2135_v52 = vpop.f32.mrf.mxu0 }
 0x192   : > { %v1725_v13 = vadd.f32 %v1724_v26, %v4881_v11  ;;  %v4885_v26 = vld [vmem:[#allocation10_spill] sm:$0xff] }
 0x193   : > { %v4643_v18 = vadd.f32 %v2130_v37, %v2042_v57  ;;  %v4884_v57 = vld [vmem:[#allocation26_spill] sm:$0xff] }
 0x194   : > { %v1811_v35 = vpop.f32.mrf.mxu2 }
 0x195   : > { %2551 = vmatmul.bf16.gmra.mxu3 %v4880_v60  ;;  %v1812_v17 = vadd.f32 %v1811_v35, %v1723_v22 }
 0x198   : > { %v2044_v36 = vpop.f32.mrf.mxu3 }
 0x199   : > { %v2045_v34 = vadd.f32 %v2044_v36, %v1812_v17  ;;  %v1727_v7 = vpop.f32.mrf.mxu1  ;;  %v2138_v0 = vpop.f32.mrf.mxu0  ;;  %v4886_v36 = vld [vmem:[#allocation29_spill] sm:$0xff] }
 0x19a   : > { %v1728_v5 = vadd.f32 %v1727_v7, %v4884_v57  ;;  %v4889_v57 = vld [vmem:[#allocation12_spill] sm:$0xff] }
 0x19b   : > { %v4647_v62 = vadd.f32 %v2133_v14, %v2045_v34 }
 0x19c   : > { %v1813_v54 = vpop.f32.mrf.mxu2  ;;  %2186 = vmatmul.bf16.gmra.mxu1 %v4221_v29  ;;  %2645 = vmatmul.bf16.gmra.mxu0 %v4882_v6 }
 0x19d   : > { %v1814_v47 = vadd.f32 %v1813_v54, %v1725_v13  ;;  %v4887_v54 = vld [vmem:[#allocation15_spill] sm:$0xff] }
 0x1a0   : > { %v2046_v37 = vpop.f32.mrf.mxu3 }
 0x1a1   : > { %v2047_v21 = vadd.f32 %v2046_v37, %v1814_v47  ;;  %2467 = vmatmul.bf16.gmra.mxu2 %v4883_v40  ;;  %v1729_v46 = vpop.f32.mrf.mxu1  ;;  %v2140_v48 = vpop.f32.mrf.mxu0  ;;  %v4888_v37 = vld [vmem:[#allocation3_spill] sm:$0xff] }
 0x1a2   : > { %v1730_v34 = vadd.f32 %v1729_v46, %v4886_v36  ;;  %v4891_v46 = vld [vmem:[#allocation14_spill] sm:$0xff]  ;;  %v4892_v36 = vld [vmem:[#allocation13_spill] sm:$0xff] }
 0x1a3   : > { %v4653_v61 = vadd.f32 %v2135_v52, %v2047_v21 }
 0x1a4   : > { %v1816_v22 = vpop.f32.mrf.mxu2 }
 0x1a5   : > { %2556 = vmatmul.bf16.gmra.mxu3 %v4885_v26  ;;  %v1817_v14 = vadd.f32 %v1816_v22, %v1728_v5 }
 0x1a8   : > { %v2049_v35 = vpop.f32.mrf.mxu3 }
 0x1a9   : > { %v2050_v60 = vadd.f32 %v2049_v35, %v1817_v14  ;;  %v1732_v29 = vpop.f32.mrf.mxu1  ;;  %v2143_v17 = vpop.f32.mrf.mxu0 }
 0x1aa   : > { %v1733_v5 = vadd.f32 %v1732_v29, %v4889_v57 }
 0x1ab   : > { %v4657_v11 = vadd.f32 %v2138_v0, %v2050_v60 }
 0x1ac   : > { %v1818_v13 = vpop.f32.mrf.mxu2  ;;  %2191 = vmatmul.bf16.gmra.mxu1 %v4877_v20  ;;  %2650 = vmatmul.bf16.gmra.mxu0 %v4887_v54 }
 0x1ad   : > { %v1819_v7 = vadd.f32 %v1818_v13, %v1730_v34 }
 0x1b0   : > { %v2051_v52 = vpop.f32.mrf.mxu3 }
 0x1b1   : > { %v2052_v47 = vadd.f32 %v2051_v52, %v1819_v7  ;;  %2472 = vmatmul.bf16.gmra.mxu2 %v4888_v37  ;;  %v1734_v21 = vpop.f32.mrf.mxu1  ;;  %v2145_v40 = vpop.f32.mrf.mxu0  ;;  %v4894_v52 = vld [vmem:[#allocation19_spill] sm:$0xff]  ;;  %v4895_v37 = vld [vmem:[#allocation4_spill] sm:$0xff] }
 0x1b2   : > { %v1735_v34 = vadd.f32 %v1734_v21, %v4892_v36  ;;  %v4898_v21 = vld [vmem:[#allocation17_spill] sm:$0xff] }
 0x1b3   : > { %v4663_v22 = vadd.f32 %v2140_v48, %v2052_v47 }
 0x1b4   : > { %v1821_v26 = vpop.f32.mrf.mxu2 }
 0x1b5   : > { %4890 = vst [vmem:[#allocation9_spill] sm:$0xff] %v4663_v22  ;;  %2561 = vmatmul.bf16.gmra.mxu3 %v4891_v46  ;;  %v1822_v0 = vadd.f32 %v1821_v26, %v1733_v5  ;;  %v4896_v26 = vld [vmem:[#allocation16_spill] sm:$0xff]  ;;  %v4899_v22 = vld [vmem:[#allocation18_spill] sm:$0xff] }
 0x1b8   : > { %v2054_v14 = vpop.f32.mrf.mxu3 }
 0x1b9   : > { %v2055_v35 = vadd.f32 %v2054_v14, %v1822_v0  ;;  %v1737_v20 = vpop.f32.mrf.mxu1  ;;  %v2148_v60 = vpop.f32.mrf.mxu0 }
 0x1ba   : > { %v1738_v46 = vadd.f32 %v1737_v20, %v4896_v26 }
 0x1bb   : > { %v4667_v13 = vadd.f32 %v2143_v17, %v2055_v35 }
 0x1bc   : > { %v1823_v7 = vpop.f32.mrf.mxu2  ;;  %2196 = vmatmul.bf16.gmra.mxu1 %v4882_v6  ;;  %2655 = vmatmul.bf16.gmra.mxu0 %v4894_v52 }
 0x1bd   : > { %4893 = vst [vmem:[#allocation5_spill] sm:$0xff] %v4667_v13  ;;  %v1824_v29 = vadd.f32 %v1823_v7, %v1735_v34 }
 0x1c0   : > { %v2056_v48 = vpop.f32.mrf.mxu3 }
 0x1c1   : > { %v2057_v47 = vadd.f32 %v2056_v48, %v1824_v29  ;;  %2477 = vmatmul.bf16.gmra.mxu2 %v4895_v37  ;;  %v1739_v57 = vpop.f32.mrf.mxu1  ;;  %v2150_v5 = vpop.f32.mrf.mxu0  ;;  %v4901_v48 = vld [vmem:[#allocation25_spill] sm:$0xff]  ;;  %v4902_v37 = vld [vmem:[#allocation6_spill] sm:$0xff] }
 0x1c2   : > { %v1740_v34 = vadd.f32 %v1739_v57, %v4899_v22  ;;  %v4904_v22 = vld [vmem:[#allocation22_spill] sm:$0xff] }
 0x1c3   : > { %v4673_v0 = vadd.f32 %v2145_v40, %v2057_v47 }
 0x1c4   : > { %v1826_v14 = vpop.f32.mrf.mxu2 }
 0x1c5   : > { %4897 = vst [vmem:[#allocation20_spill] sm:$0xff] %v4673_v0  ;;  %2566 = vmatmul.bf16.gmra.mxu3 %v4898_v21  ;;  %v1827_v17 = vadd.f32 %v1826_v14, %v1738_v46  ;;  %v4903_v14 = vld [vmem:[#allocation21_spill] sm:$0xff]  ;;  %v4905_v0 = vld [vmem:[#allocation24_spill] sm:$0xff] }
 0x1c8   : > { %v2059_v35 = vpop.f32.mrf.mxu3 }
 0x1c9   : > { %v2060_v36 = vadd.f32 %v2059_v35, %v1827_v17  ;;  %v1742_v6 = vpop.f32.mrf.mxu1  ;;  %v2153_v13 = vpop.f32.mrf.mxu0 }
 0x1ca   : > { %v1743_v21 = vadd.f32 %v1742_v6, %v4903_v14 }
 0x1cb   : > { %v4677_v7 = vadd.f32 %v2148_v60, %v2060_v36 }
 0x1cc   : > { %v1828_v29 = vpop.f32.mrf.mxu2  ;;  %2201 = vmatmul.bf16.gmra.mxu1 %v4887_v54  ;;  %2660 = vmatmul.bf16.gmra.mxu0 %v4901_v48 }
 0x1cd   : > { %4900 = vst [vmem:[#allocation8_spill] sm:$0xff] %v4677_v7  ;;  %v1829_v20 = vadd.f32 %v1828_v29, %v1740_v34 }
 0x1d0   : > { %v2061_v40 = vpop.f32.mrf.mxu3 }
 0x1d1   : > { %v2062_v47 = vadd.f32 %v2061_v40, %v1829_v20  ;;  %2482 = vmatmul.bf16.gmra.mxu2 %v4902_v37  ;;  %v1744_v26 = vpop.f32.mrf.mxu1  ;;  %v2155_v46 = vpop.f32.mrf.mxu0  ;;  %v4907_v40 = vld [vmem:[#allocation30_spill] sm:$0xff] }
 0x1d2   : > { %v1745_v34 = vadd.f32 %v1744_v26, %v4905_v0  ;;  %v4909_v0 = vld [vmem:[#allocation28_spill] sm:$0xff] }
 0x1d3   : > { %v4683_v17 = vadd.f32 %v2150_v5, %v2062_v47 }
 0x1d4   : > { %v1831_v35 = vpop.f32.mrf.mxu2 }
 0x1d5   : > { %2571 = vmatmul.bf16.gmra.mxu3 %v4904_v22  ;;  %v1832_v60 = vadd.f32 %v1831_v35, %v1743_v21  ;;  %v4908_v21 = vld [vmem:[#allocation27_spill] sm:$0xff] }
 0x1d8   : > { %v2064_v57 = vpop.f32.mrf.mxu3 }
 0x1d9   : > { %v2065_v36 = vadd.f32 %v2064_v57, %v1832_v60  ;;  %v1747_v54 = vpop.f32.mrf.mxu1  ;;  %v2158_v7 = vpop.f32.mrf.mxu0 }
 0x1da   : > { %v1748_v35 = vadd.f32 %v1747_v54, %v4908_v21 }
 0x1db   : > { %v4687_v29 = vadd.f32 %v2153_v13, %v2065_v36 }
 0x1dc   : > { %v1833_v20 = vpop.f32.mrf.mxu2  ;;  %2206 = vmatmul.bf16.gmra.mxu1 %v4894_v52  ;;  %2665 = vmatmul.bf16.gmra.mxu0 %v4907_v40 }
 0x1dd   : > { %4906 = vst [vmem:[#allocation23_spill] sm:$0xff] %v4687_v29  ;;  %v1834_v6 = vadd.f32 %v1833_v20, %v1745_v34  ;;  %v4910_v29 = vld [vmem:[#allocation31_spill] sm:$0xff] }
 0x1e0   : > { %v2066_v5 = vpop.f32.mrf.mxu3 }
 0x1e1   : > { %v2067_v47 = vadd.f32 %v2066_v5, %v1834_v6  ;;  %2487 = vmatmul.bf16.gmra.mxu2 %v3889_v42  ;;  %v1749_v37 = vpop.f32.mrf.mxu1  ;;  %v2160_v14 = vpop.f32.mrf.mxu0  ;;  %v4911_v42 = vld [vmem:[#allocation33_spill] sm:$0xff] }
 0x1e2   : > { %v1750_v34 = vadd.f32 %v1749_v37, %v4910_v29 }
 0x1e3   : > { %v4693_v22 = vadd.f32 %v2155_v46, %v2067_v47 }
 0x1e4   : > { %v1836_v60 = vpop.f32.mrf.mxu2 }
 0x1e5   : > { %2576 = vmatmul.bf16.gmra.mxu3 %v4909_v0  ;;  %v1837_v13 = vadd.f32 %v1836_v60, %v1748_v35 }
 0x1e8   : > { %v2069_v26 = vpop.f32.mrf.mxu3 }
 0x1e9   : > { %v2070_v57 = vadd.f32 %v2069_v26, %v1837_v13  ;;  %v2172_v52 = vpop.f32.mrf.mxu1  ;;  %v2631_v36 = vpop.f32.mrf.mxu0 }
 0x1eb   : > { %v4697_v20 = vadd.f32 %v2158_v7, %v2070_v57 }
 0x1ec   : > { %v1838_v6 = vpop.f32.mrf.mxu2  ;;  %2211 = vmatmul.bf16.gmra.mxu1 %v4901_v48  ;;  %2670 = vmatmul.bf16.gmra.mxu0 %v4911_v42 }
 0x1ed   : > { %v1839_v54 = vadd.f32 %v1838_v6, %v1750_v34 }
 0x1f0   : > { %v2071_v46 = vpop.f32.mrf.mxu3 }
 0x1f1   : > { %v2072_v5 = vadd.f32 %v2071_v46, %v1839_v54  ;;  %2492 = vmatmul.bf16.gmra.mxu2 %v4010_v45  ;;  %v2174_v47 = vpop.f32.mrf.mxu1  ;;  %v2633_v21 = vpop.f32.mrf.mxu0  ;;  %v4912_v45 = vld [vmem:[#allocation32_spill] sm:$0xff] }
 0x1f2   : > { %v2173_v57 = vadd.f32 %v2172_v52, %v4912_v45  ;;  %v2175_v54 = vadd.f32 %v2174_v47, %v4458_v38 }
 0x1f3   : > { %v4702_v35 = vadd.f32 %v2160_v14, %v2072_v5 }
 0x1f4   : > { %v2453_v60 = vpop.f32.mrf.mxu2 }
 0x1f5   : > { %2581 = vmatmul.bf16.gmra.mxu3 %v4434_v15 }
 0x1f8   : > { %v2542_v29 = vpop.f32.mrf.mxu3 }
 0x1f9   : > { %v2177_v7 = vpop.f32.mrf.mxu1  ;;  %v2636_v37 = vpop.f32.mrf.mxu0  ;;  %v2543_v0 = vadd.f32 %v2542_v29, %v2453_v60 }
 0x1fb   : > { %v2632_v48 = vadd.f32 %v2631_v36, %v2543_v0 }
 0x1fc   : > { %v2455_v13 = vpop.f32.mrf.mxu2  ;;  %2216 = vmatmul.bf16.gmra.mxu1 %v4907_v40  ;;  %2675 = vmatmul.bf16.gmra.mxu0 %v4472_v24 }
 0x1fd   : > { %v2711_v15 = vadd.f32 %v2632_v48, %v2173_v57 }
 0x1ff   : > { %v2780_v40 = vmul.f32 %v2711_v15, %v2711_v15 }
 0x200   : > { %v2544_v26 = vpop.f32.mrf.mxu3 }
 0x201   : > { %v2545_v34 = vadd.f32 %v2544_v26, %v2455_v13  ;;  %2497 = vmatmul.bf16.gmra.mxu2 %v4094_v43  ;;  %v2179_v14 = vpop.f32.mrf.mxu1  ;;  %v2638_v6 = vpop.f32.mrf.mxu0  ;;  %v2178_v13 = vadd.f32 %v2177_v7, %v4466_v25  ;;  %v4913_v26 = vld [vmem:[#allocation36_spill] sm:$0xff] }
 0x203   : > { %v2634_v46 = vadd.f32 %v2633_v21, %v2545_v34 }
 0x204   : > { %v2458_v5 = vpop.f32.mrf.mxu2 }
 0x205   : > { %v2712_v60 = vadd.f32 %v2634_v46, %v2175_v54  ;;  %2586 = vmatmul.bf16.gmra.mxu3 %v4462_v39 }
 0x207   : > { %v2743_v52 = vadd.f32 %v2712_v60, %v2711_v15  ;;  %v2781_v43 = vmul.f32 %v2712_v60, %v2712_v60  ;;  %v3543_v36 = vpack.c.bf16 %v2712_v60, %v2711_v15 }
 0x208   : > { %v2547_v29 = vpop.f32.mrf.mxu3 }
 0x209   : > { %v2812_v0 = vadd.f32 %v2781_v43, %v2780_v40  ;;  %3544 = vst [vmem:[%s4716_s20] sm:$0xff] %v3543_v36   ;;  %v2548_v38 = vadd.f32 %v2547_v29, %v2458_v5  ;;  %v2182_v47 = vpop.f32.mrf.mxu1  ;;  %v2641_v21 = vpop.f32.mrf.mxu0  ;;  %v4914_v40 = vld [vmem:[#allocation34_spill] sm:$0xff] }
 0x20a   : > { %v2180_v43 = vadd.f32 %v2179_v14, %v4914_v40 }
 0x20b   : > { %v2637_v39 = vadd.f32 %v2636_v37, %v2548_v38 }
 0x20c   : > { %v2460_v48 = vpop.f32.mrf.mxu2  ;;  %2221 = vmatmul.bf16.gmra.mxu1 %v4911_v42  ;;  %2680 = vmatmul.bf16.gmra.mxu0 %v4913_v26 }
 0x20d   : > { %v2713_v45 = vadd.f32 %v2637_v39, %v2178_v13 }
 0x20f   : > { %v2744_v57 = vadd.f32 %v2743_v52, %v2713_v45  ;;  %v2782_v34 = vmul.f32 %v2713_v45, %v2713_v45 }
 0x210   : > { %v2549_v54 = vpop.f32.mrf.mxu3 }
 0x211   : > { %v2813_v15 = vadd.f32 %v2812_v0, %v2782_v34  ;;  %v2550_v46 = vadd.f32 %v2549_v54, %v2460_v48  ;;  %2502 = vmatmul.bf16.gmra.mxu2 %v4147_v2  ;;  %v2184_v5 = vpop.f32.mrf.mxu1  ;;  %v2643_v60 = vpop.f32.mrf.mxu0  ;;  %v4915_v48 = vld [vmem:[#allocation35_spill] sm:$0xff] }
 0x212   : > { %v2183_v2 = vadd.f32 %v2182_v47, %v4915_v48 }
 0x213   : > { %v2639_v25 = vadd.f32 %v2638_v6, %v2550_v46 }
 0x214   : > { %v2463_v7 = vpop.f32.mrf.mxu2 }
 0x215   : > { %v2714_v37 = vadd.f32 %v2639_v25, %v2180_v43  ;;  %2591 = vmatmul.bf16.gmra.mxu3 %v4490_v44  ;;  %v2185_v43 = vadd.f32 %v2184_v5, %v4514_v12 }
 0x217   : > { %v2745_v42 = vadd.f32 %v2744_v57, %v2714_v37  ;;  %v2783_v36 = vmul.f32 %v2714_v37, %v2714_v37  ;;  %v3548_v29 = vpack.c.bf16 %v2714_v37, %v2713_v45 }
 0x218   : > { %v2552_v52 = vpop.f32.mrf.mxu3 }
 0x219   : > { %v2814_v38 = vadd.f32 %v2813_v15, %v2783_v36  ;;  %3635 = vst [vmem:[%s4716_s20 + $0x8] sm:$0xff] %v3548_v29   ;;  %v2553_v13 = vadd.f32 %v2552_v52, %v2463_v7  ;;  %v2187_v0 = vpop.f32.mrf.mxu1  ;;  %v2646_v39 = vpop.f32.mrf.mxu0 }
 0x21b   : > { %v2642_v34 = vadd.f32 %v2641_v21, %v2553_v13 }
 0x21c   : > { %v2465_v54 = vpop.f32.mrf.mxu2  ;;  %2226 = vmatmul.bf16.gmra.mxu1 %v4472_v24  ;;  %2685 = vmatmul.bf16.gmra.mxu0 %v4527_v49 }
 0x21d   : > { %v2715_v14 = vadd.f32 %v2642_v34, %v2183_v2 }
 0x21f   : > { %v2746_v6 = vadd.f32 %v2745_v42, %v2715_v14  ;;  %v2784_v44 = vmul.f32 %v2715_v14, %v2715_v14 }
 0x220   : > { %v2554_v57 = vpop.f32.mrf.mxu3 }
 0x221   : > { %v2815_v45 = vadd.f32 %v2814_v38, %v2784_v44  ;;  %v2555_v46 = vadd.f32 %v2554_v57, %v2465_v54  ;;  %2507 = vmatmul.bf16.gmra.mxu2 %v3903_v55  ;;  %v2189_v15 = vpop.f32.mrf.mxu1  ;;  %v2648_v40 = vpop.f32.mrf.mxu0  ;;  %v2188_v55 = vadd.f32 %v2187_v0, %v4521_v31 }
 0x223   : > { %v2644_v47 = vadd.f32 %v2643_v60, %v2555_v46 }
 0x224   : > { %v2468_v21 = vpop.f32.mrf.mxu2 }
 0x225   : > { %v2716_v25 = vadd.f32 %v2644_v47, %v2185_v43  ;;  %2596 = vmatmul.bf16.gmra.mxu3 %v4518_v53 }
 0x227   : > { %v2747_v24 = vadd.f32 %v2746_v6, %v2716_v25  ;;  %v2785_v7 = vmul.f32 %v2716_v25, %v2716_v25  ;;  %v3553_v37 = vpack.c.bf16 %v2716_v25, %v2715_v14  ;;  %v4916_v6 = vld [vmem:[#allocation37_spill] sm:$0xff] }
 0x228   : > { %v2557_v42 = vpop.f32.mrf.mxu3  ;;  %v2190_v44 = vadd.f32 %v2189_v15, %v4916_v6 }
 0x229   : > { %v2816_v36 = vadd.f32 %v2815_v45, %v2785_v7  ;;  %3636 = vst [vmem:[%s4716_s20 + $0x10] sm:$0xff] %v3553_v37   ;;  %v2558_v29 = vadd.f32 %v2557_v42, %v2468_v21  ;;  %v2192_v52 = vpop.f32.mrf.mxu1  ;;  %v2651_v38 = vpop.f32.mrf.mxu0 }
 0x22b   : > { %v2647_v13 = vadd.f32 %v2646_v39, %v2558_v29 }
 0x22c   : > { %v2470_v48 = vpop.f32.mrf.mxu2  ;;  %2231 = vmatmul.bf16.gmra.mxu1 %v4913_v26  ;;  %2690 = vmatmul.bf16.gmra.mxu0 %v4561_v1 }
 0x22d   : > { %v2717_v12 = vadd.f32 %v2647_v13, %v2188_v55 }
 0x22f   : > { %v2748_v5 = vadd.f32 %v2747_v24, %v2717_v12  ;;  %v2786_v53 = vmul.f32 %v2717_v12, %v2717_v12  ;;  %v4917_v24 = vld [vmem:[#allocation38_spill] sm:$0xff] }
 0x230   : > { %v2559_v60 = vpop.f32.mrf.mxu3 }
 0x231   : > { %v2817_v2 = vadd.f32 %v2816_v36, %v2786_v53  ;;  %v2560_v34 = vadd.f32 %v2559_v60, %v2470_v48  ;;  %2512 = vmatmul.bf16.gmra.mxu2 %v4021_v56  ;;  %v2194_v54 = vpop.f32.mrf.mxu1  ;;  %v2653_v14 = vpop.f32.mrf.mxu0  ;;  %v2193_v56 = vadd.f32 %v2192_v52, %v4917_v24 }
 0x232   : > { %v2195_v48 = vadd.f32 %v2194_v54, %v4569_v41 }
 0x233   : > { %v2649_v31 = vadd.f32 %v2648_v40, %v2560_v34 }
 0x234   : > { %v2473_v0 = vpop.f32.mrf.mxu2 }
 0x235   : > { %v2718_v39 = vadd.f32 %v2649_v31, %v2190_v44  ;;  %2601 = vmatmul.bf16.gmra.mxu3 %v4545_v28 }
 0x237   : > { %v2749_v26 = vadd.f32 %v2748_v5, %v2718_v39  ;;  %v2787_v57 = vmul.f32 %v2718_v39, %v2718_v39  ;;  %v3558_v45 = vpack.c.bf16 %v2718_v39, %v2717_v12 }
 0x238   : > { %v2562_v46 = vpop.f32.mrf.mxu3 }
 0x239   : > { %v2818_v43 = vadd.f32 %v2817_v2, %v2787_v57  ;;  %3637 = vst [vmem:[%s4716_s20 + $0x18] sm:$0xff] %v3558_v45   ;;  %v2563_v47 = vadd.f32 %v2562_v46, %v2473_v0  ;;  %v2197_v21 = vpop.f32.mrf.mxu1  ;;  %v2656_v25 = vpop.f32.mrf.mxu0 }
 0x23b   : > { %v2652_v7 = vadd.f32 %v2651_v38, %v2563_v47 }
 0x23c   : > { %v2475_v37 = vpop.f32.mrf.mxu2  ;;  %2236 = vmatmul.bf16.gmra.mxu1 %v4527_v49  ;;  %2695 = vmatmul.bf16.gmra.mxu0 %v4583_v8 }
 0x23d   : > { %v2719_v15 = vadd.f32 %v2652_v7, %v2193_v56 }
 0x23f   : > { %v2750_v40 = vadd.f32 %v2749_v26, %v2719_v15  ;;  %v2788_v28 = vmul.f32 %v2719_v15, %v2719_v15 }
 0x240   : > { %v2564_v42 = vpop.f32.mrf.mxu3 }
 0x241   : > { %v2819_v36 = vadd.f32 %v2818_v43, %v2788_v28  ;;  %v2565_v29 = vadd.f32 %v2564_v42, %v2475_v37  ;;  %2517 = vmatmul.bf16.gmra.mxu2 %v4104_v58  ;;  %v2199_v55 = vpop.f32.mrf.mxu1  ;;  %v2658_v13 = vpop.f32.mrf.mxu0  ;;  %v2198_v58 = vadd.f32 %v2197_v21, %v4577_v50 }
 0x242   : > { %v2200_v46 = vadd.f32 %v2199_v55, %v4591_v33 }
 0x243   : > { %v2654_v52 = vadd.f32 %v2653_v14, %v2565_v29 }
 0x244   : > { %v2478_v38 = vpop.f32.mrf.mxu2 }
 0x245   : > { %v2720_v12 = vadd.f32 %v2654_v52, %v2195_v48  ;;  %2606 = vmatmul.bf16.gmra.mxu3 %v4573_v51 }
 0x247   : > { %v2751_v49 = vadd.f32 %v2750_v40, %v2720_v12  ;;  %v2789_v5 = vmul.f32 %v2720_v12, %v2720_v12  ;;  %v3563_v53 = vpack.c.bf16 %v2720_v12, %v2719_v15  ;;  %v4918_v12 = vld [vmem:[#allocation7_spill] sm:$0xff] }
 0x248   : > { %v2567_v60 = vpop.f32.mrf.mxu3 }
 0x249   : > { %v2820_v2 = vadd.f32 %v2819_v36, %v2789_v5  ;;  %3638 = vst [vmem:[%s4716_s20 + $0x20] sm:$0xff] %v3563_v53   ;;  %v2568_v34 = vadd.f32 %v2567_v60, %v2478_v38  ;;  %v2202_v6 = vpop.f32.mrf.mxu1  ;;  %v2661_v44 = vpop.f32.mrf.mxu0 }
 0x24b   : > { %v2657_v31 = vadd.f32 %v2656_v25, %v2568_v34 }
 0x24c   : > { %v2480_v0 = vpop.f32.mrf.mxu2  ;;  %2241 = vmatmul.bf16.gmra.mxu1 %v4561_v1  ;;  %2700 = vmatmul.bf16.gmra.mxu0 %v4604_v32 }
 0x24d   : > { %v2721_v41 = vadd.f32 %v2657_v31, %v2198_v58 }
 0x24f   : > { %v2752_v54 = vadd.f32 %v2751_v49, %v2721_v41  ;;  %v2790_v51 = vmul.f32 %v2721_v41, %v2721_v41 }
 0x250   : > { %v2569_v14 = vpop.f32.mrf.mxu3 }
 0x251   : > { %v2821_v39 = vadd.f32 %v2820_v2, %v2790_v51  ;;  %v2570_v26 = vadd.f32 %v2569_v14, %v2480_v0  ;;  %2522 = vmatmul.bf16.gmra.mxu2 %v4161_v16  ;;  %v2204_v57 = vpop.f32.mrf.mxu1  ;;  %v2663_v45 = vpop.f32.mrf.mxu0  ;;  %v2203_v16 = vadd.f32 %v2202_v6, %v4599_v30 }
 0x252   : > { %v2205_v48 = vadd.f32 %v2204_v57, %v4608_v27 }
 0x253   : > { %v2659_v50 = vadd.f32 %v2658_v13, %v2570_v26 }
 0x254   : > { %v2483_v43 = vpop.f32.mrf.mxu2 }
 0x255   : > { %v2722_v47 = vadd.f32 %v2659_v50, %v2200_v46  ;;  %2611 = vmatmul.bf16.gmra.mxu3 %v4595_v63 }
 0x257   : > { %v2753_v1 = vadd.f32 %v2752_v54, %v2722_v47  ;;  %v2791_v32 = vmul.f32 %v2722_v47, %v2722_v47  ;;  %v3568_v21 = vpack.c.bf16 %v2722_v47, %v2721_v41 }
 0x258   : > { %v2572_v25 = vpop.f32.mrf.mxu3 }
 0x259   : > { %v2822_v24 = vadd.f32 %v2821_v39, %v2791_v32  ;;  %3639 = vst [vmem:[%s4716_s20 + $0x28] sm:$0xff] %v3568_v21   ;;  %v2573_v56 = vadd.f32 %v2572_v25, %v2483_v43  ;;  %v2207_v7 = vpop.f32.mrf.mxu1  ;;  %v2666_v37 = vpop.f32.mrf.mxu0 }
 0x25b   : > { %v2662_v15 = vadd.f32 %v2661_v44, %v2573_v56 }
 0x25c   : > { %v2485_v40 = vpop.f32.mrf.mxu2  ;;  %2246 = vmatmul.bf16.gmra.mxu1 %v4583_v8  ;;  %2705 = vmatmul.bf16.gmra.mxu0 %v4614_v19 }
 0x25d   : > { %v2723_v33 = vadd.f32 %v2662_v15, %v2203_v16 }
 0x25f   : > { %v2754_v28 = vadd.f32 %v2753_v1, %v2723_v33  ;;  %v2792_v63 = vmul.f32 %v2723_v33, %v2723_v33 }
 0x260   : > { %v2574_v42 = vpop.f32.mrf.mxu3 }
 0x261   : > { %v2823_v36 = vadd.f32 %v2822_v24, %v2792_v63  ;;  %v2575_v29 = vadd.f32 %v2574_v42, %v2485_v40  ;;  %2527 = vmatmul.bf16.gmra.mxu2 %v4165_v3  ;;  %v2209_v55 = vpop.f32.mrf.mxu1  ;;  %v2668_v13 = vpop.f32.mrf.mxu0  ;;  %v2208_v3 = vadd.f32 %v2207_v7, %v4617_v23 }
 0x262   : > { %v2210_v39 = vadd.f32 %v2209_v55, %v4623_v59 }
 0x263   : > { %v2664_v30 = vadd.f32 %v2663_v45, %v2575_v29 }
 0x264   : > { %v2488_v52 = vpop.f32.mrf.mxu2 }
 0x265   : > { %v2724_v38 = vadd.f32 %v2664_v30, %v2205_v48  ;;  %2616 = vmatmul.bf16.gmra.mxu3 %v4918_v12 }
 0x267   : > { %v2755_v8 = vadd.f32 %v2754_v28, %v2724_v38  ;;  %v2793_v19 = vmul.f32 %v2724_v38, %v2724_v38  ;;  %v3573_v49 = vpack.c.bf16 %v2724_v38, %v2723_v33 }
 0x268   : > { %v2577_v5 = vpop.f32.mrf.mxu3 }
 0x269   : > { %v2824_v53 = vadd.f32 %v2823_v36, %v2793_v19  ;;  %3640 = vst [vmem:[%s4716_s20 + $0x30] sm:$0xff] %v3573_v49   ;;  %v2578_v60 = vadd.f32 %v2577_v5, %v2488_v52  ;;  %v2212_v2 = vpop.f32.mrf.mxu1  ;;  %v2671_v34 = vpop.f32.mrf.mxu0 }
 0x26a   : > { %v2213_v25 = vadd.f32 %v2212_v2, %v4627_v4 }
 0x26b   : > { %v2667_v6 = vadd.f32 %v2666_v37, %v2578_v60 }
 0x26c   : > { %v2490_v44 = vpop.f32.mrf.mxu2 }
 0x26d   : > { %v2725_v58 = vadd.f32 %v2667_v6, %v2208_v3 }
 0x26f   : > { %v2756_v27 = vadd.f32 %v2755_v8, %v2725_v58  ;;  %v2794_v31 = vmul.f32 %v2725_v58, %v2725_v58 }
 0x270   : > { %v2579_v0 = vpop.f32.mrf.mxu3 }
 0x271   : > { %v2825_v41 = vadd.f32 %v2824_v53, %v2794_v31  ;;  %v2580_v54 = vadd.f32 %v2579_v0, %v2490_v44  ;;  %v2214_v51 = vpop.f32.mrf.mxu1  ;;  %v2673_v14 = vpop.f32.mrf.mxu0 }
 0x272   : > { %v2215_v63 = vadd.f32 %v2214_v51, %v4633_v10 }
 0x273   : > { %v2669_v26 = vadd.f32 %v2668_v13, %v2580_v54 }
 0x274   : > { %v2493_v57 = vpop.f32.mrf.mxu2 }
 0x275   : > { %v2726_v45 = vadd.f32 %v2669_v26, %v2210_v39 }
 0x277   : > { %v2757_v46 = vadd.f32 %v2756_v27, %v2726_v45  ;;  %v2795_v50 = vmul.f32 %v2726_v45, %v2726_v45  ;;  %v3578_v43 = vpack.c.bf16 %v2726_v45, %v2725_v58 }
 0x278   : > { %v2582_v23 = vpop.f32.mrf.mxu3 }
 0x279   : > { %v2826_v47 = vadd.f32 %v2825_v41, %v2795_v50  ;;  %3641 = vst [vmem:[%s4716_s20 + $0x38] sm:$0xff] %v3578_v43   ;;  %v2583_v1 = vadd.f32 %v2582_v23, %v2493_v57  ;;  %v2217_v32 = vpop.f32.mrf.mxu1  ;;  %v2676_v21 = vpop.f32.mrf.mxu0 }
 0x27a   : > { %v2218_v8 = vadd.f32 %v2217_v32, %v4637_v9 }
 0x27b   : > { %v2672_v24 = vadd.f32 %v2671_v34, %v2583_v1 }
 0x27c   : > { %v2495_v56 = vpop.f32.mrf.mxu2 }
 0x27d   : > { %v2727_v7 = vadd.f32 %v2672_v24, %v2213_v25 }
 0x27f   : > { %v2758_v37 = vadd.f32 %v2757_v46, %v2727_v7  ;;  %v2796_v59 = vmul.f32 %v2727_v7, %v2727_v7 }
 0x280   : > { %v2584_v16 = vpop.f32.mrf.mxu3 }
 0x281   : > { %v2827_v15 = vadd.f32 %v2826_v47, %v2796_v59  ;;  %v2585_v40 = vadd.f32 %v2584_v16, %v2495_v56  ;;  %v2219_v33 = vpop.f32.mrf.mxu1  ;;  %v2678_v28 = vpop.f32.mrf.mxu0 }
 0x282   : > { %v2220_v44 = vadd.f32 %v2219_v33, %v4643_v18 }
 0x283   : > { %v2674_v42 = vadd.f32 %v2673_v14, %v2585_v40 }
 0x284   : > { %v2498_v36 = vpop.f32.mrf.mxu2 }
 0x285   : > { %v2728_v29 = vadd.f32 %v2674_v42, %v2215_v63 }
 0x287   : > { %v2759_v55 = vadd.f32 %v2758_v37, %v2728_v29  ;;  %v2797_v13 = vmul.f32 %v2728_v29, %v2728_v29  ;;  %v3583_v48 = vpack.c.bf16 %v2728_v29, %v2727_v7 }
 0x288   : > { %v2587_v4 = vpop.f32.mrf.mxu3 }
 0x289   : > { %v2828_v30 = vadd.f32 %v2827_v15, %v2797_v13  ;;  %3642 = vst [vmem:[%s4716_s20 + $0x40] sm:$0xff] %v3583_v48   ;;  %v2588_v52 = vadd.f32 %v2587_v4, %v2498_v36  ;;  %v2222_v38 = vpop.f32.mrf.mxu1  ;;  %v2681_v12 = vpop.f32.mrf.mxu0 }
 0x28a   : > { %v2223_v57 = vadd.f32 %v2222_v38, %v4647_v62 }
 0x28b   : > { %v2677_v19 = vadd.f32 %v2676_v21, %v2588_v52 }
 0x28c   : > { %v2500_v49 = vpop.f32.mrf.mxu2 }
 0x28d   : > { %v2729_v5 = vadd.f32 %v2677_v19, %v2218_v8 }
 0x28f   : > { %v2760_v53 = vadd.f32 %v2759_v55, %v2729_v5  ;;  %v2798_v10 = vmul.f32 %v2729_v5, %v2729_v5 }
 0x290   : > { %v2589_v60 = vpop.f32.mrf.mxu3 }
 0x291   : > { %v2829_v2 = vadd.f32 %v2828_v30, %v2798_v10  ;;  %v2590_v34 = vadd.f32 %v2589_v60, %v2500_v49  ;;  %v2224_v3 = vpop.f32.mrf.mxu1  ;;  %v2683_v6 = vpop.f32.mrf.mxu0  ;;  %v4919_v30 = vld [vmem:[#allocation9_spill] sm:$0xff] }
 0x292   : > { %v2225_v25 = vadd.f32 %v2224_v3, %v4653_v61 }
 0x293   : > { %v2679_v58 = vadd.f32 %v2678_v28, %v2590_v34  ;;  %v4920_v34 = vld [vmem:[#allocation5_spill] sm:$0xff] }
 0x294   : > { %v2503_v27 = vpop.f32.mrf.mxu2 }
 0x295   : > { %v2730_v31 = vadd.f32 %v2679_v58, %v2220_v44 }
 0x297   : > { %v2761_v0 = vadd.f32 %v2760_v53, %v2730_v31  ;;  %v2799_v41 = vmul.f32 %v2730_v31, %v2730_v31  ;;  %v3588_v54 = vpack.c.bf16 %v2730_v31, %v2729_v5 }
 0x298   : > { %v2592_v9 = vpop.f32.mrf.mxu3 }
 0x299   : > { %v2830_v51 = vadd.f32 %v2829_v2, %v2799_v41  ;;  %3643 = vst [vmem:[%s4716_s20 + $0x48] sm:$0xff] %v3588_v54   ;;  %v2593_v14 = vadd.f32 %v2592_v9, %v2503_v27  ;;  %v2227_v39 = vpop.f32.mrf.mxu1  ;;  %v2686_v26 = vpop.f32.mrf.mxu0 }
 0x29a   : > { %v2228_v28 = vadd.f32 %v2227_v39, %v4657_v11 }
 0x29b   : > { %v2682_v45 = vadd.f32 %v2681_v12, %v2593_v14  ;;  %v4921_v14 = vld [vmem:[#allocation20_spill] sm:$0xff] }
 0x29c   : > { %v2505_v46 = vpop.f32.mrf.mxu2 }
 0x29d   : > { %v2731_v50 = vadd.f32 %v2682_v45, %v2223_v57 }
 0x29f   : > { %v2762_v43 = vadd.f32 %v2761_v0, %v2731_v50  ;;  %v2800_v18 = vmul.f32 %v2731_v50, %v2731_v50 }
 0x2a0   : > { %v2594_v23 = vpop.f32.mrf.mxu3 }
 0x2a1   : > { %v2831_v47 = vadd.f32 %v2830_v51, %v2800_v18  ;;  %v2595_v1 = vadd.f32 %v2594_v23, %v2505_v46  ;;  %v2229_v32 = vpop.f32.mrf.mxu1  ;;  %v2688_v21 = vpop.f32.mrf.mxu0 }
 0x2a2   : > { %v2230_v52 = vadd.f32 %v2229_v32, %v4919_v30  ;;  %v4923_v30 = vld [vmem:[#allocation23_spill] sm:$0xff] }
 0x2a3   : > { %v2684_v24 = vadd.f32 %v2683_v6, %v2595_v1 }
 0x2a4   : > { %v2508_v56 = vpop.f32.mrf.mxu2 }
 0x2a5   : > { %v2732_v7 = vadd.f32 %v2684_v24, %v2225_v25 }
 0x2a7   : > { %v2763_v37 = vadd.f32 %v2762_v43, %v2732_v7  ;;  %v2801_v59 = vmul.f32 %v2732_v7, %v2732_v7  ;;  %v3593_v16 = vpack.c.bf16 %v2732_v7, %v2731_v50 }
 0x2a8   : > { %v2597_v62 = vpop.f32.mrf.mxu3 }
 0x2a9   : > { %v2832_v15 = vadd.f32 %v2831_v47, %v2801_v59  ;;  %3644 = vst [vmem:[%s4716_s20 + $0x50] sm:$0xff] %v3593_v16   ;;  %v2598_v40 = vadd.f32 %v2597_v62, %v2508_v56  ;;  %v2232_v33 = vpop.f32.mrf.mxu1  ;;  %v2691_v36 = vpop.f32.mrf.mxu0 }
 0x2aa   : > { %v2233_v3 = vadd.f32 %v2232_v33, %v4920_v34 }
 0x2ab   : > { %v2687_v63 = vadd.f32 %v2686_v26, %v2598_v40 }
 0x2ac   : > { %v2510_v42 = vpop.f32.mrf.mxu2 }
 0x2ad   : > { %v2733_v29 = vadd.f32 %v2687_v63, %v2228_v28 }
 0x2af   : > { %v2764_v55 = vadd.f32 %v2763_v37, %v2733_v29  ;;  %v2802_v61 = vmul.f32 %v2733_v29, %v2733_v29 }
 0x2b0   : > { %v2599_v13 = vpop.f32.mrf.mxu3 }
 0x2b1   : > { %v2833_v48 = vadd.f32 %v2832_v15, %v2802_v61  ;;  %v2600_v4 = vadd.f32 %v2599_v13, %v2510_v42  ;;  %v2234_v8 = vpop.f32.mrf.mxu1  ;;  %v2693_v49 = vpop.f32.mrf.mxu0 }
 0x2b2   : > { %v2235_v39 = vadd.f32 %v2234_v8, %v4921_v14 }
 0x2b3   : > { %v2689_v38 = vadd.f32 %v2688_v21, %v2600_v4  ;;  %v4922_v21 = vld [vmem:[#allocation8_spill] sm:$0xff] }
 0x2b4   : > { %v2513_v12 = vpop.f32.mrf.mxu2 }
 0x2b5   : > { %v2734_v19 = vadd.f32 %v2689_v38, %v2230_v52 }
 0x2b7   : > { %v2765_v5 = vadd.f32 %v2764_v55, %v2734_v19  ;;  %v2803_v53 = vmul.f32 %v2734_v19, %v2734_v19  ;;  %v3598_v11 = vpack.c.bf16 %v2734_v19, %v2733_v29 }
 0x2b8   : > { %v2602_v10 = vpop.f32.mrf.mxu3 }
 0x2b9   : > { %v2834_v60 = vadd.f32 %v2833_v48, %v2803_v53  ;;  %3645 = vst [vmem:[%s4716_s20 + $0x58] sm:$0xff] %v3598_v11   ;;  %v2603_v2 = vadd.f32 %v2602_v10, %v2513_v12  ;;  %v2237_v27 = vpop.f32.mrf.mxu1  ;;  %v2696_v54 = vpop.f32.mrf.mxu0 }
 0x2ba   : > { %v2238_v25 = vadd.f32 %v2237_v27, %v4922_v21 }
 0x2bb   : > { %v2692_v6 = vadd.f32 %v2691_v36, %v2603_v2 }
 0x2bc   : > { %v2515_v44 = vpop.f32.mrf.mxu2 }
 0x2bd   : > { %v2735_v58 = vadd.f32 %v2692_v6, %v2233_v3 }
 0x2bf   : > { %v2766_v31 = vadd.f32 %v2765_v5, %v2735_v58  ;;  %v2804_v0 = vmul.f32 %v2735_v58, %v2735_v58 }
 0x2c0   : > { %v2604_v41 = vpop.f32.mrf.mxu3 }
 0x2c1   : > { %v2835_v9 = vadd.f32 %v2834_v60, %v2804_v0  ;;  %v2605_v51 = vadd.f32 %v2604_v41, %v2515_v44  ;;  %v2239_v23 = vpop.f32.mrf.mxu1  ;;  %v2698_v32 = vpop.f32.mrf.mxu0 }
 0x2c2   : > { %v2240_v33 = vadd.f32 %v2239_v23, %v4683_v17 }
 0x2c3   : > { %v2694_v26 = vadd.f32 %v2693_v49, %v2605_v51 }
 0x2c4   : > { %v2518_v57 = vpop.f32.mrf.mxu2 }
 0x2c5   : > { %v2736_v45 = vadd.f32 %v2694_v26, %v2235_v39 }
 0x2c7   : > { %v2767_v46 = vadd.f32 %v2766_v31, %v2736_v45  ;;  %v2805_v50 = vmul.f32 %v2736_v45, %v2736_v45  ;;  %v3603_v43 = vpack.c.bf16 %v2736_v45, %v2735_v58 }
 0x2c8   : > { %v2607_v18 = vpop.f32.mrf.mxu3 }
 0x2c9   : > { %v2836_v47 = vadd.f32 %v2835_v9, %v2805_v50  ;;  %3646 = vst [vmem:[%s4716_s20 + $0x60] sm:$0xff] %v3603_v43   ;;  %v2608_v1 = vadd.f32 %v2607_v18, %v2518_v57  ;;  %v2242_v40 = vpop.f32.mrf.mxu1  ;;  %v2701_v63 = vpop.f32.mrf.mxu0 }
 0x2ca   : > { %v2243_v52 = vadd.f32 %v2242_v40, %v4923_v30 }
 0x2cb   : > { %v2697_v24 = vadd.f32 %v2696_v54, %v2608_v1 }
 0x2cc   : > { %v2520_v56 = vpop.f32.mrf.mxu2 }
 0x2cd   : > { %v2737_v7 = vadd.f32 %v2697_v24, %v2238_v25 }
 0x2cf   : > { %v2768_v37 = vadd.f32 %v2767_v46, %v2737_v7  ;;  %v2806_v59 = vmul.f32 %v2737_v7, %v2737_v7 }
 0x2d0   : > { %v2609_v16 = vpop.f32.mrf.mxu3 }
 0x2d1   : > { %v2837_v62 = vadd.f32 %v2836_v47, %v2806_v59  ;;  %v2610_v15 = vadd.f32 %v2609_v16, %v2520_v56  ;;  %v2244_v12 = vpop.f32.mrf.mxu1  ;;  %v2703_v49 = vpop.f32.mrf.mxu0 }
 0x2d2   : > { %v2245_v60 = vadd.f32 %v2244_v12, %v4693_v22 }
 0x2d3   : > { %v2699_v28 = vadd.f32 %v2698_v32, %v2610_v15 }
 0x2d4   : > { %v2523_v42 = vpop.f32.mrf.mxu2 }
 0x2d5   : > { %v2738_v36 = vadd.f32 %v2699_v28, %v2240_v33 }
 0x2d7   : > { %v2769_v29 = vadd.f32 %v2768_v37, %v2738_v36  ;;  %v2807_v55 = vmul.f32 %v2738_v36, %v2738_v36  ;;  %v3608_v61 = vpack.c.bf16 %v2738_v36, %v2737_v7 }
 0x2d8   : > { %v2612_v13 = vpop.f32.mrf.mxu3 }
 0x2d9   : > { %v2838_v48 = vadd.f32 %v2837_v62, %v2807_v55  ;;  %3647 = vst [vmem:[%s4716_s20 + $0x68] sm:$0xff] %v3608_v61   ;;  %v2613_v4 = vadd.f32 %v2612_v13, %v2523_v42  ;;  %v2247_v6 = vpop.f32.mrf.mxu1  ;;  %v2706_v31 = vpop.f32.mrf.mxu0 }
 0x2da   : > { %v2248_v9 = vadd.f32 %v2247_v6, %v4697_v20 }
 0x2db   : > { %v2702_v38 = vadd.f32 %v2701_v63, %v2613_v4 }
 0x2dc   : > { %v2525_v8 = vpop.f32.mrf.mxu2 }
 0x2dd   : > { %v2739_v19 = vadd.f32 %v2702_v38, %v2243_v52 }
 0x2df   : > { %v2770_v5 = vadd.f32 %v2769_v29, %v2739_v19  ;;  %v2808_v17 = vmul.f32 %v2739_v19, %v2739_v19 }
 0x2e0   : > { %v2614_v53 = vpop.f32.mrf.mxu3 }
 0x2e1   : > { %v2839_v11 = vadd.f32 %v2838_v48, %v2808_v17  ;;  %v2615_v10 = vadd.f32 %v2614_v53, %v2525_v8  ;;  %v2249_v57 = vpop.f32.mrf.mxu1  ;;  %v2708_v43 = vpop.f32.mrf.mxu0 }
 0x2e2   : > { %v2250_v18 = vadd.f32 %v2249_v57, %v4702_v35 }
 0x2e3   : > { %v2704_v2 = vadd.f32 %v2703_v49, %v2615_v10 }
 0x2e4   : > { %v2528_v34 = vpop.f32.mrf.mxu2 }
 0x2e5   : > { %v2740_v3 = vadd.f32 %v2704_v2, %v2245_v60 }
 0x2e7   : > { %v2771_v44 = vadd.f32 %v2770_v5, %v2740_v3  ;;  %v2809_v58 = vmul.f32 %v2740_v3, %v2740_v3  ;;  %v3613_v27 = vpack.c.bf16 %v2740_v3, %v2739_v19 }
 0x2e8   : > { %v2617_v0 = vpop.f32.mrf.mxu3 }
 0x2e9   : > { %v2840_v41 = vadd.f32 %v2839_v11, %v2809_v58  ;;  %3648 = vst [vmem:[%s4716_s20 + $0x70] sm:$0xff] %v3613_v27   ;;  %v2618_v54 = vadd.f32 %v2617_v0, %v2528_v34 }
 0x2eb   : > { %v2707_v51 = vadd.f32 %v2706_v31, %v2618_v54 }
 0x2ec   : > { %v2530_v39 = vpop.f32.mrf.mxu2 }
 0x2ed   : > { %v2741_v14 = vadd.f32 %v2707_v51, %v2248_v9 }
 0x2ef   : > { %v2772_v26 = vadd.f32 %v2771_v44, %v2741_v14  ;;  %v2810_v22 = vmul.f32 %v2741_v14, %v2741_v14 }
 0x2f0   : > { %v2619_v45 = vpop.f32.mrf.mxu3 }
 0x2f1   : > { %v2841_v46 = vadd.f32 %v2840_v41, %v2810_v22  ;;  %v2620_v50 = vadd.f32 %v2619_v45, %v2530_v39 }
 0x2f3   : > { %v2709_v23 = vadd.f32 %v2708_v43, %v2620_v50 }
 0x2f5   : > { %v2742_v47 = vadd.f32 %v2709_v23, %v2250_v18 }
 0x2f7   : > { %v2773_v1 = vadd.f32 %v2772_v26, %v2742_v47  ;;  %v2811_v32 = vmul.f32 %v2742_v47, %v2742_v47  ;;  %v3618_v21 = vpack.c.bf16 %v2742_v47, %v2741_v14 }
 0x2f9   : > { %v2774_v20 = vrot.slane %v2773_v1, 4  ;;  %v2842_v25 = vadd.f32 %v2841_v46, %v2811_v32  ;;  %3649 = vst [vmem:[%s4716_s20 + $0x78] sm:$0xff] %v3618_v21  }
 0x2fb   : > { %v2775_v24 = vadd.f32 %v2774_v20, %v2773_v1  ;;  %v2843_v56 = vrot.slane %v2842_v25, 4 }
 0x2fd   : > { %v2776_v7 = vrot.slane %v2775_v24, 2  ;;  %v2844_v37 = vadd.f32 %v2843_v56, %v2842_v25 }
 0x2ff   : > { %v2777_v59 = vadd.f32 %v2776_v7, %v2775_v24  ;;  %v2845_v16 = vrot.slane %v2844_v37, 2 }
 0x301   : > { %v2778_v62 = vrot.slane %v2777_v59, 1  ;;  %v2846_v15 = vadd.f32 %v2845_v16, %v2844_v37 }
 0x303   : > { %v2847_v40 = vrot.slane %v2846_v15, 1  ;;  %v2779_v35 = vadd.f32 %v2778_v62, %v2777_v59 }
 0x305   : > { %v2848_v33 = vadd.f32 %v2847_v40, %v2846_v15 }
 0x307   : > { %v2850_v28 = vsel %vm951_vm0, %v2779_v35, %v2848_v33 }
 0x308   : > { %2851 = vst [vmem:[%s465_s23] sm:$0x3] %v2850_v28 }
 0x309 PF: > { %s18_s2 = sadd.s32 1, %s3723_s2   ;;  %s4924_s24 = smov %s3719_s1 }
 0x30a   : > { %p15_p5 = scmp.ge.s32.totalorder %s18_s2, 4   ;;  %s4925_s1 = smov %s4927_s25 }
 0x30c   :  { %17 = sbr.rel (!%p15_p5) target bundleno = 2 (0x2), region = 92 }

// kernel: _lambda_.3
= control target key start
LH: loop header
LB: loop body
LE: loop exit
PB: predicated region body
PF: predicated region fallthrough
CT: control target
= control target key end

     0   :  { %13 = vsyncpa [#allocation3], 0  ;;  %s3658_s1 = smov 0   ;;  %s3660_s24 = smov 0   ;;  %s4407_s0 = inlined_call_operand.vmem [shape: bf16[2,16,16,128], index: 0, kind: input, shape index: {}, may-alias: {0,1,2}]   ;;  %s4408_s1 = inlined_call_operand.vmem [shape: bf16[2,16,16,128], index: 1, kind: input, shape index: {}, may-alias: {0,1,2}]   ;;  %s4409_s2 = inlined_call_operand.vmem [shape: bf16[2,16,16,128], index: 2, kind: input, shape index: {}, may-alias: {0,1,2}]   ;;  %s4410_s3 = inlined_call_operand.hbm [shape: bf16[1152,128], index: 3, kind: input, shape index: {}]   ;;  %s4411_s4 = inlined_call_operand.vmem [shape: f32[1,128], index: 4, kind: input, shape index: {}]   ;;  %s4412_s5 = inlined_call_operand.vmem [shape: f32[1,128], index: 5, kind: input, shape index: {}]   ;;  %s4413_s6 = inlined_call_operand.vmem [shape: bf16[2,16,16,128], index: 6, kind: output, shape index: {0}]   ;;  %s4414_s7 = inlined_call_operand.vmem [shape: f32[2,1,2,128], index: 7, kind: output, shape index: {1}]  }
   0x1   :  { %s3662_s2 = smov 0  }
   0x2 LB: > { %s2936_s4 = sadd.s32 4294967295, %s3612_s2   ;;  %s31_s5 = sadd.s32 1, %s3608_s24  ;;  %s3612_s2 = sphi %s3662_s2, %s19_s2   ;;  %s3608_s24 = sphi %s3660_s24, %s4533_s24   ;;  %s3604_s1 = sphi %s3658_s1, %s4532_s1  }
   0x3   : > { %p33_p0 = scmp.ge.s32.totalorder %s31_s5, 2  ;;  %p2938_p1 = scmp.ge.s32.totalorder %s3612_s2, 1 }
   0x4   : > { %p255_p2 = scmp.lt.s32.totalorder %s3612_s2, 3  ;;  %p3526_p4 = scmp.eq.s32.totalorder %s2936_s4, 0 }
   0x5   : > { %s4535_s5 = smov (%p33_p0, %s31_s5), 0  ;;  %s266_s27 = sshll.u32 %s4410_s3, 4  ;;  %s267_s27 = int_to_ptr.hbm [resolvable:$true] %s266_s27 }
   0x6   : > { %p256_p3 = pnand %p2938_p1, %p255_p2  ;;  %s3614_s28 = smov [#allocation2]  }
   0x7   : > { %s268_s29 = sshll.u32 %s3614_s28, 4  ;;  %s3615_s30 = smov 64   ;;  %s269_s29 = int_to_ptr.vmem [resolvable:$true] %s268_s29 }
   0x8   : > { %p3522_p5 = pneg %p256_p3  ;;  %s3616_s8 = smov 4  }
   0x9   : > { %344 = sbr.rel (%p256_p3) target bundleno = 772 (0x304), region = 44 }
   0xa   : > { %p3523_p6 = pnand %p3526_p4, %p3522_p5 }
   0xc   : > { %3525 = dma.hbm_to_vmem [thread:$0]  (!%p3523_p6), %s267_s27, 9216, %s269_s29, [#allocation3], %s3615_s30, %s3615_s30, %s3616_s8  }
   0xe   : > { %3599 = dma.done.wait (%p3526_p4), [#allocation3], 9216  }
   0xf   : > { %3601 = vsyncadd (%p3526_p4), [#allocation3], 4294958080  ;;  %v3358_v0 = vld [vmem:[#allocation2 + $0xf8] sm:$0xff]  ;;  %p421_p7 = scmp.lt.s32.totalorder %s3604_s1, 1  ;;  %v3357_v1 = vld [vmem:[#allocation2 + $0xf0] sm:$0xff]  ;;  %vm780_vm0 = vcmask 1040384  }
  0x10   : > { %1403 = vmatpush.bf16.msra.mxu0 %v3358_v0  ;;  %3494 = vmatpush.bf16.msra.mxu1 %v3358_v0  ;;  %v3356_v2 = vld [vmem:[#allocation2 + $0xe8] sm:$0xff]  ;;  %v3355_v3 = vld [vmem:[#allocation2 + $0xe0] sm:$0xff]  ;;  %v3354_v4 = vld [vmem:[#allocation2 + $0xd8] sm:$0xff]  ;;  %vm781_vm1 = vsmask.f32 256  ;;  %vm1090_vm4 = vcmask 1046528  }
  0x11   : > { %3495 = vmatpush.bf16.msra.mxu2 %v3358_v0  ;;  %3496 = vmatpush.bf16.msra.mxu3 %v3358_v0  ;;  %s4537_s1 = smov (!%p421_p7, %s3604_s1), 1  ;;  %v3353_v9 = vld [vmem:[#allocation2 + $0xd0] sm:$0xff]  ;;  %v3352_v14 = vld [vmem:[#allocation2 + $0xc8] sm:$0xff]  ;;  %v3351_v23 = vld [vmem:[#allocation2 + $0xc0] sm:$0xff]  ;;  %vm819_vm3 = vsmask.f32 7424 }
  0x12   : > { %s3306_s9 = sshll.u32 %s4537_s1, 7  ;;  %vm3709_vm2 = vmand %vm780_vm0, %vm781_vm1  ;;  %v3374_v29 = vld [vmem:[#allocation2 + $0x178] sm:$0xff]  ;;  %v3373_v41 = vld [vmem:[#allocation2 + $0x170] sm:$0xff]  ;;  %s2951_s16 = sshll.u32 %s4537_s1, 1 }
  0x13   : > { %s3692_s12 = scalar_lea.vmem %s4407_s0, %s3306_s9  ;;  %v3334_v30 = vld [vmem:[#allocation2 + $0x38] sm:$0xff]  ;;  %v3333_v42 = vld [vmem:[#allocation2 + $0x30] sm:$0xff]  ;;  %v3372_v49 = vld [vmem:[#allocation2 + $0x168] sm:$0xff]  ;;  %s4321_s15 = scalar_lea.vmem %s4413_s6, %s3306_s9 }
  0x14   : > { %1404 = vmatpush.bf16.msra.mxu0 %v3357_v1  ;;  %3497 = vmatpush.bf16.msra.mxu1 %v3357_v1  ;;  %v3311_v5 = vld [vmem:[%s3692_s12] sm:$0xff]  ;;  %v3366_v33 = vld [vmem:[#allocation2 + $0x138] sm:$0xff]  ;;  %v3312_v34 = vld [vmem:[%s3692_s12 + $0x8] sm:$0xff]  ;;  %s482_s19 = scalar_lea.vmem %s4414_s7, %s2951_s16 }
  0x15   : > { %3498 = vmatpush.bf16.msra.mxu2 %v3357_v1  ;;  %3499 = vmatpush.bf16.msra.mxu3 %v3357_v1  ;;  %v3315_v6 = vld [vmem:[%s3692_s12 + $0x20] sm:$0xff]  ;;  %v626_v10 = vshrl.u32 %v3311_v5, 16  ;;  %v629_v16 = vshll.u32 %v3311_v5, 16  ;;  %v3316_v35 = vld [vmem:[%s3692_s12 + $0x28] sm:$0xff]  ;;  %v3342_v38 = vld [vmem:[#allocation2 + $0x78] sm:$0xff]  ;;  %v633_v43 = vshrl.u32 %v3312_v34, 16 }
  0x16   : > { %v3319_v7 = vld [vmem:[%s3692_s12 + $0x40] sm:$0xff]  ;;  %v654_v11 = vshrl.u32 %v3315_v6, 16  ;;  %v657_v18 = vshll.u32 %v3315_v6, 16  ;;  %v3320_v39 = vld [vmem:[%s3692_s12 + $0x48] sm:$0xff]  ;;  %v661_v44 = vshrl.u32 %v3316_v35, 16  ;;  %v3365_v47 = vld [vmem:[#allocation2 + $0x130] sm:$0xff] }
  0x17   : > { %v3323_v8 = vld [vmem:[%s3692_s12 + $0x60] sm:$0xff]  ;;  %v682_v12 = vshrl.u32 %v3319_v7, 16  ;;  %v3698_v15 = vrot.slane %v626_v10, 7  ;;  %v685_v20 = vshll.u32 %v3319_v7, 16  ;;  %v3324_v40 = vld [vmem:[%s3692_s12 + $0x68] sm:$0xff]  ;;  %v689_v45 = vshrl.u32 %v3320_v39, 16 }
  0x18   : > { %1405 = vmatpush.bf16.msra.mxu0 %v3356_v2  ;;  %3500 = vmatpush.bf16.msra.mxu1 %v3356_v2  ;;  %v710_v13 = vshrl.u32 %v3323_v8, 16  ;;  %v3700_v17 = vrot.slane %v654_v11, 7  ;;  %v713_v22 = vshll.u32 %v3323_v8, 16  ;;  %v717_v46 = vshrl.u32 %v3324_v40, 16  ;;  %v3341_v48 = vld [vmem:[#allocation2 + $0x70] sm:$0xff]  ;;  %v3332_v50 = vld [vmem:[#allocation2 + $0x28] sm:$0xff] }
  0x19   : > { %3501 = vmatpush.bf16.msra.mxu2 %v3356_v2  ;;  %3502 = vmatpush.bf16.msra.mxu3 %v3356_v2  ;;  %v3702_v19 = vrot.slane %v682_v12, 7  ;;  %v631_v24 = vor.u32 %v629_v16, %v3698_v15  ;;  %v3739_v51 = vrot.slane %v633_v43, 7  ;;  %v636_v52 = vshll.u32 %v3312_v34, 16  ;;  %v3364_v59 = vld [vmem:[#allocation2 + $0x128] sm:$0xff]  ;;  %v3371_v61 = vld [vmem:[#allocation2 + $0x160] sm:$0xff]  ;;  %v3370_v5 = vld [vmem:[#allocation2 + $0x158] sm:$0xff] }
  0x1a   : > { %v3704_v21 = vrot.slane %v710_v13, 7  ;;  %v659_v25 = vor.u32 %v657_v18, %v3700_v17  ;;  %v3741_v53 = vrot.slane %v661_v44, 7  ;;  %v664_v54 = vshll.u32 %v3316_v35, 16  ;;  %v3340_v60 = vld [vmem:[#allocation2 + $0x68] sm:$0xff]  ;;  %v3331_v62 = vld [vmem:[#allocation2 + $0x20] sm:$0xff]  ;;  %v3330_v6 = vld [vmem:[#allocation2 + $0x18] sm:$0xff] }
  0x1b   : > { %v687_v27 = vor.u32 %v685_v20, %v3702_v19  ;;  %v3717_v31 = vsel %vm3709_vm2, 0, %v631_v24  ;;  %v3743_v55 = vrot.slane %v689_v45, 7  ;;  %v692_v56 = vshll.u32 %v3320_v39, 16  ;;  %v3317_v10 = vld [vmem:[%s3692_s12 + $0x30] sm:$0xff]  ;;  %v3362_v16 = vld [vmem:[#allocation2 + $0x118] sm:$0xff]  ;;  %v3360_v44 = vld [vmem:[#allocation2 + $0x108] sm:$0xff] }
  0x1c   : > { %1406 = vmatpush.bf16.msra.mxu0 %v3355_v3  ;;  %3503 = vmatpush.bf16.msra.mxu1 %v3355_v3  ;;  %v715_v28 = vor.u32 %v713_v22, %v3704_v21  ;;  %v3721_v32 = vsel %vm3709_vm2, 0, %v659_v25  ;;  %v3745_v57 = vrot.slane %v717_v46, 7  ;;  %v720_v58 = vshll.u32 %v3324_v40, 16  ;;  %v3321_v11 = vld [vmem:[%s3692_s12 + $0x50] sm:$0xff]  ;;  %v3338_v18 = vld [vmem:[#allocation2 + $0x58] sm:$0xff]  ;;  %v3336_v45 = vld [vmem:[#allocation2 + $0x48] sm:$0xff] }
  0x1d   : > { %3504 = vmatpush.bf16.msra.mxu2 %v3355_v3  ;;  %3505 = vmatpush.bf16.msra.mxu3 %v3355_v3  ;;  %4442 = vst [vmem:[#allocation5_spill] sm:$0xff] %v3721_v32  ;;  %v3727_v36 = vsel %vm3709_vm2, 0, %v687_v27  ;;  %v638_v63 = vor.u32 %v636_v52, %v3739_v51  ;;  %v666_v0 = vor.u32 %v664_v54, %v3741_v53  ;;  %v3363_v3 = vld [vmem:[#allocation2 + $0x120] sm:$0xff]  ;;  %v3369_v20 = vld [vmem:[#allocation2 + $0x150] sm:$0xff]  ;;  %v668_v24 = vshrl.u32 %v3317_v10, 16 }
  0x1e   : > { %v3731_v37 = vsel %vm3709_vm2, 0, %v715_v28  ;;  %v694_v1 = vor.u32 %v692_v56, %v3743_v55  ;;  %v722_v2 = vor.u32 %v720_v58, %v3745_v57  ;;  %v3329_v22 = vld [vmem:[#allocation2 + $0x10] sm:$0xff]  ;;  %v696_v25 = vshrl.u32 %v3321_v11, 16  ;;  %v3367_v46 = vld [vmem:[#allocation2 + $0x140] sm:$0xff] }
  0x1f   : > { %v3753_v7 = vsel %vm3709_vm2, 0, %v638_v63  ;;  %v3757_v8 = vsel %vm3709_vm2, 0, %v666_v0  ;;  %v3361_v28 = vld [vmem:[#allocation2 + $0x110] sm:$0xff]  ;;  %v671_v39 = vshll.u32 %v3317_v10, 16  ;;  %v3359_v54 = vld [vmem:[#allocation2 + $0x100] sm:$0xff]  ;;  %v3617_v58 = vmov 0  }
  0x20   : > { %1407 = vmatpush.bf16.msra.mxu0 %v3354_v4  ;;  %3506 = vmatpush.bf16.msra.mxu1 %v3354_v4  ;;  %4443 = vst [vmem:[#allocation6_spill] sm:$0xff] %v3757_v8  ;;  %v3764_v12 = vsel %vm3709_vm2, 0, %v694_v1  ;;  %v3768_v13 = vsel %vm3709_vm2, 0, %v722_v2  ;;  %v3779_v40 = vrot.slane %v696_v25, 7  ;;  %v3335_v56 = vld [vmem:[#allocation2 + $0x40] sm:$0xff]  ;;  %v3318_v63 = vld [vmem:[%s3692_s12 + $0x38] sm:$0xff] }
  0x21   : > { %3507 = vmatpush.bf16.msra.mxu2 %v3354_v4  ;;  %3508 = vmatpush.bf16.msra.mxu3 %v3354_v4  ;;  %v3339_v4 = vld [vmem:[#allocation2 + $0x60] sm:$0xff]  ;;  %v3322_v0 = vld [vmem:[%s3692_s12 + $0x58] sm:$0xff]  ;;  %v678_v25 = vshll.u32 %v3318_v63, 16 }
  0x22   : > { %v3382_v10 = vld [vmem:[#allocation2 + $0x1b8] sm:$0xff] }
  0x24   : > { %1408 = vmatpush.bf16.msra.mxu0 %v3353_v9  ;;  %3509 = vmatpush.bf16.msra.mxu1 %v3353_v9 }
  0x25   : > { %3510 = vmatpush.bf16.msra.mxu2 %v3353_v9  ;;  %3511 = vmatpush.bf16.msra.mxu3 %v3353_v9  ;;  %v3313_v9 = vld [vmem:[%s3692_s12 + $0x10] sm:$0xff] }
  0x26   : > { %v643_v35 = vshll.u32 %v3313_v9, 16 }
  0x28   : > { %1409 = vmatpush.bf16.msra.mxu0 %v3352_v14  ;;  %3512 = vmatpush.bf16.msra.mxu1 %v3352_v14 }
  0x29   : > { %3513 = vmatpush.bf16.msra.mxu2 %v3352_v14  ;;  %3514 = vmatpush.bf16.msra.mxu3 %v3352_v14  ;;  %v3325_v14 = vld [vmem:[%s3692_s12 + $0x70] sm:$0xff] }
  0x2a   : > { %v724_v27 = vshrl.u32 %v3325_v14, 16  ;;  %v727_v43 = vshll.u32 %v3325_v14, 16  ;;  %v3350_v14 = vld [vmem:[#allocation2 + $0xb8] sm:$0xff] }
  0x2c   : > { %1410 = vmatpush.bf16.msra.mxu0 %v3351_v23  ;;  %3515 = vmatpush.bf16.msra.mxu1 %v3351_v23 }
  0x2d   : > { %3516 = vmatpush.bf16.msra.mxu2 %v3351_v23  ;;  %3517 = vmatpush.bf16.msra.mxu3 %v3351_v23  ;;  %v640_v23 = vshrl.u32 %v3313_v9, 16  ;;  %v703_v9 = vshrl.u32 %v3322_v0, 16 }
  0x2f   : > { %1411 = vmatmul.bf16.vlgmr.msra.gmra.mxu0 %v3717_v31  ;;  %1431 = vmatmul.bf16.vlgmr.msra.gmra.mxu1 %v3721_v32  ;;  %v3775_v34 = vrot.slane %v640_v23, 7 }
  0x30   : > { %1451 = vmatmul.bf16.vlgmr.msra.gmra.mxu2 %v3727_v36  ;;  %1471 = vmatmul.bf16.vlgmr.msra.gmra.mxu3 %v3731_v37 }
  0x31   : > { %1581 = vmatpush.bf16.msrb.mxu2 %v3374_v29  ;;  %1814 = vmatpush.bf16.msrb.mxu3 %v3334_v30  ;;  %v3337_v29 = vld [vmem:[#allocation2 + $0x50] sm:$0xff]  ;;  %v3368_v30 = vld [vmem:[#allocation2 + $0x148] sm:$0xff] }
  0x32   : > { %1492 = vmatpush.bf16.msrb.mxu1 %v3366_v33  ;;  %1903 = vmatpush.bf16.msrb.mxu0 %v3342_v38  ;;  %v3328_v33 = vld [vmem:[#allocation2 + $0x8] sm:$0xff]  ;;  %v3777_v38 = vrot.slane %v668_v24, 7 }
  0x35   : > { %1582 = vmatpush.bf16.msrb.mxu2 %v3373_v41  ;;  %1815 = vmatpush.bf16.msrb.mxu3 %v3333_v42  ;;  %v699_v41 = vshll.u32 %v3321_v11, 16  ;;  %v3781_v42 = vrot.slane %v724_v27, 7  ;;  %v3390_v11 = vld [vmem:[#allocation2 + $0x1f8] sm:$0xff]  ;;  %v3815_v27 = vrot.slane %v703_v9, 7 }
  0x36   : > { %1493 = vmatpush.bf16.msrb.mxu1 %v3365_v47  ;;  %1904 = vmatpush.bf16.msrb.mxu0 %v3341_v48  ;;  %v3327_v47 = vld [vmem:[#allocation2] sm:$0xff]  ;;  %v645_v48 = vor.u32 %v643_v35, %v3775_v34 }
  0x37   : > { %v729_v52 = vor.u32 %v727_v43, %v3781_v42 }
  0x39   : > { %1583 = vmatpush.bf16.msrb.mxu2 %v3372_v49  ;;  %1816 = vmatpush.bf16.msrb.mxu3 %v3332_v50  ;;  %v673_v49 = vor.u32 %v671_v39, %v3777_v38  ;;  %v701_v50 = vor.u32 %v699_v41, %v3779_v40  ;;  %v3804_v2 = vsel %vm3709_vm2, 0, %v729_v52  ;;  %v802_v52 = vsel %vm3709_vm2, %v3698_v15, 0 }
  0x3a   : > { %1494 = vmatpush.bf16.msrb.mxu1 %v3364_v59  ;;  %1905 = vmatpush.bf16.msrb.mxu0 %v3340_v60  ;;  %v564_v59 = vunpack.c.l.b16 %v3617_v58  ;;  %v3314_v60 = vld [vmem:[%s3692_s12 + $0x18] sm:$0xff] }
  0x3b   : > { %v3800_v1 = vsel %vm3709_vm2, 0, %v701_v50  ;;  %v650_v23 = vshll.u32 %v3314_v60, 16 }
  0x3d   : > { %1584 = vmatpush.bf16.msrb.mxu2 %v3371_v61  ;;  %1817 = vmatpush.bf16.msrb.mxu3 %v3331_v62  ;;  %v3790_v61 = vsel %vm3709_vm2, 0, %v645_v48  ;;  %v3794_v62 = vsel %vm3709_vm2, 0, %v673_v49 }
  0x3e   : > { %1495 = vmatpush.bf16.msrb.mxu1 %v3363_v3  ;;  %1906 = vmatpush.bf16.msrb.mxu0 %v3339_v4  ;;  %4444 = vst [vmem:[#allocation7_spill] sm:$0xff] %v3790_v61  ;;  %v3326_v3 = vld [vmem:[%s3692_s12 + $0x78] sm:$0xff]  ;;  %v600_v4 = vpack.c.b16 %v564_v59, %v564_v59  ;;  %v833_v59 = vshrl.u32 %v3717_v31, 16 }
  0x3f   : > { %1416 = vmatmul.bf16.gmra.mxu0 %v3753_v7  ;;  %1436 = vmatmul.bf16.gmra.mxu1 %v3757_v8  ;;  %4445 = vst [vmem:[#allocation8_spill] sm:$0xff] %v3794_v62 }
  0x40   : > { %1456 = vmatmul.bf16.gmra.mxu2 %v3764_v12  ;;  %1476 = vmatmul.bf16.gmra.mxu3 %v3768_v13  ;;  %v622_v35 = vshll.u32 %v600_v4, 16 }
  0x41   : > { %1585 = vmatpush.bf16.msrb.mxu2 %v3370_v5  ;;  %1818 = vmatpush.bf16.msrb.mxu3 %v3330_v6  ;;  %v647_v5 = vshrl.u32 %v3314_v60, 16  ;;  %v675_v6 = vshrl.u32 %v3318_v63, 16  ;;  %v840_v60 = vshll.u32 %v802_v52, 16 }
  0x42   : > { %1496 = vmatpush.bf16.msrb.mxu1 %v3362_v16  ;;  %1907 = vmatpush.bf16.msrb.mxu0 %v3338_v18  ;;  %v731_v16 = vshrl.u32 %v3326_v3, 16  ;;  %v619_v18 = vshrl.u32 %v600_v4, 16 }
  0x43   : > { %v3813_v24 = vrot.slane %v675_v6, 7  ;;  %v842_v6 = vrot.slane %v840_v60, 1  ;;  %v857_v60 = vshrl.u32 %v3790_v61, 16 }
  0x45   : > { %1586 = vmatpush.bf16.msrb.mxu2 %v3369_v20  ;;  %1819 = vmatpush.bf16.msrb.mxu3 %v3329_v22  ;;  %v3398_v20 = vld [vmem:[#allocation2 + $0x238] sm:$0xff]  ;;  %v3811_v22 = vrot.slane %v647_v5, 7  ;;  %v680_v41 = vor.u32 %v678_v25, %v3813_v24  ;;  %v3389_v25 = vld [vmem:[#allocation2 + $0x1f0] sm:$0xff] }
  0x46   : > { %1497 = vmatpush.bf16.msrb.mxu1 %v3361_v28  ;;  %1908 = vmatpush.bf16.msrb.mxu0 %v3337_v29  ;;  %v706_v28 = vshll.u32 %v3322_v0, 16  ;;  %v3817_v29 = vrot.slane %v731_v16, 7 }
  0x47   : > { %v652_v39 = vor.u32 %v650_v23, %v3811_v22  ;;  %v3381_v23 = vld [vmem:[#allocation2 + $0x1b0] sm:$0xff] }
  0x48   : > { %v708_v43 = vor.u32 %v706_v28, %v3815_v27  ;;  %v3349_v28 = vld [vmem:[#allocation2 + $0xb0] sm:$0xff] }
  0x49   : > { %1587 = vmatpush.bf16.msrb.mxu2 %v3368_v30  ;;  %1820 = vmatpush.bf16.msrb.mxu3 %v3328_v33  ;;  %v734_v30 = vshll.u32 %v3326_v3, 16  ;;  %v621_v33 = vrot.slane %v619_v18, 7 }
  0x4a   : > { %1498 = vmatpush.bf16.msrb.mxu1 %v3360_v44  ;;  %1909 = vmatpush.bf16.msrb.mxu0 %v3336_v45  ;;  %v3833_v48 = vsel %vm3709_vm2, 0, %v708_v43 }
  0x4b   : > { %v736_v44 = vor.u32 %v734_v30, %v3817_v29  ;;  %v624_v45 = vor.u32 %v622_v35, %v621_v33  ;;  %v3854_v58 = vsel %vm3709_vm2, %v621_v33, 0  ;;  %v803_v30 = vsel %vm3709_vm2, %v3739_v51, 0  ;;  %v3397_v33 = vld [vmem:[#allocation2 + $0x230] sm:$0xff] }
  0x4c   : > { %v828_v4 = vshll.u32 %v3854_v58, 16  ;;  %v845_v35 = vshrl.u32 %v3753_v7, 16  ;;  %v859_v51 = vshll.u32 %v3790_v61, 16 }
  0x4d   : > { %1588 = vmatpush.bf16.msrb.mxu2 %v3367_v46  ;;  %1821 = vmatpush.bf16.msrb.mxu3 %v3327_v47  ;;  %v3825_v46 = vsel %vm3709_vm2, 0, %v652_v39  ;;  %v3829_v47 = vsel %vm3709_vm2, 0, %v680_v41  ;;  %v3837_v49 = vsel %vm3709_vm2, 0, %v736_v44  ;;  %v3841_v50 = vsel %vm3709_vm2, 0, %v624_v45 }
  0x4e   : > { %1499 = vmatpush.bf16.msrb.mxu1 %v3359_v54  ;;  %1910 = vmatpush.bf16.msrb.mxu0 %v3335_v56  ;;  %4446 = vst [vmem:[#allocation9_spill] sm:$0xff] %v3825_v46  ;;  %v835_v54 = vshll.u32 %v3717_v31, 16  ;;  %v823_v56 = vshll.u32 %v3841_v50, 16  ;;  %v821_v0 = vshrl.u32 %v3841_v50, 16  ;;  %v830_v9 = vrot.slane %v828_v4, 1 }
  0x4f   : > { %1421 = vmatmul.bf16.gmra.mxu0 %v3790_v61  ;;  %1441 = vmatmul.bf16.gmra.mxu1 %v3794_v62  ;;  %4447 = vst [vmem:[#allocation10_spill] sm:$0xff] %v3829_v47  ;;  %v852_v41 = vshll.u32 %v803_v30, 16  ;;  %v1097_v45 = vrot.slane %v3753_v7, 1 }
  0x50   : > { %1461 = vmatmul.bf16.gmra.mxu2 %v3800_v1  ;;  %1481 = vmatmul.bf16.gmra.mxu3 %v3804_v2  ;;  %v837_v63 = vrot.slane %v835_v54, 1  ;;  %v825_v3 = vrot.slane %v823_v56, 1 }
  0x51   : > { %2273 = vmatpush.bf16.msra.mxu2 %v3382_v10  ;;  %2362 = vmatpush.bf16.msra.mxu3 %v3390_v11  ;;  %v1094_v10 = vrot.slane %v3717_v31, 1  ;;  %v1095_v11 = vrot.slane %v802_v52, 1  ;;  %v854_v44 = vrot.slane %v852_v41, 1  ;;  %v1098_v52 = vrot.slane %v803_v30, 1 }
  0x52   : > { %1992 = vmatpush.bf16.msra.mxu1 %v3350_v14  ;;  %2451 = vmatpush.bf16.msra.mxu0 %v3398_v20  ;;  %v838_v5 = vor.u32 %v837_v63, %v833_v59  ;;  %v826_v15 = vor.u32 %v825_v3, %v821_v0  ;;  %v847_v20 = vshll.u32 %v3753_v7, 16  ;;  %v804_v59 = vsel %vm3709_vm2, %v3775_v34, 0 }
  0x53   : > { %v3865_v18 = vsel %vm1090_vm4, %v1094_v10, %v1095_v11  ;;  %v3880_v56 = vsel %vm1090_vm4, %v1097_v45, %v1098_v52  ;;  %v861_v63 = vrot.slane %v859_v51, 1  ;;  %v864_v0 = vshll.u32 %v804_v59, 16  ;;  %v3388_v10 = vld [vmem:[#allocation2 + $0x1e8] sm:$0xff] }
  0x54   : > { %v843_v14 = vsel %vm819_vm3, %v838_v5, %v842_v6  ;;  %v3862_v16 = vsel %vm819_vm3, %v826_v15, %v830_v9  ;;  %v849_v39 = vrot.slane %v847_v20, 1  ;;  %v1100_v5 = vrot.slane %v3790_v61, 1  ;;  %v3380_v9 = vld [vmem:[#allocation2 + $0x1a8] sm:$0xff] }
  0x55   : > { %4448 = vst [vmem:[#allocation11_spill] sm:$0xff] %v3862_v16  ;;  %2274 = vmatpush.bf16.msra.mxu2 %v3381_v23  ;;  %2363 = vmatpush.bf16.msra.mxu3 %v3389_v25  ;;  %v862_v3 = vor.u32 %v861_v63, %v857_v60  ;;  %v866_v4 = vrot.slane %v864_v0, 1  ;;  %v1101_v6 = vrot.slane %v804_v59, 1  ;;  %v871_v34 = vshll.u32 %v3825_v46, 16  ;;  %v3348_v25 = vld [vmem:[#allocation2 + $0xa8] sm:$0xff] }
  0x56   : > { %1993 = vmatpush.bf16.msra.mxu1 %v3349_v28  ;;  %2452 = vmatpush.bf16.msra.mxu0 %v3397_v33  ;;  %v850_v43 = vor.u32 %v849_v39, %v845_v35  ;;  %v805_v11 = vsel %vm3709_vm2, %v3811_v22, 0  ;;  %v3396_v28 = vld [vmem:[#allocation2 + $0x228] sm:$0xff]  ;;  %v1103_v35 = vrot.slane %v3825_v46, 1  ;;  %v881_v45 = vshrl.u32 %v3721_v32, 16 }
  0x57   : > { %v3892_v15 = vsel %vm819_vm3, %v862_v3, %v866_v4  ;;  %v873_v20 = vrot.slane %v871_v34, 1  ;;  %v876_v23 = vshll.u32 %v805_v11, 16  ;;  %v1104_v39 = vrot.slane %v805_v11, 1  ;;  %v3379_v34 = vld [vmem:[#allocation2 + $0x1a0] sm:$0xff] }
  0x58   : > { %v3877_v54 = vsel %vm819_vm3, %v850_v43, %v854_v44  ;;  %4449 = vst [vmem:[#allocation12_spill] sm:$0xff] %v3892_v15  ;;  %v883_v43 = vshll.u32 %v3721_v32, 16  ;;  %v806_v44 = vsel %vm3709_vm2, %v3700_v17, 0  ;;  %v1106_v63 = vrot.slane %v3721_v32, 1 }
  0x59   : > { %2275 = vmatpush.bf16.msra.mxu2 %v3380_v9  ;;  %2364 = vmatpush.bf16.msra.mxu3 %v3388_v10  ;;  %v878_v33 = vrot.slane %v876_v23, 1  ;;  %v3911_v22 = vsel %vm1090_vm4, %v1103_v35, %v1104_v39  ;;  %v888_v51 = vshll.u32 %v806_v44, 16  ;;  %v1107_v0 = vrot.slane %v806_v44, 1  ;;  %v3387_v9 = vld [vmem:[#allocation2 + $0x1e0] sm:$0xff] }
  0x5a   : > { %1994 = vmatpush.bf16.msra.mxu1 %v3348_v25  ;;  %2453 = vmatpush.bf16.msra.mxu0 %v3396_v28  ;;  %4451 = vst [vmem:[#allocation14_spill] sm:$0xff] %v3911_v22  ;;  %v885_v52 = vrot.slane %v883_v43, 1  ;;  %v895_v17 = vshll.u32 %v3757_v8, 16  ;;  %v807_v10 = vsel %vm3709_vm2, %v3741_v53, 0  ;;  %v893_v25 = vshrl.u32 %v3757_v8, 16  ;;  %v3395_v35 = vld [vmem:[#allocation2 + $0x220] sm:$0xff] }
  0x5b   : > { %v890_v60 = vrot.slane %v888_v51, 1  ;;  %v1109_v43 = vrot.slane %v3757_v8, 1  ;;  %v1110_v44 = vrot.slane %v807_v10, 1 }
  0x5c   : > { %v886_v59 = vor.u32 %v885_v52, %v881_v45  ;;  %v897_v28 = vrot.slane %v895_v17, 1  ;;  %v808_v17 = vsel %vm3709_vm2, %v3777_v38, 0 }
  0x5d   : > { %2276 = vmatpush.bf16.msra.mxu2 %v3379_v34  ;;  %2365 = vmatpush.bf16.msra.mxu3 %v3387_v9 }
  0x5e   : > { %2454 = vmatpush.bf16.msra.mxu0 %v3395_v35  ;;  %v898_v39 = vor.u32 %v897_v28, %v893_v25  ;;  %v905_v28 = vshrl.u32 %v3794_v62, 16 }
  0x5f   : > { %1426 = vmatmul.bf16.gmra.mxu0 %v3825_v46  ;;  %1446 = vmatmul.bf16.gmra.mxu1 %v3829_v47 }
  0x60   : > { %1466 = vmatmul.bf16.gmra.mxu2 %v3833_v48  ;;  %1486 = vmatmul.bf16.gmra.mxu3 %v3837_v49 }
  0x6f   : > { %1500 = vmatmul.bf16.vlgmr.msrb.gmra.mxu1 %v843_v14  ;;  %1911 = vmatmul.bf16.vlgmr.msrb.gmra.mxu0 %v3862_v16 }
  0x70   : > { %1589 = vmatmul.bf16.vlgmr.msrb.gmra.mxu2 %v3865_v18  ;;  %1822 = vmatmul.bf16.vlgmr.msrb.gmra.mxu3 %v3841_v50 }
  0x7f   : > { %1505 = vmatmul.bf16.gmra.mxu1 %v3877_v54  ;;  %1916 = vmatmul.bf16.gmra.mxu0 %v843_v14  ;;  %v869_v14 = vshrl.u32 %v3825_v46, 16 }
  0x80   : > { %1594 = vmatmul.bf16.gmra.mxu2 %v3880_v56  ;;  %1827 = vmatmul.bf16.gmra.mxu3 %v3717_v31  ;;  %v3895_v31 = vsel %vm1090_vm4, %v1100_v5, %v1101_v6  ;;  %v3928_v5 = vsel %vm819_vm3, %v886_v59, %v890_v60  ;;  %v3931_v6 = vsel %vm1090_vm4, %v1106_v63, %v1107_v0  ;;  %v907_v0 = vshll.u32 %v3794_v62, 16 }
  0x81   : > { %v874_v30 = vor.u32 %v873_v20, %v869_v14  ;;  %4452 = vst [vmem:[#allocation15_spill] sm:$0xff] %v3928_v5  ;;  %v3963_v63 = vsel %vm1090_vm4, %v1109_v43, %v1110_v44  ;;  %v1113_v43 = vrot.slane %v808_v17, 1 }
  0x82   : > { %4453 = vst [vmem:[#allocation16_spill] sm:$0xff] %v3931_v6 }
  0x83   : > { %v3908_v41 = vsel %vm819_vm3, %v874_v30, %v878_v33  ;;  %v900_v30 = vshll.u32 %v807_v10, 16  ;;  %v3347_v33 = vld [vmem:[#allocation2 + $0xa0] sm:$0xff]  ;;  %4457 = vst [vmem:[#allocation20_spill] sm:$0xff] %v3963_v63 }
  0x84   : > { %4450 = vst [vmem:[#allocation13_spill] sm:$0xff] %v3908_v41  ;;  %1995 = vmatpush.bf16.msra.mxu1 %v3347_v33  ;;  %v912_v33 = vshll.u32 %v808_v17, 16  ;;  %v3378_v17 = vld [vmem:[#allocation2 + $0x198] sm:$0xff] }
  0x85   : > { %v902_v53 = vrot.slane %v900_v30, 1  ;;  %v909_v30 = vrot.slane %v907_v0, 1  ;;  %v919_v0 = vshll.u32 %v3829_v47, 16  ;;  %2277 = vmatpush.bf16.msra.mxu2 %v3378_v17 }
  0x87   : > { %v3960_v60 = vsel %vm819_vm3, %v898_v39, %v902_v53  ;;  %v910_v35 = vor.u32 %v909_v30, %v905_v28  ;;  %v914_v39 = vrot.slane %v912_v33, 1  ;;  %v1112_v53 = vrot.slane %v3794_v62, 1  ;;  %v3386_v28 = vld [vmem:[#allocation2 + $0x1d8] sm:$0xff] }
  0x88   : > { %4456 = vst [vmem:[#allocation19_spill] sm:$0xff] %v3960_v60  ;;  %v809_v30 = vsel %vm3709_vm2, %v3813_v24, 0  ;;  %2366 = vmatpush.bf16.msra.mxu3 %v3386_v28  ;;  %v1115_v24 = vrot.slane %v3829_v47, 1 }
  0x89   : > { %v1116_v17 = vrot.slane %v809_v30, 1 }
  0x8f   : > { %1510 = vmatmul.bf16.gmra.mxu1 %v3892_v15  ;;  %1921 = vmatmul.bf16.gmra.mxu0 %v3877_v54 }
  0x90   : > { %1599 = vmatmul.bf16.gmra.mxu2 %v3895_v31  ;;  %1832 = vmatmul.bf16.gmra.mxu3 %v3753_v7 }
  0x9f   : > { %1515 = vmatmul.bf16.gmra.mxu1 %v3908_v41  ;;  %1926 = vmatmul.bf16.gmra.mxu0 %v3892_v15 }
  0xa0   : > { %1604 = vmatmul.bf16.gmra.mxu2 %v3911_v22  ;;  %1837 = vmatmul.bf16.gmra.mxu3 %v3790_v61 }
  0xac   : > { %v3923_v3 = vpop.f32.mrf.mxu0  ;;  %v3925_v4 = vpop.f32.mrf.mxu1 }
  0xaf   : > { %1520 = vmatmul.bf16.gmra.mxu1 %v3928_v5  ;;  %1931 = vmatmul.bf16.gmra.mxu0 %v3908_v41 }
  0xb0   : > { %1609 = vmatmul.bf16.gmra.mxu2 %v3931_v6  ;;  %1842 = vmatmul.bf16.gmra.mxu3 %v3825_v46 }
  0xb3   : > { %v3941_v11 = vpop.f32.mrf.mxu2  ;;  %v3943_v14 = vpop.f32.mrf.mxu3 }
  0xb4   : > { %4454 = vst [vmem:[#allocation17_spill] sm:$0xff] %v3943_v14  ;;  %v3945_v20 = vpop.f32.mrf.mxu0  ;;  %v3947_v23 = vpop.f32.mrf.mxu1  ;;  %v3995_v14 = vsel %vm1090_vm4, %v1112_v53, %v1113_v43  ;;  %v917_v43 = vshrl.u32 %v3829_v47, 16 }
  0xb5   : > { %4463 = vst [vmem:[#allocation26_spill] sm:$0xff] %v3995_v14 }
  0xbb   : > { %v3951_v45 = vpop.f32.mrf.mxu2  ;;  %v3953_v52 = vpop.f32.mrf.mxu3 }
  0xbc   : > { %4455 = vst [vmem:[#allocation18_spill] sm:$0xff] %v3953_v52  ;;  %v3955_v51 = vpop.f32.mrf.mxu0  ;;  %v3957_v59 = vpop.f32.mrf.mxu1  ;;  %v3992_v52 = vsel %vm819_vm3, %v910_v35, %v914_v39 }
  0xbd   : > { %4462 = vst [vmem:[#allocation25_spill] sm:$0xff] %v3992_v52 }
  0xbf   : > { %1525 = vmatmul.bf16.gmra.mxu1 %v3960_v60  ;;  %1936 = vmatmul.bf16.gmra.mxu0 %v3928_v5 }
  0xc0   : > { %1614 = vmatmul.bf16.gmra.mxu2 %v3963_v63  ;;  %1847 = vmatmul.bf16.gmra.mxu3 %v3721_v32 }
  0xc3   : > { %v3973_v34 = vpop.f32.mrf.mxu2  ;;  %v3975_v9 = vpop.f32.mrf.mxu3 }
  0xc4   : > { %4458 = vst [vmem:[#allocation21_spill] sm:$0xff] %v3973_v34  ;;  %v3977_v10 = vpop.f32.mrf.mxu0  ;;  %v3979_v25 = vpop.f32.mrf.mxu1 }
  0xc5   : > { %4459 = vst [vmem:[#allocation22_spill] sm:$0xff] %v3975_v9 }
  0xcb   : > { %v3983_v44 = vpop.f32.mrf.mxu2  ;;  %v3985_v38 = vpop.f32.mrf.mxu3 }
  0xcc   : > { %4460 = vst [vmem:[#allocation23_spill] sm:$0xff] %v3983_v44  ;;  %v3987_v16 = vpop.f32.mrf.mxu0  ;;  %v3989_v9 = vpop.f32.mrf.mxu1 }
  0xcd   : > { %4461 = vst [vmem:[#allocation24_spill] sm:$0xff] %v3985_v38  ;;  %v921_v38 = vrot.slane %v919_v0, 1 }
  0xcf   : > { %1530 = vmatmul.bf16.gmra.mxu1 %v3992_v52  ;;  %1941 = vmatmul.bf16.gmra.mxu0 %v3960_v60  ;;  %v3346_v60 = vld [vmem:[#allocation2 + $0x98] sm:$0xff]  ;;  %v922_v63 = vor.u32 %v921_v38, %v917_v43 }
  0xd0   : > { %1619 = vmatmul.bf16.gmra.mxu2 %v3995_v14  ;;  %1852 = vmatmul.bf16.gmra.mxu3 %v3757_v8  ;;  %v924_v14 = vshll.u32 %v809_v30, 16  ;;  %v3394_v8 = vld [vmem:[#allocation2 + $0x218] sm:$0xff]  ;;  %v929_v30 = vshrl.u32 %v3727_v36, 16 }
  0xd1   : > { %1996 = vmatpush.bf16.msra.mxu1 %v3346_v60  ;;  %2455 = vmatpush.bf16.msra.mxu0 %v3394_v8  ;;  %v931_v8 = vshll.u32 %v3727_v36, 16 }
  0xd2   : > { %v926_v5 = vrot.slane %v924_v14, 1  ;;  %v810_v14 = vsel %vm3709_vm2, %v3702_v19, 0 }
  0xd3   : > { %v4005_v33 = vpop.f32.mrf.mxu2  ;;  %v4007_v35 = vpop.f32.mrf.mxu3  ;;  %v933_v43 = vrot.slane %v931_v8, 1  ;;  %v943_v8 = vshll.u32 %v3764_v12, 16 }
  0xd4   : > { %4464 = vst [vmem:[#allocation27_spill] sm:$0xff] %v4005_v33  ;;  %v4009_v39 = vpop.f32.mrf.mxu0  ;;  %v4011_v53 = vpop.f32.mrf.mxu1  ;;  %v4024_v0 = vsel %vm819_vm3, %v922_v63, %v926_v5  ;;  %v4027_v33 = vsel %vm1090_vm4, %v1115_v24, %v1116_v17  ;;  %v936_v24 = vshll.u32 %v810_v14, 16 }
  0xd5   : > { %4465 = vst [vmem:[#allocation28_spill] sm:$0xff] %v4007_v35  ;;  %v934_v17 = vor.u32 %v933_v43, %v929_v30  ;;  %v3385_v30 = vld [vmem:[#allocation2 + $0x1d0] sm:$0xff] }
  0xd6   : > { %4468 = vst [vmem:[#allocation31_spill] sm:$0xff] %v4024_v0  ;;  %2367 = vmatpush.bf16.msra.mxu3 %v3385_v30 }
  0xd7   : > { %4469 = vst [vmem:[#allocation32_spill] sm:$0xff] %v4027_v33 }
  0xdb   : > { %v4015_v28 = vpop.f32.mrf.mxu2  ;;  %v4017_v35 = vpop.f32.mrf.mxu3 }
  0xdc   : > { %4466 = vst [vmem:[#allocation29_spill] sm:$0xff] %v4015_v28  ;;  %v4019_v32 = vpop.f32.mrf.mxu0  ;;  %v4021_v6 = vpop.f32.mrf.mxu1 }
  0xdd   : > { %4467 = vst [vmem:[#allocation30_spill] sm:$0xff] %v4017_v35  ;;  %v938_v35 = vrot.slane %v936_v24, 1  ;;  %v941_v24 = vshrl.u32 %v3764_v12, 16 }
  0xdf   : > { %1535 = vmatmul.bf16.gmra.mxu1 %v4024_v0  ;;  %1946 = vmatmul.bf16.gmra.mxu0 %v3992_v52  ;;  %v1119_v52 = vrot.slane %v810_v14, 1  ;;  %v3377_v14 = vld [vmem:[#allocation2 + $0x190] sm:$0xff] }
  0xe0   : > { %1624 = vmatmul.bf16.gmra.mxu2 %v4027_v33  ;;  %1857 = vmatmul.bf16.gmra.mxu3 %v3794_v62  ;;  %v1118_v33 = vrot.slane %v3727_v36, 1 }
  0xe1   : > { %2278 = vmatpush.bf16.msra.mxu2 %v3377_v14  ;;  %v1121_v14 = vrot.slane %v3764_v12, 1 }
  0xe2   : > { %v4056_v46 = vsel %vm1090_vm4, %v1118_v33, %v1119_v52 }
  0xe3   : > { %v4037_v60 = vpop.f32.mrf.mxu2  ;;  %v4039_v5 = vpop.f32.mrf.mxu3  ;;  %4474 = vst [vmem:[#allocation37_spill] sm:$0xff] %v4056_v46 }
  0xe4   : > { %4470 = vst [vmem:[#allocation33_spill] sm:$0xff] %v4037_v60  ;;  %v4041_v63 = vpop.f32.mrf.mxu0  ;;  %v4043_v38 = vpop.f32.mrf.mxu1 }
  0xe5   : > { %4471 = vst [vmem:[#allocation34_spill] sm:$0xff] %v4039_v5  ;;  %v4052_v5 = vsel %vm819_vm3, %v934_v17, %v938_v35  ;;  %v811_v35 = vsel %vm3709_vm2, %v3743_v55, 0  ;;  %v945_v17 = vrot.slane %v943_v8, 1 }
  0xe7   : > { %v946_v22 = vor.u32 %v945_v17, %v941_v24 }
  0xeb   : > { %v4047_v62 = vpop.f32.mrf.mxu2  ;;  %v4049_v19 = vpop.f32.mrf.mxu3 }
  0xec   : > { %4472 = vst [vmem:[#allocation35_spill] sm:$0xff] %v4047_v62  ;;  %v1501_v60 = vpop.f32.mrf.mxu1  ;;  %v1912_v28 = vpop.f32.mrf.mxu0  ;;  %v3393_v62 = vld [vmem:[#allocation2 + $0x210] sm:$0xff] }
  0xed   : > { %4473 = vst [vmem:[#allocation36_spill] sm:$0xff] %v4049_v19  ;;  %v1502_v41 = vadd.f32 %v1501_v60, %v3923_v3  ;;  %v948_v19 = vshll.u32 %v811_v35, 16  ;;  %2456 = vmatpush.bf16.msra.mxu0 %v3393_v62  ;;  %v955_v62 = vshll.u32 %v3800_v1, 16 }
  0xef   : > { %1540 = vmatmul.bf16.gmra.mxu1 %v4052_v5  ;;  %1951 = vmatmul.bf16.gmra.mxu0 %v4024_v0  ;;  %v950_v44 = vrot.slane %v948_v19, 1  ;;  %v957_v19 = vrot.slane %v955_v62, 1 }
  0xf0   : > { %1629 = vmatmul.bf16.gmra.mxu2 %v4056_v46  ;;  %1862 = vmatmul.bf16.gmra.mxu3 %v3829_v47  ;;  %v3345_v47 = vld [vmem:[#allocation2 + $0x90] sm:$0xff] }
  0xf1   : > { %1997 = vmatpush.bf16.msra.mxu1 %v3345_v47  ;;  %v4072_v61 = vsel %vm819_vm3, %v946_v22, %v950_v44 }
  0xf3   : > { %v1590_v3 = vpop.f32.mrf.mxu2  ;;  %v1823_v52 = vpop.f32.mrf.mxu3 }
  0xf4   : > { %v1591_v33 = vadd.f32 %v1590_v3, %v1502_v41  ;;  %v1503_v60 = vpop.f32.mrf.mxu1  ;;  %v1914_v43 = vpop.f32.mrf.mxu0  ;;  %v1122_v41 = vrot.slane %v811_v35, 1 }
  0xf5   : > { %v1504_v46 = vadd.f32 %v1503_v60, %v3945_v20 }
  0xf6   : > { %v1824_v0 = vadd.f32 %v1823_v52, %v1591_v33  ;;  %v4076_v52 = vsel %vm1090_vm4, %v1121_v14, %v1122_v41  ;;  %v1124_v14 = vrot.slane %v3800_v1, 1 }
  0xf8   : > { %v4068_v55 = vadd.f32 %v1912_v28, %v1824_v0  ;;  %v953_v0 = vshrl.u32 %v3800_v1, 16 }
  0xfa   : > { %v958_v24 = vor.u32 %v957_v19, %v953_v0 }
  0xfb   : > { %v1592_v30 = vpop.f32.mrf.mxu2  ;;  %v1825_v3 = vpop.f32.mrf.mxu3 }
  0xfc   : > { %v1593_v34 = vadd.f32 %v1592_v30, %v1504_v46  ;;  %v1506_v15 = vpop.f32.mrf.mxu1  ;;  %v1917_v8 = vpop.f32.mrf.mxu0 }
  0xfd   : > { %v1507_v20 = vadd.f32 %v1506_v15, %v3955_v51  ;;  %v812_v15 = vsel %vm3709_vm2, %v3779_v40, 0 }
  0xfe   : > { %v1826_v47 = vadd.f32 %v1825_v3, %v1593_v34  ;;  %v960_v35 = vshll.u32 %v812_v15, 16  ;;  %v1125_v41 = vrot.slane %v812_v15, 1  ;;  %v3376_v15 = vld [vmem:[#allocation2 + $0x188] sm:$0xff] }
  0xff   : > { %1545 = vmatmul.bf16.gmra.mxu1 %v4072_v61  ;;  %1956 = vmatmul.bf16.gmra.mxu0 %v4052_v5 }
 0x100   : > { %1634 = vmatmul.bf16.gmra.mxu2 %v4076_v52  ;;  %1867 = vmatmul.bf16.gmra.mxu3 %v3727_v36  ;;  %v4083_v46 = vadd.f32 %v1914_v43, %v1826_v47  ;;  %v962_v17 = vrot.slane %v960_v35, 1 }
 0x101   : > { %2279 = vmatpush.bf16.msra.mxu2 %v3376_v15 }
 0x103   : > { %v1595_v22 = vpop.f32.mrf.mxu2  ;;  %v1828_v51 = vpop.f32.mrf.mxu3 }
 0x104   : > { %v1596_v44 = vadd.f32 %v1595_v22, %v1507_v20  ;;  %v1508_v34 = vpop.f32.mrf.mxu1  ;;  %v1919_v28 = vpop.f32.mrf.mxu0  ;;  %v4094_v22 = vsel %vm819_vm3, %v958_v24, %v962_v17  ;;  %v965_v24 = vshrl.u32 %v3833_v48, 16 }
 0x105   : > { %v1509_v33 = vadd.f32 %v1508_v34, %v3977_v10  ;;  %v4098_v10 = vsel %vm1090_vm4, %v1124_v14, %v1125_v41 }
 0x106   : > { %v1829_v60 = vadd.f32 %v1828_v51, %v1596_v44  ;;  %v3384_v44 = vld [vmem:[#allocation2 + $0x1c8] sm:$0xff] }
 0x107   : > { %2368 = vmatpush.bf16.msra.mxu3 %v3384_v44 }
 0x108   : > { %v4090_v43 = vadd.f32 %v1917_v8, %v1829_v60  ;;  %v967_v8 = vshll.u32 %v3833_v48, 16 }
 0x10a   : > { %4475 = vst [vmem:[#allocation38_spill] sm:$0xff] %v4090_v43  ;;  %v969_v17 = vrot.slane %v967_v8, 1 }
 0x10b   : > { %v1597_v40 = vpop.f32.mrf.mxu2  ;;  %v1830_v30 = vpop.f32.mrf.mxu3 }
 0x10c   : > { %v1598_v3 = vadd.f32 %v1597_v40, %v1509_v33  ;;  %v1511_v20 = vpop.f32.mrf.mxu1  ;;  %v1922_v47 = vpop.f32.mrf.mxu0 }
 0x10d   : > { %v1512_v62 = vadd.f32 %v1511_v20, %v3987_v16  ;;  %v813_v16 = vsel %vm3709_vm2, %v3815_v27, 0 }
 0x10e   : > { %v1831_v51 = vadd.f32 %v1830_v30, %v1598_v3  ;;  %v972_v14 = vshll.u32 %v813_v16, 16  ;;  %v3392_v30 = vld [vmem:[#allocation2 + $0x208] sm:$0xff]  ;;  %v970_v3 = vor.u32 %v969_v17, %v965_v24 }
 0x10f   : > { %1550 = vmatmul.bf16.gmra.mxu1 %v4094_v22  ;;  %1961 = vmatmul.bf16.gmra.mxu0 %v4072_v61 }
 0x110   : > { %1639 = vmatmul.bf16.gmra.mxu2 %v4098_v10  ;;  %1872 = vmatmul.bf16.gmra.mxu3 %v3764_v12  ;;  %v4105_v34 = vadd.f32 %v1919_v28, %v1831_v51  ;;  %v3344_v28 = vld [vmem:[#allocation2 + $0x88] sm:$0xff]  ;;  %v974_v20 = vrot.slane %v972_v14, 1  ;;  %v1127_v51 = vrot.slane %v3833_v48, 1 }
 0x111   : > { %1998 = vmatpush.bf16.msra.mxu1 %v3344_v28  ;;  %2457 = vmatpush.bf16.msra.mxu0 %v3392_v30 }
 0x112   : > { %4476 = vst [vmem:[#allocation39_spill] sm:$0xff] %v4105_v34  ;;  %v4116_v43 = vsel %vm819_vm3, %v970_v3, %v974_v20 }
 0x113   : > { %v1600_v0 = vpop.f32.mrf.mxu2  ;;  %v1833_v19 = vpop.f32.mrf.mxu3 }
 0x114   : > { %v1601_v35 = vadd.f32 %v1600_v0, %v1512_v62  ;;  %v1513_v33 = vpop.f32.mrf.mxu1  ;;  %v1924_v60 = vpop.f32.mrf.mxu0  ;;  %v1128_v62 = vrot.slane %v813_v16, 1 }
 0x115   : > { %v1514_v41 = vadd.f32 %v1513_v33, %v4009_v39 }
 0x116   : > { %v1834_v40 = vadd.f32 %v1833_v19, %v1601_v35  ;;  %v4120_v19 = vsel %vm1090_vm4, %v1127_v51, %v1128_v62  ;;  %v1130_v62 = vrot.slane %v3731_v37, 1 }
 0x118   : > { %v4112_v27 = vadd.f32 %v1922_v47, %v1834_v40  ;;  %v979_v47 = vshll.u32 %v3731_v37, 16 }
 0x11a   : > { %v981_v40 = vrot.slane %v979_v47, 1 }
 0x11b   : > { %v1602_v15 = vpop.f32.mrf.mxu2  ;;  %v1835_v44 = vpop.f32.mrf.mxu3 }
 0x11c   : > { %v1603_v0 = vadd.f32 %v1602_v15, %v1514_v41  ;;  %v1516_v34 = vpop.f32.mrf.mxu1  ;;  %v1927_v8 = vpop.f32.mrf.mxu0  ;;  %v977_v41 = vshrl.u32 %v3731_v37, 16 }
 0x11d   : > { %v1517_v39 = vadd.f32 %v1516_v34, %v4019_v32  ;;  %v814_v32 = vsel %vm3709_vm2, %v3704_v21, 0 }
 0x11e   : > { %v1836_v35 = vadd.f32 %v1835_v44, %v1603_v0  ;;  %v984_v28 = vshll.u32 %v814_v32, 16  ;;  %v982_v20 = vor.u32 %v981_v40, %v977_v41  ;;  %v1131_v15 = vrot.slane %v814_v32, 1  ;;  %v3375_v32 = vld [vmem:[#allocation2 + $0x180] sm:$0xff] }
 0x11f   : > { %1555 = vmatmul.bf16.gmra.mxu1 %v4116_v43  ;;  %1966 = vmatmul.bf16.gmra.mxu0 %v4094_v22 }
 0x120   : > { %1644 = vmatmul.bf16.gmra.mxu2 %v4120_v19  ;;  %1877 = vmatmul.bf16.gmra.mxu3 %v3800_v1  ;;  %v4127_v16 = vadd.f32 %v1924_v60, %v1836_v35  ;;  %v986_v51 = vrot.slane %v984_v28, 1  ;;  %v4141_v47 = vsel %vm1090_vm4, %v1130_v62, %v1131_v15 }
 0x121   : > { %2280 = vmatpush.bf16.msra.mxu2 %v3375_v32 }
 0x123   : > { %v1605_v34 = vpop.f32.mrf.mxu2  ;;  %v1838_v33 = vpop.f32.mrf.mxu3 }
 0x124   : > { %v1606_v24 = vadd.f32 %v1605_v34, %v1517_v39  ;;  %v1518_v17 = vpop.f32.mrf.mxu1  ;;  %v1929_v14 = vpop.f32.mrf.mxu0  ;;  %v4138_v34 = vsel %vm819_vm3, %v982_v20, %v986_v51  ;;  %v989_v51 = vshrl.u32 %v3768_v13, 16 }
 0x125   : > { %v1519_v30 = vadd.f32 %v1518_v17, %v4041_v63  ;;  %v815_v17 = vsel %vm3709_vm2, %v3745_v57, 0 }
 0x126   : > { %v1839_v3 = vadd.f32 %v1838_v33, %v1606_v24  ;;  %v3383_v33 = vld [vmem:[#allocation2 + $0x1c0] sm:$0xff]  ;;  %v996_v15 = vshll.u32 %v815_v17, 16 }
 0x127   : > { %2369 = vmatpush.bf16.msra.mxu3 %v3383_v33 }
 0x128   : > { %v4134_v60 = vadd.f32 %v1927_v8, %v1839_v3  ;;  %v991_v8 = vshll.u32 %v3768_v13, 16 }
 0x12a   : > { %v993_v62 = vrot.slane %v991_v8, 1 }
 0x12b   : > { %v1607_v21 = vpop.f32.mrf.mxu2  ;;  %v1840_v44 = vpop.f32.mrf.mxu3 }
 0x12c   : > { %v1608_v0 = vadd.f32 %v1607_v21, %v1519_v30  ;;  %v1521_v39 = vpop.f32.mrf.mxu1  ;;  %v1932_v35 = vpop.f32.mrf.mxu0 }
 0x12d   : > { %v1522_v41 = vadd.f32 %v1521_v39, %v3925_v4  ;;  %v1133_v4 = vrot.slane %v3768_v13, 1  ;;  %v1134_v39 = vrot.slane %v815_v17, 1  ;;  %v816_v17 = vsel %vm3709_vm2, %v3781_v42, 0 }
 0x12e   : > { %v1841_v63 = vadd.f32 %v1840_v44, %v1608_v0  ;;  %v3391_v44 = vld [vmem:[#allocation2 + $0x200] sm:$0xff]  ;;  %v994_v0 = vor.u32 %v993_v62, %v989_v51 }
 0x12f   : > { %1560 = vmatmul.bf16.gmra.mxu1 %v4138_v34  ;;  %1971 = vmatmul.bf16.gmra.mxu0 %v4116_v43 }
 0x130   : > { %1649 = vmatmul.bf16.gmra.mxu2 %v4141_v47  ;;  %1882 = vmatmul.bf16.gmra.mxu3 %v3833_v48  ;;  %v4148_v24 = vadd.f32 %v1929_v14, %v1841_v63  ;;  %v3343_v14 = vld [vmem:[#allocation2 + $0x80] sm:$0xff]  ;;  %v998_v63 = vrot.slane %v996_v15, 1 }
 0x131   : > { %1999 = vmatpush.bf16.msra.mxu1 %v3343_v14  ;;  %2458 = vmatpush.bf16.msra.mxu0 %v3391_v44 }
 0x132   : > { %4477 = vst [vmem:[#allocation40_spill] sm:$0xff] %v4148_v24 }
 0x133   : > { %v1610_v40 = vpop.f32.mrf.mxu2  ;;  %v1843_v28 = vpop.f32.mrf.mxu3 }
 0x134   : > { %v1611_v30 = vadd.f32 %v1610_v40, %v1522_v41  ;;  %v1523_v3 = vpop.f32.mrf.mxu1  ;;  %v1934_v20 = vpop.f32.mrf.mxu0 }
 0x135   : > { %v1524_v32 = vadd.f32 %v1523_v3, %v3947_v23  ;;  %v1003_v23 = vshll.u32 %v3804_v2, 16 }
 0x136   : > { %v1844_v21 = vadd.f32 %v1843_v28, %v1611_v30  ;;  %v4160_v28 = vsel %vm819_vm3, %v994_v0, %v998_v63  ;;  %v4163_v30 = vsel %vm1090_vm4, %v1133_v4, %v1134_v39  ;;  %v1001_v0 = vshrl.u32 %v3804_v2, 16 }
 0x137   : > { %v1005_v63 = vrot.slane %v1003_v23, 1  ;;  %v1008_v4 = vshll.u32 %v816_v17, 16 }
 0x138   : > { %v4155_v57 = vadd.f32 %v1932_v35, %v1844_v21 }
 0x13b   : > { %v1612_v33 = vpop.f32.mrf.mxu2  ;;  %v1845_v41 = vpop.f32.mrf.mxu3 }
 0x13c   : > { %v1613_v40 = vadd.f32 %v1612_v33, %v1524_v32  ;;  %v1526_v24 = vpop.f32.mrf.mxu1  ;;  %v1937_v8 = vpop.f32.mrf.mxu0  ;;  %v1006_v32 = vor.u32 %v1005_v63, %v1001_v0  ;;  %v1010_v33 = vrot.slane %v1008_v4, 1 }
 0x13d   : > { %v1527_v3 = vadd.f32 %v1526_v24, %v3957_v59 }
 0x13e   : > { %v1846_v51 = vadd.f32 %v1845_v41, %v1613_v40  ;;  %v1136_v41 = vrot.slane %v3804_v2, 1  ;;  %v1137_v40 = vrot.slane %v816_v17, 1  ;;  %v817_v17 = vsel %vm3709_vm2, %v3817_v29, 0 }
 0x13f   : > { %1565 = vmatmul.bf16.gmra.mxu1 %v4160_v28  ;;  %1976 = vmatmul.bf16.gmra.mxu0 %v4138_v34  ;;  %v1140_v26 = vrot.slane %v817_v17, 1 }
 0x140   : > { %1654 = vmatmul.bf16.gmra.mxu2 %v4163_v30  ;;  %1887 = vmatmul.bf16.gmra.mxu3 %v3731_v37  ;;  %v4170_v35 = vadd.f32 %v1934_v20, %v1846_v51  ;;  %v4185_v23 = vsel %vm1090_vm4, %v1136_v41, %v1137_v40  ;;  %v1020_v41 = vshll.u32 %v817_v17, 16 }
 0x142   : > { %4478 = vst [vmem:[#allocation41_spill] sm:$0xff] %v4170_v35  ;;  %v4182_v35 = vsel %vm819_vm3, %v1006_v32, %v1010_v33  ;;  %v1013_v32 = vshrl.u32 %v3837_v49, 16 }
 0x143   : > { %v1615_v62 = vpop.f32.mrf.mxu2  ;;  %v1848_v15 = vpop.f32.mrf.mxu3 }
 0x144   : > { %v1616_v21 = vadd.f32 %v1615_v62, %v1527_v3  ;;  %v1528_v14 = vpop.f32.mrf.mxu1  ;;  %v1939_v44 = vpop.f32.mrf.mxu0 }
 0x145   : > { %v1529_v42 = vadd.f32 %v1528_v14, %v3979_v25  ;;  %v1015_v25 = vshll.u32 %v3837_v49, 16 }
 0x146   : > { %v1849_v39 = vadd.f32 %v1848_v15, %v1616_v21 }
 0x147   : > { %v1017_v33 = vrot.slane %v1015_v25, 1 }
 0x148   : > { %v4177_v20 = vadd.f32 %v1937_v8, %v1849_v39 }
 0x14b   : > { %v1617_v59 = vpop.f32.mrf.mxu2  ;;  %v1850_v24 = vpop.f32.mrf.mxu3 }
 0x14c   : > { %v1618_v51 = vadd.f32 %v1617_v59, %v1529_v42  ;;  %v1531_v3 = vpop.f32.mrf.mxu1  ;;  %v1942_v62 = vpop.f32.mrf.mxu0  ;;  %v1018_v42 = vor.u32 %v1017_v33, %v1013_v32  ;;  %v1022_v59 = vrot.slane %v1020_v41, 1 }
 0x14d   : > { %v1532_v21 = vadd.f32 %v1531_v3, %v3989_v9 }
 0x14e   : > { %v1851_v15 = vadd.f32 %v1850_v24, %v1618_v51  ;;  %v1139_v24 = vrot.slane %v3837_v49, 1 }
 0x14f   : > { %1570 = vmatmul.bf16.gmra.mxu1 %v4182_v35  ;;  %1981 = vmatmul.bf16.gmra.mxu0 %v4160_v28 }
 0x150   : > { %1659 = vmatmul.bf16.gmra.mxu2 %v4185_v23  ;;  %1892 = vmatmul.bf16.gmra.mxu3 %v3768_v13  ;;  %v4192_v8 = vadd.f32 %v1939_v44, %v1851_v15  ;;  %v4207_v25 = vsel %vm1090_vm4, %v1139_v24, %v1140_v26 }
 0x153   : > { %v1620_v14 = vpop.f32.mrf.mxu2  ;;  %v1853_v0 = vpop.f32.mrf.mxu3 }
 0x154   : > { %v1621_v63 = vadd.f32 %v1620_v14, %v1532_v21  ;;  %v1533_v4 = vpop.f32.mrf.mxu1  ;;  %v1944_v39 = vpop.f32.mrf.mxu0  ;;  %v4204_v14 = vsel %vm819_vm3, %v1018_v42, %v1022_v59  ;;  %v1091_v42 = vrot.slane %v3841_v50, 1 }
 0x155   : > { %v1534_v29 = vadd.f32 %v1533_v4, %v4011_v53 }
 0x156   : > { %v1854_v40 = vadd.f32 %v1853_v0, %v1621_v63 }
 0x158   : > { %v4199_v44 = vadd.f32 %v1942_v62, %v1854_v40  ;;  %v1092_v40 = vrot.slane %v3854_v58, 1 }
 0x15b   : > { %v1622_v9 = vpop.f32.mrf.mxu2  ;;  %v1855_v51 = vpop.f32.mrf.mxu3 }
 0x15c   : > { %v1623_v3 = vadd.f32 %v1622_v9, %v1534_v29  ;;  %v1536_v15 = vpop.f32.mrf.mxu1  ;;  %v1947_v21 = vpop.f32.mrf.mxu0 }
 0x15d   : > { %v1537_v62 = vadd.f32 %v1536_v15, %v4021_v6  ;;  %v4222_v6 = vsel %vm1090_vm4, %v1091_v42, %v1092_v40 }
 0x15e   : > { %v1856_v0 = vadd.f32 %v1855_v51, %v1623_v3 }
 0x15f   : > { %1575 = vmatmul.bf16.gmra.mxu1 %v4204_v14  ;;  %1986 = vmatmul.bf16.gmra.mxu0 %v4182_v35 }
 0x160   : > { %1664 = vmatmul.bf16.gmra.mxu2 %v4207_v25  ;;  %1897 = vmatmul.bf16.gmra.mxu3 %v3804_v2  ;;  %v4213_v53 = vadd.f32 %v1944_v39, %v1856_v0 }
 0x163   : > { %v1625_v17 = vpop.f32.mrf.mxu2  ;;  %v1858_v63 = vpop.f32.mrf.mxu3 }
 0x164   : > { %v1626_v4 = vadd.f32 %v1625_v17, %v1537_v62  ;;  %v1538_v32 = vpop.f32.mrf.mxu1  ;;  %v1949_v33 = vpop.f32.mrf.mxu0 }
 0x165   : > { %v1539_v24 = vadd.f32 %v1538_v32, %v4043_v38 }
 0x166   : > { %v1859_v41 = vadd.f32 %v1858_v63, %v1626_v4 }
 0x168   : > { %v4218_v59 = vadd.f32 %v1947_v21, %v1859_v41 }
 0x16b   : > { %v1627_v26 = vpop.f32.mrf.mxu2  ;;  %v1860_v29 = vpop.f32.mrf.mxu3 }
 0x16c   : > { %v1628_v39 = vadd.f32 %v1627_v26, %v1539_v24  ;;  %v1541_v9 = vpop.f32.mrf.mxu1  ;;  %v1952_v51 = vpop.f32.mrf.mxu0 }
 0x16d   : > { %v1542_v38 = vadd.f32 %v1541_v9, %v3941_v11  ;;  %v4479_v11 = vld [vmem:[#allocation7_spill] sm:$0xff] }
 0x16e   : > { %v1861_v3 = vadd.f32 %v1860_v29, %v1628_v39  ;;  %v4481_v29 = vld [vmem:[#allocation21_spill] sm:$0xff] }
 0x16f   : > { %2000 = vmatmul.bf16.vlgmr.msra.gmra.mxu1 %v4222_v6  ;;  %2459 = vmatmul.bf16.vlgmr.msra.gmra.mxu0 %v3880_v56 }
 0x170   : > { %2281 = vmatmul.bf16.vlgmr.msra.gmra.mxu2 %v3753_v7  ;;  %2370 = vmatmul.bf16.vlgmr.msra.gmra.mxu3 %v3877_v54  ;;  %v4228_v58 = vadd.f32 %v1949_v33, %v1861_v3  ;;  %v4480_v33 = vld [vmem:[#allocation12_spill] sm:$0xff] }
 0x173   : > { %v1630_v15 = vpop.f32.mrf.mxu2  ;;  %v1863_v21 = vpop.f32.mrf.mxu3 }
 0x174   : > { %v1631_v0 = vadd.f32 %v1630_v15, %v1542_v38  ;;  %v1543_v62 = vpop.f32.mrf.mxu1  ;;  %v1954_v17 = vpop.f32.mrf.mxu0 }
 0x175   : > { %v1544_v32 = vadd.f32 %v1543_v62, %v3951_v45 }
 0x176   : > { %v1864_v63 = vadd.f32 %v1863_v21, %v1631_v0  ;;  %v4482_v0 = vld [vmem:[#allocation23_spill] sm:$0xff] }
 0x178   : > { %v4231_v4 = vadd.f32 %v1952_v51, %v1864_v63 }
 0x17b   : > { %v1632_v41 = vpop.f32.mrf.mxu2  ;;  %v1865_v40 = vpop.f32.mrf.mxu3 }
 0x17c   : > { %v1633_v42 = vadd.f32 %v1632_v41, %v1544_v32  ;;  %v1546_v7 = vpop.f32.mrf.mxu1  ;;  %v1957_v24 = vpop.f32.mrf.mxu0 }
 0x17d   : > { %v1547_v39 = vadd.f32 %v1546_v7, %v4481_v29  ;;  %v4484_v7 = vld [vmem:[#allocation9_spill] sm:$0xff] }
 0x17e   : > { %v1866_v54 = vadd.f32 %v1865_v40, %v1633_v42 }
 0x17f   : > { %2005 = vmatmul.bf16.gmra.mxu1 %v3865_v18  ;;  %2464 = vmatmul.bf16.gmra.mxu0 %v3895_v31 }
 0x180   : > { %2286 = vmatmul.bf16.gmra.mxu2 %v4479_v11  ;;  %2375 = vmatmul.bf16.gmra.mxu3 %v4480_v33  ;;  %v4238_v26 = vadd.f32 %v1954_v17, %v1866_v54  ;;  %v4483_v17 = vld [vmem:[#allocation14_spill] sm:$0xff]  ;;  %v4485_v54 = vld [vmem:[#allocation13_spill] sm:$0xff] }
 0x183   : > { %v1635_v9 = vpop.f32.mrf.mxu2  ;;  %v1868_v45 = vpop.f32.mrf.mxu3 }
 0x184   : > { %v1636_v51 = vadd.f32 %v1635_v9, %v1547_v39  ;;  %v1548_v3 = vpop.f32.mrf.mxu1  ;;  %v1959_v38 = vpop.f32.mrf.mxu0 }
 0x185   : > { %v1549_v18 = vadd.f32 %v1548_v3, %v4482_v0  ;;  %v4489_v0 = vld [vmem:[#allocation29_spill] sm:$0xff] }
 0x186   : > { %v1869_v15 = vadd.f32 %v1868_v45, %v1636_v51 }
 0x188   : > { %v4241_v21 = vadd.f32 %v1957_v24, %v1869_v15  ;;  %v4487_v24 = vld [vmem:[#allocation27_spill] sm:$0xff] }
 0x18b   : > { %v1637_v62 = vpop.f32.mrf.mxu2  ;;  %v1870_v63 = vpop.f32.mrf.mxu3 }
 0x18c   : > { %v1638_v32 = vadd.f32 %v1637_v62, %v1549_v18  ;;  %v1551_v41 = vpop.f32.mrf.mxu1  ;;  %v1962_v40 = vpop.f32.mrf.mxu0 }
 0x18d   : > { %v1552_v33 = vadd.f32 %v1551_v41, %v4487_v24  ;;  %v4491_v41 = vld [vmem:[#allocation5_spill] sm:$0xff] }
 0x18e   : > { %v1871_v42 = vadd.f32 %v1870_v63, %v1638_v32 }
 0x18f   : > { %2010 = vmatmul.bf16.gmra.mxu1 %v3880_v56  ;;  %2469 = vmatmul.bf16.gmra.mxu0 %v4483_v17 }
 0x190   : > { %2291 = vmatmul.bf16.gmra.mxu2 %v4484_v7  ;;  %2380 = vmatmul.bf16.gmra.mxu3 %v4485_v54  ;;  %v4248_v11 = vadd.f32 %v1959_v38, %v1871_v42  ;;  %v4490_v38 = vld [vmem:[#allocation16_spill] sm:$0xff]  ;;  %v4492_v42 = vld [vmem:[#allocation15_spill] sm:$0xff] }
 0x192   : > { %4486 = vst [vmem:[#allocation7_spill] sm:$0xff] %v4248_v11 }
 0x193   : > { %v1640_v29 = vpop.f32.mrf.mxu2  ;;  %v1873_v39 = vpop.f32.mrf.mxu3 }
 0x194   : > { %v1641_v9 = vadd.f32 %v1640_v29, %v1552_v33  ;;  %v1553_v45 = vpop.f32.mrf.mxu1  ;;  %v1964_v51 = vpop.f32.mrf.mxu0 }
 0x195   : > { %v1554_v56 = vadd.f32 %v1553_v45, %v4489_v0 }
 0x196   : > { %v1874_v3 = vadd.f32 %v1873_v39, %v1641_v9 }
 0x198   : > { %v4251_v15 = vadd.f32 %v1962_v40, %v1874_v3  ;;  %v4494_v40 = vld [vmem:[#allocation33_spill] sm:$0xff] }
 0x19a   : > { %4488 = vst [vmem:[#allocation12_spill] sm:$0xff] %v4251_v15 }
 0x19b   : > { %v1642_v18 = vpop.f32.mrf.mxu2  ;;  %v1875_v62 = vpop.f32.mrf.mxu3 }
 0x19c   : > { %v1643_v63 = vadd.f32 %v1642_v18, %v1554_v56  ;;  %v1556_v32 = vpop.f32.mrf.mxu1  ;;  %v1967_v7 = vpop.f32.mrf.mxu0  ;;  %v4496_v18 = vld [vmem:[#allocation35_spill] sm:$0xff] }
 0x19d   : > { %v1557_v33 = vadd.f32 %v1556_v32, %v4494_v40  ;;  %v4498_v32 = vld [vmem:[#allocation6_spill] sm:$0xff] }
 0x19e   : > { %v1876_v54 = vadd.f32 %v1875_v62, %v1643_v63 }
 0x19f   : > { %2015 = vmatmul.bf16.gmra.mxu1 %v3895_v31  ;;  %2474 = vmatmul.bf16.gmra.mxu0 %v4490_v38 }
 0x1a0   : > { %2296 = vmatmul.bf16.gmra.mxu2 %v4491_v41  ;;  %2385 = vmatmul.bf16.gmra.mxu3 %v4492_v42  ;;  %v4258_v24 = vadd.f32 %v1964_v51, %v1876_v54  ;;  %v4497_v51 = vld [vmem:[#allocation20_spill] sm:$0xff]  ;;  %v4499_v54 = vld [vmem:[#allocation19_spill] sm:$0xff] }
 0x1a2   : > { %4493 = vst [vmem:[#allocation21_spill] sm:$0xff] %v4258_v24 }
 0x1a3   : > { %v1645_v29 = vpop.f32.mrf.mxu2  ;;  %v1878_v39 = vpop.f32.mrf.mxu3 }
 0x1a4   : > { %v1646_v9 = vadd.f32 %v1645_v29, %v1557_v33  ;;  %v1558_v45 = vpop.f32.mrf.mxu1  ;;  %v1969_v3 = vpop.f32.mrf.mxu0 }
 0x1a5   : > { %v1559_v31 = vadd.f32 %v1558_v45, %v4496_v18 }
 0x1a6   : > { %v1879_v0 = vadd.f32 %v1878_v39, %v1646_v9 }
 0x1a8   : > { %v4261_v56 = vadd.f32 %v1967_v7, %v1879_v0  ;;  %v4501_v7 = vld [vmem:[#allocation17_spill] sm:$0xff] }
 0x1aa   : > { %4495 = vst [vmem:[#allocation23_spill] sm:$0xff] %v4261_v56 }
 0x1ab   : > { %v1647_v62 = vpop.f32.mrf.mxu2  ;;  %v1880_v63 = vpop.f32.mrf.mxu3 }
 0x1ac   : > { %v1648_v15 = vadd.f32 %v1647_v62, %v1559_v31  ;;  %v1561_v41 = vpop.f32.mrf.mxu1  ;;  %v1972_v11 = vpop.f32.mrf.mxu0 }
 0x1ad   : > { %v1562_v33 = vadd.f32 %v1561_v41, %v4501_v7  ;;  %v4505_v41 = vld [vmem:[#allocation8_spill] sm:$0xff] }
 0x1ae   : > { %v1881_v42 = vadd.f32 %v1880_v63, %v1648_v15  ;;  %v4503_v15 = vld [vmem:[#allocation18_spill] sm:$0xff] }
 0x1af   : > { %2020 = vmatmul.bf16.gmra.mxu1 %v4483_v17  ;;  %2479 = vmatmul.bf16.gmra.mxu0 %v4497_v51 }
 0x1b0   : > { %2301 = vmatmul.bf16.gmra.mxu2 %v4498_v32  ;;  %2390 = vmatmul.bf16.gmra.mxu3 %v4499_v54  ;;  %v4268_v40 = vadd.f32 %v1969_v3, %v1881_v42  ;;  %v4504_v3 = vld [vmem:[#allocation26_spill] sm:$0xff]  ;;  %v4506_v42 = vld [vmem:[#allocation25_spill] sm:$0xff] }
 0x1b2   : > { %4500 = vst [vmem:[#allocation14_spill] sm:$0xff] %v4268_v40 }
 0x1b3   : > { %v1650_v29 = vpop.f32.mrf.mxu2  ;;  %v1883_v39 = vpop.f32.mrf.mxu3 }
 0x1b4   : > { %v1651_v9 = vadd.f32 %v1650_v29, %v1562_v33  ;;  %v1563_v45 = vpop.f32.mrf.mxu1  ;;  %v1974_v0 = vpop.f32.mrf.mxu0 }
 0x1b5   : > { %v1564_v17 = vadd.f32 %v1563_v45, %v4503_v15 }
 0x1b6   : > { %v1884_v18 = vadd.f32 %v1883_v39, %v1651_v9 }
 0x1b8   : > { %v4271_v31 = vadd.f32 %v1972_v11, %v1884_v18  ;;  %v4508_v11 = vld [vmem:[#allocation22_spill] sm:$0xff] }
 0x1ba   : > { %4502 = vst [vmem:[#allocation9_spill] sm:$0xff] %v4271_v31 }
 0x1bb   : > { %v1652_v62 = vpop.f32.mrf.mxu2  ;;  %v1885_v63 = vpop.f32.mrf.mxu3 }
 0x1bc   : > { %v1653_v56 = vadd.f32 %v1652_v62, %v1564_v17  ;;  %v1566_v32 = vpop.f32.mrf.mxu1  ;;  %v1977_v24 = vpop.f32.mrf.mxu0 }
 0x1bd   : > { %v1567_v33 = vadd.f32 %v1566_v32, %v4508_v11  ;;  %v4512_v32 = vld [vmem:[#allocation10_spill] sm:$0xff] }
 0x1be   : > { %v1886_v54 = vadd.f32 %v1885_v63, %v1653_v56  ;;  %v4510_v56 = vld [vmem:[#allocation24_spill] sm:$0xff] }
 0x1bf   : > { %2025 = vmatmul.bf16.gmra.mxu1 %v4490_v38  ;;  %2484 = vmatmul.bf16.gmra.mxu0 %v4504_v3 }
 0x1c0   : > { %2306 = vmatmul.bf16.gmra.mxu2 %v4505_v41  ;;  %2395 = vmatmul.bf16.gmra.mxu3 %v4506_v42  ;;  %v4278_v7 = vadd.f32 %v1974_v0, %v1886_v54  ;;  %v4511_v0 = vld [vmem:[#allocation32_spill] sm:$0xff]  ;;  %v4513_v54 = vld [vmem:[#allocation31_spill] sm:$0xff] }
 0x1c2   : > { %4507 = vst [vmem:[#allocation13_spill] sm:$0xff] %v4278_v7 }
 0x1c3   : > { %v1655_v29 = vpop.f32.mrf.mxu2  ;;  %v1888_v39 = vpop.f32.mrf.mxu3 }
 0x1c4   : > { %v1656_v9 = vadd.f32 %v1655_v29, %v1567_v33  ;;  %v1568_v45 = vpop.f32.mrf.mxu1  ;;  %v1979_v18 = vpop.f32.mrf.mxu0 }
 0x1c5   : > { %v1569_v38 = vadd.f32 %v1568_v45, %v4510_v56 }
 0x1c6   : > { %v1889_v15 = vadd.f32 %v1888_v39, %v1656_v9 }
 0x1c8   : > { %v4281_v17 = vadd.f32 %v1977_v24, %v1889_v15  ;;  %v4514_v24 = vld [vmem:[#allocation28_spill] sm:$0xff] }
 0x1ca   : > { %4509 = vst [vmem:[#allocation27_spill] sm:$0xff] %v4281_v17 }
 0x1cb   : > { %v1657_v62 = vpop.f32.mrf.mxu2  ;;  %v1890_v63 = vpop.f32.mrf.mxu3 }
 0x1cc   : > { %v1658_v31 = vadd.f32 %v1657_v62, %v1569_v38  ;;  %v1571_v41 = vpop.f32.mrf.mxu1  ;;  %v1982_v40 = vpop.f32.mrf.mxu0 }
 0x1cd   : > { %v1572_v33 = vadd.f32 %v1571_v41, %v4514_v24 }
 0x1ce   : > { %v1891_v42 = vadd.f32 %v1890_v63, %v1658_v31  ;;  %v4515_v31 = vld [vmem:[#allocation30_spill] sm:$0xff] }
 0x1cf   : > { %2030 = vmatmul.bf16.gmra.mxu1 %v4497_v51  ;;  %2489 = vmatmul.bf16.gmra.mxu0 %v4511_v0 }
 0x1d0   : > { %2311 = vmatmul.bf16.gmra.mxu2 %v4512_v32  ;;  %2400 = vmatmul.bf16.gmra.mxu3 %v4513_v54  ;;  %v4288_v11 = vadd.f32 %v1979_v18, %v1891_v42  ;;  %v4516_v18 = vld [vmem:[#allocation37_spill] sm:$0xff] }
 0x1d3   : > { %v1660_v29 = vpop.f32.mrf.mxu2  ;;  %v1893_v39 = vpop.f32.mrf.mxu3 }
 0x1d4   : > { %v1661_v9 = vadd.f32 %v1660_v29, %v1572_v33  ;;  %v1573_v45 = vpop.f32.mrf.mxu1  ;;  %v1984_v15 = vpop.f32.mrf.mxu0 }
 0x1d5   : > { %v1574_v51 = vadd.f32 %v1573_v45, %v4515_v31 }
 0x1d6   : > { %v1894_v56 = vadd.f32 %v1893_v39, %v1661_v9 }
 0x1d8   : > { %v4291_v38 = vadd.f32 %v1982_v40, %v1894_v56  ;;  %v4517_v40 = vld [vmem:[#allocation34_spill] sm:$0xff] }
 0x1db   : > { %v1662_v62 = vpop.f32.mrf.mxu2  ;;  %v1895_v63 = vpop.f32.mrf.mxu3 }
 0x1dc   : > { %v1663_v17 = vadd.f32 %v1662_v62, %v1574_v51  ;;  %v1576_v32 = vpop.f32.mrf.mxu1  ;;  %v1987_v7 = vpop.f32.mrf.mxu0 }
 0x1dd   : > { %v1577_v42 = vadd.f32 %v1576_v32, %v4517_v40 }
 0x1de   : > { %v1896_v54 = vadd.f32 %v1895_v63, %v1663_v17  ;;  %v4518_v17 = vld [vmem:[#allocation36_spill] sm:$0xff] }
 0x1df   : > { %2035 = vmatmul.bf16.gmra.mxu1 %v4504_v3  ;;  %2494 = vmatmul.bf16.gmra.mxu0 %v4516_v18 }
 0x1e0   : > { %2316 = vmatmul.bf16.gmra.mxu2 %v3727_v36  ;;  %2405 = vmatmul.bf16.gmra.mxu3 %v4052_v5  ;;  %v4298_v41 = vadd.f32 %v1984_v15, %v1896_v54 }
 0x1e3   : > { %v1665_v24 = vpop.f32.mrf.mxu2  ;;  %v1898_v33 = vpop.f32.mrf.mxu3 }
 0x1e4   : > { %v1666_v29 = vadd.f32 %v1665_v24, %v1577_v42  ;;  %v1578_v39 = vpop.f32.mrf.mxu1  ;;  %v1989_v9 = vpop.f32.mrf.mxu0 }
 0x1e5   : > { %v1579_v3 = vadd.f32 %v1578_v39, %v4518_v17 }
 0x1e6   : > { %v1899_v45 = vadd.f32 %v1898_v33, %v1666_v29 }
 0x1e8   : > { %v4301_v56 = vadd.f32 %v1987_v7, %v1899_v45 }
 0x1eb   : > { %v1667_v31 = vpop.f32.mrf.mxu2  ;;  %v1900_v51 = vpop.f32.mrf.mxu3 }
 0x1ec   : > { %v1668_v62 = vadd.f32 %v1667_v31, %v1579_v3  ;;  %v2001_v36 = vpop.f32.mrf.mxu1  ;;  %v2460_v63 = vpop.f32.mrf.mxu0 }
 0x1ed   : > { %v2002_v39 = vadd.f32 %v2001_v36, %v4068_v55 }
 0x1ee   : > { %v1901_v5 = vadd.f32 %v1900_v51, %v1668_v62 }
 0x1ef   : > { %2040 = vmatmul.bf16.gmra.mxu1 %v4511_v0  ;;  %2499 = vmatmul.bf16.gmra.mxu0 %v4076_v52 }
 0x1f0   : > { %2321 = vmatmul.bf16.gmra.mxu2 %v3764_v12  ;;  %2410 = vmatmul.bf16.gmra.mxu3 %v4072_v61  ;;  %v4308_v15 = vadd.f32 %v1989_v9, %v1901_v5 }
 0x1f3   : > { %v2282_v7 = vpop.f32.mrf.mxu2  ;;  %v2371_v32 = vpop.f32.mrf.mxu3 }
 0x1f4   : > { %v2003_v54 = vpop.f32.mrf.mxu1  ;;  %v2462_v40 = vpop.f32.mrf.mxu0  ;;  %v2372_v42 = vadd.f32 %v2371_v32, %v2282_v7  ;;  %v4519_v7 = vld [vmem:[#allocation38_spill] sm:$0xff] }
 0x1f5   : > { %v2004_v12 = vadd.f32 %v2003_v54, %v4083_v46 }
 0x1f6   : > { %v2461_v24 = vadd.f32 %v2460_v63, %v2372_v42 }
 0x1f8   : > { %v2540_v3 = vadd.f32 %v2461_v24, %v2002_v39 }
 0x1fa   : > { %v2609_v55 = vmul.f32 %v2540_v3, %v2540_v3 }
 0x1fb   : > { %v2284_v33 = vpop.f32.mrf.mxu2  ;;  %v2373_v29 = vpop.f32.mrf.mxu3 }
 0x1fc   : > { %v2374_v0 = vadd.f32 %v2373_v29, %v2284_v33  ;;  %v2006_v45 = vpop.f32.mrf.mxu1  ;;  %v2465_v17 = vpop.f32.mrf.mxu0 }
 0x1fe   : > { %v2463_v61 = vadd.f32 %v2462_v40, %v2374_v0 }
 0x1ff   : > { %2045 = vmatmul.bf16.gmra.mxu1 %v4516_v18  ;;  %2504 = vmatmul.bf16.gmra.mxu0 %v4098_v10 }
 0x200   : > { %v2541_v9 = vadd.f32 %v2463_v61, %v2004_v12  ;;  %2326 = vmatmul.bf16.gmra.mxu2 %v3800_v1  ;;  %2415 = vmatmul.bf16.gmra.mxu3 %v4094_v22  ;;  %v2007_v22 = vadd.f32 %v2006_v45, %v4519_v7  ;;  %v4520_v12 = vld [vmem:[#allocation39_spill] sm:$0xff] }
 0x202   : > { %v2572_v31 = vadd.f32 %v2541_v9, %v2540_v3  ;;  %v2610_v46 = vmul.f32 %v2541_v9, %v2541_v9  ;;  %v3402_v51 = vpack.c.bf16 %v2541_v9, %v2540_v3 }
 0x203   : > { %v2287_v62 = vpop.f32.mrf.mxu2  ;;  %v2376_v18 = vpop.f32.mrf.mxu3 }
 0x204   : > { %v2641_v36 = vadd.f32 %v2610_v46, %v2609_v55  ;;  %3403 = vst [vmem:[%s4321_s15] sm:$0xff] %v3402_v51   ;;  %v2377_v63 = vadd.f32 %v2376_v18, %v2287_v62  ;;  %v2008_v5 = vpop.f32.mrf.mxu1  ;;  %v2467_v1 = vpop.f32.mrf.mxu0 }
 0x205   : > { %v2009_v61 = vadd.f32 %v2008_v5, %v4520_v12 }
 0x206   : > { %v2466_v32 = vadd.f32 %v2465_v17, %v2377_v63 }
 0x208   : > { %v2542_v54 = vadd.f32 %v2466_v32, %v2007_v22 }
 0x20a   : > { %v2573_v40 = vadd.f32 %v2572_v31, %v2542_v54  ;;  %v2611_v42 = vmul.f32 %v2542_v54, %v2542_v54 }
 0x20b   : > { %v2289_v24 = vpop.f32.mrf.mxu2  ;;  %v2378_v33 = vpop.f32.mrf.mxu3 }
 0x20c   : > { %v2642_v29 = vadd.f32 %v2641_v36, %v2611_v42  ;;  %v2379_v39 = vadd.f32 %v2378_v33, %v2289_v24  ;;  %v2011_v0 = vpop.f32.mrf.mxu1  ;;  %v2470_v3 = vpop.f32.mrf.mxu0 }
 0x20d   : > { %v2012_v5 = vadd.f32 %v2011_v0, %v4112_v27 }
 0x20e   : > { %v2468_v9 = vadd.f32 %v2467_v1, %v2379_v39 }
 0x20f   : > { %2050 = vmatmul.bf16.gmra.mxu1 %v4076_v52  ;;  %2509 = vmatmul.bf16.gmra.mxu0 %v4120_v19 }
 0x210   : > { %v2543_v55 = vadd.f32 %v2468_v9, %v2009_v61  ;;  %2331 = vmatmul.bf16.gmra.mxu2 %v3833_v48  ;;  %2420 = vmatmul.bf16.gmra.mxu3 %v4116_v43 }
 0x212   : > { %v2574_v45 = vadd.f32 %v2573_v40, %v2543_v55  ;;  %v2612_v17 = vmul.f32 %v2543_v55, %v2543_v55  ;;  %v3407_v31 = vpack.c.bf16 %v2543_v55, %v2542_v54 }
 0x213   : > { %v2292_v46 = vpop.f32.mrf.mxu2  ;;  %v2381_v51 = vpop.f32.mrf.mxu3 }
 0x214   : > { %v2643_v62 = vadd.f32 %v2642_v29, %v2612_v17  ;;  %3479 = vst [vmem:[%s4321_s15 + $0x8] sm:$0xff] %v3407_v31   ;;  %v2382_v18 = vadd.f32 %v2381_v51, %v2292_v46  ;;  %v2013_v36 = vpop.f32.mrf.mxu1  ;;  %v2472_v63 = vpop.f32.mrf.mxu0 }
 0x215   : > { %v2014_v24 = vadd.f32 %v2013_v36, %v4127_v16 }
 0x216   : > { %v2471_v52 = vadd.f32 %v2470_v3, %v2382_v18 }
 0x218   : > { %v2544_v1 = vadd.f32 %v2471_v52, %v2012_v5 }
 0x21a   : > { %v2575_v7 = vadd.f32 %v2574_v45, %v2544_v1  ;;  %v2613_v22 = vmul.f32 %v2544_v1, %v2544_v1 }
 0x21b   : > { %v2294_v32 = vpop.f32.mrf.mxu2  ;;  %v2383_v48 = vpop.f32.mrf.mxu3 }
 0x21c   : > { %v2644_v42 = vadd.f32 %v2643_v62, %v2613_v22  ;;  %v2384_v43 = vadd.f32 %v2383_v48, %v2294_v32  ;;  %v2016_v40 = vpop.f32.mrf.mxu1  ;;  %v2475_v54 = vpop.f32.mrf.mxu0 }
 0x21d   : > { %v2017_v45 = vadd.f32 %v2016_v40, %v4134_v60 }
 0x21e   : > { %v2473_v33 = vadd.f32 %v2472_v63, %v2384_v43  ;;  %v4521_v63 = vld [vmem:[#allocation40_spill] sm:$0xff] }
 0x21f   : > { %2055 = vmatmul.bf16.gmra.mxu1 %v4098_v10  ;;  %2514 = vmatmul.bf16.gmra.mxu0 %v4141_v47 }
 0x220   : > { %v2545_v29 = vadd.f32 %v2473_v33, %v2014_v24  ;;  %2336 = vmatmul.bf16.gmra.mxu2 %v3731_v37  ;;  %2425 = vmatmul.bf16.gmra.mxu3 %v4138_v34 }
 0x222   : > { %v2576_v27 = vadd.f32 %v2575_v7, %v2545_v29  ;;  %v2614_v39 = vmul.f32 %v2545_v29, %v2545_v29  ;;  %v3412_v0 = vpack.c.bf16 %v2545_v29, %v2544_v1 }
 0x223   : > { %v2297_v3 = vpop.f32.mrf.mxu2  ;;  %v2386_v12 = vpop.f32.mrf.mxu3 }
 0x224   : > { %v2645_v61 = vadd.f32 %v2644_v42, %v2614_v39  ;;  %3480 = vst [vmem:[%s4321_s15 + $0x10] sm:$0xff] %v3412_v0   ;;  %v2387_v9 = vadd.f32 %v2386_v12, %v2297_v3  ;;  %v2018_v55 = vpop.f32.mrf.mxu1  ;;  %v2477_v16 = vpop.f32.mrf.mxu0 }
 0x225   : > { %v2019_v5 = vadd.f32 %v2018_v55, %v4521_v63 }
 0x226   : > { %v2476_v10 = vadd.f32 %v2475_v54, %v2387_v9 }
 0x228   : > { %v2546_v17 = vadd.f32 %v2476_v10, %v2017_v45 }
 0x22a   : > { %v2577_v31 = vadd.f32 %v2576_v27, %v2546_v17  ;;  %v2615_v46 = vmul.f32 %v2546_v17, %v2546_v17 }
 0x22b   : > { %v2299_v51 = vpop.f32.mrf.mxu2  ;;  %v2388_v37 = vpop.f32.mrf.mxu3 }
 0x22c   : > { %v2646_v62 = vadd.f32 %v2645_v61, %v2615_v46  ;;  %v2389_v34 = vadd.f32 %v2388_v37, %v2299_v51  ;;  %v2021_v18 = vpop.f32.mrf.mxu1  ;;  %v2480_v36 = vpop.f32.mrf.mxu0  ;;  %v4522_v61 = vld [vmem:[#allocation41_spill] sm:$0xff] }
 0x22d   : > { %v2022_v24 = vadd.f32 %v2021_v18, %v4155_v57 }
 0x22e   : > { %v2478_v52 = vadd.f32 %v2477_v16, %v2389_v34 }
 0x22f   : > { %2060 = vmatmul.bf16.gmra.mxu1 %v4120_v19  ;;  %2519 = vmatmul.bf16.gmra.mxu0 %v4163_v30 }
 0x230   : > { %v2547_v1 = vadd.f32 %v2478_v52, %v2019_v5  ;;  %2341 = vmatmul.bf16.gmra.mxu2 %v3768_v13  ;;  %2430 = vmatmul.bf16.gmra.mxu3 %v4160_v28 }
 0x232   : > { %v2578_v60 = vadd.f32 %v2577_v31, %v2547_v1  ;;  %v2616_v7 = vmul.f32 %v2547_v1, %v2547_v1  ;;  %v3417_v22 = vpack.c.bf16 %v2547_v1, %v2546_v17 }
 0x233   : > { %v2302_v32 = vpop.f32.mrf.mxu2  ;;  %v2391_v48 = vpop.f32.mrf.mxu3 }
 0x234   : > { %v2647_v42 = vadd.f32 %v2646_v62, %v2616_v7  ;;  %3481 = vst [vmem:[%s4321_s15 + $0x18] sm:$0xff] %v3417_v22   ;;  %v2392_v43 = vadd.f32 %v2391_v48, %v2302_v32  ;;  %v2023_v40 = vpop.f32.mrf.mxu1  ;;  %v2482_v54 = vpop.f32.mrf.mxu0 }
 0x235   : > { %v2024_v9 = vadd.f32 %v2023_v40, %v4522_v61 }
 0x236   : > { %v2481_v19 = vadd.f32 %v2480_v36, %v2392_v43 }
 0x238   : > { %v2548_v33 = vadd.f32 %v2481_v19, %v2022_v24 }
 0x23a   : > { %v2579_v29 = vadd.f32 %v2578_v60, %v2548_v33  ;;  %v2617_v27 = vmul.f32 %v2548_v33, %v2548_v33 }
 0x23b   : > { %v2304_v39 = vpop.f32.mrf.mxu2  ;;  %v2393_v13 = vpop.f32.mrf.mxu3 }
 0x23c   : > { %v2648_v0 = vadd.f32 %v2647_v42, %v2617_v27  ;;  %v2394_v28 = vadd.f32 %v2393_v13, %v2304_v39  ;;  %v2026_v3 = vpop.f32.mrf.mxu1  ;;  %v2485_v12 = vpop.f32.mrf.mxu0 }
 0x23d   : > { %v2027_v34 = vadd.f32 %v2026_v3, %v4177_v20 }
 0x23e   : > { %v2483_v55 = vadd.f32 %v2482_v54, %v2394_v28 }
 0x23f   : > { %2065 = vmatmul.bf16.gmra.mxu1 %v4141_v47  ;;  %2524 = vmatmul.bf16.gmra.mxu0 %v4185_v23 }
 0x240   : > { %v2549_v16 = vadd.f32 %v2483_v55, %v2024_v9  ;;  %2346 = vmatmul.bf16.gmra.mxu2 %v3804_v2  ;;  %2435 = vmatmul.bf16.gmra.mxu3 %v4182_v35 }
 0x242   : > { %v2580_v57 = vadd.f32 %v2579_v29, %v2549_v16  ;;  %v2618_v45 = vmul.f32 %v2549_v16, %v2549_v16  ;;  %v3422_v10 = vpack.c.bf16 %v2549_v16, %v2548_v33 }
 0x243   : > { %v2307_v17 = vpop.f32.mrf.mxu2  ;;  %v2396_v31 = vpop.f32.mrf.mxu3 }
 0x244   : > { %v2649_v46 = vadd.f32 %v2648_v0, %v2618_v45  ;;  %3482 = vst [vmem:[%s4321_s15 + $0x20] sm:$0xff] %v3422_v10   ;;  %v2397_v51 = vadd.f32 %v2396_v31, %v2307_v17  ;;  %v2028_v37 = vpop.f32.mrf.mxu1  ;;  %v2487_v62 = vpop.f32.mrf.mxu0 }
 0x245   : > { %v2029_v7 = vadd.f32 %v2028_v37, %v4192_v8 }
 0x246   : > { %v2486_v47 = vadd.f32 %v2485_v12, %v2397_v51 }
 0x248   : > { %v2550_v18 = vadd.f32 %v2486_v47, %v2027_v34 }
 0x24a   : > { %v2581_v36 = vadd.f32 %v2580_v57, %v2550_v18  ;;  %v2619_v63 = vmul.f32 %v2550_v18, %v2550_v18 }
 0x24b   : > { %v2309_v5 = vpop.f32.mrf.mxu2  ;;  %v2398_v2 = vpop.f32.mrf.mxu3 }
 0x24c   : > { %v2650_v52 = vadd.f32 %v2649_v46, %v2619_v63  ;;  %v2399_v35 = vadd.f32 %v2398_v2, %v2309_v5  ;;  %v2031_v1 = vpop.f32.mrf.mxu1  ;;  %v2490_v60 = vpop.f32.mrf.mxu0 }
 0x24d   : > { %v2032_v33 = vadd.f32 %v2031_v1, %v4199_v44  ;;  %v4523_v44 = vld [vmem:[#allocation11_spill] sm:$0xff] }
 0x24e   : > { %v2488_v22 = vadd.f32 %v2487_v62, %v2399_v35 }
 0x24f   : > { %2070 = vmatmul.bf16.gmra.mxu1 %v4163_v30  ;;  %2529 = vmatmul.bf16.gmra.mxu0 %v4207_v25 }
 0x250   : > { %v2551_v32 = vadd.f32 %v2488_v22, %v2029_v7  ;;  %2351 = vmatmul.bf16.gmra.mxu2 %v3837_v49  ;;  %2440 = vmatmul.bf16.gmra.mxu3 %v4204_v14 }
 0x252   : > { %v2582_v20 = vadd.f32 %v2581_v36, %v2551_v32  ;;  %v2620_v48 = vmul.f32 %v2551_v32, %v2551_v32  ;;  %v3427_v42 = vpack.c.bf16 %v2551_v32, %v2550_v18 }
 0x253   : > { %v2312_v43 = vpop.f32.mrf.mxu2  ;;  %v2401_v40 = vpop.f32.mrf.mxu3 }
 0x254   : > { %v2651_v54 = vadd.f32 %v2650_v52, %v2620_v48  ;;  %3483 = vst [vmem:[%s4321_s15 + $0x28] sm:$0xff] %v3427_v42   ;;  %v2402_v24 = vadd.f32 %v2401_v40, %v2312_v43  ;;  %v2033_v19 = vpop.f32.mrf.mxu1  ;;  %v2492_v8 = vpop.f32.mrf.mxu0 }
 0x255   : > { %v2034_v3 = vadd.f32 %v2033_v19, %v4213_v53 }
 0x256   : > { %v2491_v30 = vadd.f32 %v2490_v60, %v2402_v24 }
 0x258   : > { %v2552_v29 = vadd.f32 %v2491_v30, %v2032_v33 }
 0x25a   : > { %v2583_v25 = vadd.f32 %v2582_v20, %v2552_v29  ;;  %v2621_v27 = vmul.f32 %v2552_v29, %v2552_v29 }
 0x25b   : > { %v2314_v39 = vpop.f32.mrf.mxu2  ;;  %v2403_v49 = vpop.f32.mrf.mxu3 }
 0x25c   : > { %v2652_v13 = vadd.f32 %v2651_v54, %v2621_v27  ;;  %v2404_v14 = vadd.f32 %v2403_v49, %v2314_v39  ;;  %v2036_v0 = vpop.f32.mrf.mxu1  ;;  %v2495_v28 = vpop.f32.mrf.mxu0 }
 0x25d   : > { %v2037_v46 = vadd.f32 %v2036_v0, %v4218_v59 }
 0x25e   : > { %v2493_v12 = vadd.f32 %v2492_v8, %v2404_v14 }
 0x25f   : > { %2075 = vmatmul.bf16.gmra.mxu1 %v4185_v23  ;;  %2534 = vmatmul.bf16.gmra.mxu0 %v4222_v6 }
 0x260   : > { %v2553_v61 = vadd.f32 %v2493_v12, %v2034_v3  ;;  %2356 = vmatmul.bf16.gmra.mxu2 %v3841_v50  ;;  %2445 = vmatmul.bf16.gmra.mxu3 %v4523_v44 }
 0x262   : > { %v2584_v9 = vadd.f32 %v2583_v25, %v2553_v61  ;;  %v2622_v55 = vmul.f32 %v2553_v61, %v2553_v61  ;;  %v3432_v16 = vpack.c.bf16 %v2553_v61, %v2552_v29 }
 0x263   : > { %v2317_v57 = vpop.f32.mrf.mxu2  ;;  %v2406_v45 = vpop.f32.mrf.mxu3 }
 0x264   : > { %v2653_v10 = vadd.f32 %v2652_v13, %v2622_v55  ;;  %3484 = vst [vmem:[%s4321_s15 + $0x30] sm:$0xff] %v3432_v16   ;;  %v2407_v17 = vadd.f32 %v2406_v45, %v2317_v57  ;;  %v2038_v31 = vpop.f32.mrf.mxu1  ;;  %v2497_v53 = vpop.f32.mrf.mxu0 }
 0x265   : > { %v2039_v63 = vadd.f32 %v2038_v31, %v4228_v58 }
 0x266   : > { %v2496_v23 = vadd.f32 %v2495_v28, %v2407_v17 }
 0x268   : > { %v2554_v51 = vadd.f32 %v2496_v23, %v2037_v46 }
 0x26a   : > { %v2585_v6 = vadd.f32 %v2584_v9, %v2554_v51  ;;  %v2623_v37 = vmul.f32 %v2554_v51, %v2554_v51 }
 0x26b   : > { %v2319_v50 = vpop.f32.mrf.mxu2  ;;  %v2408_v62 = vpop.f32.mrf.mxu3 }
 0x26c   : > { %v2654_v34 = vadd.f32 %v2653_v10, %v2623_v37  ;;  %v2409_v47 = vadd.f32 %v2408_v62, %v2319_v50  ;;  %v2041_v18 = vpop.f32.mrf.mxu1  ;;  %v2500_v36 = vpop.f32.mrf.mxu0 }
 0x26d   : > { %v2042_v48 = vadd.f32 %v2041_v18, %v4231_v4 }
 0x26e   : > { %v2498_v5 = vadd.f32 %v2497_v53, %v2409_v47  ;;  %v4524_v53 = vld [vmem:[#allocation7_spill] sm:$0xff] }
 0x270   : > { %v2555_v2 = vadd.f32 %v2498_v5, %v2039_v63  ;;  %v4525_v63 = vld [vmem:[#allocation12_spill] sm:$0xff] }
 0x272   : > { %v2586_v52 = vadd.f32 %v2585_v6, %v2555_v2  ;;  %v2624_v35 = vmul.f32 %v2555_v2, %v2555_v2  ;;  %v3437_v1 = vpack.c.bf16 %v2555_v2, %v2554_v51 }
 0x273   : > { %v2322_v60 = vpop.f32.mrf.mxu2  ;;  %v2411_v59 = vpop.f32.mrf.mxu3 }
 0x274   : > { %v2655_v7 = vadd.f32 %v2654_v34, %v2624_v35  ;;  %3485 = vst [vmem:[%s4321_s15 + $0x38] sm:$0xff] %v3437_v1   ;;  %v2412_v22 = vadd.f32 %v2411_v59, %v2322_v60  ;;  %v2043_v32 = vpop.f32.mrf.mxu1  ;;  %v2502_v20 = vpop.f32.mrf.mxu0 }
 0x275   : > { %v2044_v29 = vadd.f32 %v2043_v32, %v4238_v26 }
 0x276   : > { %v2501_v42 = vadd.f32 %v2500_v36, %v2412_v22 }
 0x278   : > { %v2556_v43 = vadd.f32 %v2501_v42, %v2042_v48  ;;  %v4526_v48 = vld [vmem:[#allocation21_spill] sm:$0xff] }
 0x27a   : > { %v2587_v40 = vadd.f32 %v2586_v52, %v2556_v43  ;;  %v2625_v54 = vmul.f32 %v2556_v43, %v2556_v43 }
 0x27b   : > { %v2324_v58 = vpop.f32.mrf.mxu2  ;;  %v2413_v24 = vpop.f32.mrf.mxu3 }
 0x27c   : > { %v2656_v19 = vadd.f32 %v2655_v7, %v2625_v54  ;;  %v2414_v8 = vadd.f32 %v2413_v24, %v2324_v58  ;;  %v2046_v33 = vpop.f32.mrf.mxu1  ;;  %v2505_v30 = vpop.f32.mrf.mxu0 }
 0x27d   : > { %v2047_v61 = vadd.f32 %v2046_v33, %v4241_v21 }
 0x27e   : > { %v2503_v25 = vadd.f32 %v2502_v20, %v2414_v8 }
 0x280   : > { %v2557_v27 = vadd.f32 %v2503_v25, %v2044_v29 }
 0x282   : > { %v2588_v39 = vadd.f32 %v2587_v40, %v2557_v27  ;;  %v2626_v49 = vmul.f32 %v2557_v27, %v2557_v27  ;;  %v3442_v13 = vpack.c.bf16 %v2557_v27, %v2556_v43  ;;  %v4527_v27 = vld [vmem:[#allocation23_spill] sm:$0xff] }
 0x283   : > { %v2327_v14 = vpop.f32.mrf.mxu2  ;;  %v2416_v4 = vpop.f32.mrf.mxu3 }
 0x284   : > { %v2657_v0 = vadd.f32 %v2656_v19, %v2626_v49  ;;  %3486 = vst [vmem:[%s4321_s15 + $0x40] sm:$0xff] %v3442_v13   ;;  %v2417_v28 = vadd.f32 %v2416_v4, %v2327_v14  ;;  %v2048_v3 = vpop.f32.mrf.mxu1  ;;  %v2507_v12 = vpop.f32.mrf.mxu0 }
 0x285   : > { %v2049_v46 = vadd.f32 %v2048_v3, %v4524_v53 }
 0x286   : > { %v2506_v44 = vadd.f32 %v2505_v30, %v2417_v28 }
 0x288   : > { %v2558_v9 = vadd.f32 %v2506_v44, %v2047_v61 }
 0x28a   : > { %v2589_v55 = vadd.f32 %v2588_v39, %v2558_v9  ;;  %v2627_v16 = vmul.f32 %v2558_v9, %v2558_v9 }
 0x28b   : > { %v2329_v26 = vpop.f32.mrf.mxu2  ;;  %v2418_v57 = vpop.f32.mrf.mxu3 }
 0x28c   : > { %v2658_v45 = vadd.f32 %v2657_v0, %v2627_v16  ;;  %v2419_v10 = vadd.f32 %v2418_v57, %v2329_v26  ;;  %v2051_v17 = vpop.f32.mrf.mxu1  ;;  %v2510_v31 = vpop.f32.mrf.mxu0 }
 0x28d   : > { %v2052_v5 = vadd.f32 %v2051_v17, %v4525_v63 }
 0x28e   : > { %v2508_v23 = vadd.f32 %v2507_v12, %v2419_v10 }
 0x290   : > { %v2559_v51 = vadd.f32 %v2508_v23, %v2049_v46 }
 0x292   : > { %v2590_v6 = vadd.f32 %v2589_v55, %v2559_v51  ;;  %v2628_v37 = vmul.f32 %v2559_v51, %v2559_v51  ;;  %v3447_v50 = vpack.c.bf16 %v2559_v51, %v2558_v9  ;;  %v4528_v9 = vld [vmem:[#allocation14_spill] sm:$0xff] }
 0x293   : > { %v2332_v62 = vpop.f32.mrf.mxu2  ;;  %v2421_v21 = vpop.f32.mrf.mxu3 }
 0x294   : > { %v2659_v34 = vadd.f32 %v2658_v45, %v2628_v37  ;;  %3487 = vst [vmem:[%s4321_s15 + $0x48] sm:$0xff] %v3447_v50   ;;  %v2422_v47 = vadd.f32 %v2421_v21, %v2332_v62  ;;  %v2053_v18 = vpop.f32.mrf.mxu1  ;;  %v2512_v36 = vpop.f32.mrf.mxu0 }
 0x295   : > { %v2054_v42 = vadd.f32 %v2053_v18, %v4526_v48 }
 0x296   : > { %v2511_v2 = vadd.f32 %v2510_v31, %v2422_v47 }
 0x298   : > { %v2560_v52 = vadd.f32 %v2511_v2, %v2052_v5 }
 0x29a   : > { %v2591_v35 = vadd.f32 %v2590_v6, %v2560_v52  ;;  %v2629_v1 = vmul.f32 %v2560_v52, %v2560_v52  ;;  %v4529_v6 = vld [vmem:[#allocation9_spill] sm:$0xff] }
 0x29b   : > { %v2334_v60 = vpop.f32.mrf.mxu2  ;;  %v2423_v59 = vpop.f32.mrf.mxu3 }
 0x29c   : > { %v2660_v7 = vadd.f32 %v2659_v34, %v2629_v1  ;;  %v2424_v22 = vadd.f32 %v2423_v59, %v2334_v60  ;;  %v2056_v32 = vpop.f32.mrf.mxu1  ;;  %v2515_v20 = vpop.f32.mrf.mxu0 }
 0x29d   : > { %v2057_v39 = vadd.f32 %v2056_v32, %v4527_v27 }
 0x29e   : > { %v2513_v43 = vadd.f32 %v2512_v36, %v2424_v22 }
 0x2a0   : > { %v2561_v40 = vadd.f32 %v2513_v43, %v2054_v42 }
 0x2a2   : > { %v2592_v54 = vadd.f32 %v2591_v35, %v2561_v40  ;;  %v2630_v58 = vmul.f32 %v2561_v40, %v2561_v40  ;;  %v3452_v24 = vpack.c.bf16 %v2561_v40, %v2560_v52  ;;  %v4530_v52 = vld [vmem:[#allocation13_spill] sm:$0xff] }
 0x2a3   : > { %v2337_v19 = vpop.f32.mrf.mxu2  ;;  %v2426_v8 = vpop.f32.mrf.mxu3 }
 0x2a4   : > { %v2661_v33 = vadd.f32 %v2660_v7, %v2630_v58  ;;  %3488 = vst [vmem:[%s4321_s15 + $0x50] sm:$0xff] %v3452_v24   ;;  %v2427_v30 = vadd.f32 %v2426_v8, %v2337_v19  ;;  %v2058_v29 = vpop.f32.mrf.mxu1  ;;  %v2517_v25 = vpop.f32.mrf.mxu0 }
 0x2a5   : > { %v2059_v55 = vadd.f32 %v2058_v29, %v4528_v9 }
 0x2a6   : > { %v2516_v49 = vadd.f32 %v2515_v20, %v2427_v30 }
 0x2a8   : > { %v2562_v13 = vadd.f32 %v2516_v49, %v2057_v39 }
 0x2aa   : > { %v2593_v14 = vadd.f32 %v2592_v54, %v2562_v13  ;;  %v2631_v4 = vmul.f32 %v2562_v13, %v2562_v13  ;;  %v4531_v54 = vld [vmem:[#allocation27_spill] sm:$0xff] }
 0x2ab   : > { %v2339_v0 = vpop.f32.mrf.mxu2  ;;  %v2428_v28 = vpop.f32.mrf.mxu3 }
 0x2ac   : > { %v2662_v3 = vadd.f32 %v2661_v33, %v2631_v4  ;;  %v2429_v12 = vadd.f32 %v2428_v28, %v2339_v0  ;;  %v2061_v61 = vpop.f32.mrf.mxu1  ;;  %v2520_v44 = vpop.f32.mrf.mxu0 }
 0x2ad   : > { %v2062_v37 = vadd.f32 %v2061_v61, %v4529_v6 }
 0x2ae   : > { %v2518_v16 = vadd.f32 %v2517_v25, %v2429_v12 }
 0x2b0   : > { %v2563_v26 = vadd.f32 %v2518_v16, %v2059_v55 }
 0x2b2   : > { %v2594_v57 = vadd.f32 %v2593_v14, %v2563_v26  ;;  %v2632_v45 = vmul.f32 %v2563_v26, %v2563_v26  ;;  %v3457_v10 = vpack.c.bf16 %v2563_v26, %v2562_v13 }
 0x2b3   : > { %v2342_v17 = vpop.f32.mrf.mxu2  ;;  %v2431_v31 = vpop.f32.mrf.mxu3 }
 0x2b4   : > { %v2663_v53 = vadd.f32 %v2662_v3, %v2632_v45  ;;  %3489 = vst [vmem:[%s4321_s15 + $0x58] sm:$0xff] %v3457_v10   ;;  %v2432_v46 = vadd.f32 %v2431_v31, %v2342_v17  ;;  %v2063_v23 = vpop.f32.mrf.mxu1  ;;  %v2522_v51 = vpop.f32.mrf.mxu0 }
 0x2b5   : > { %v2064_v35 = vadd.f32 %v2063_v23, %v4530_v52 }
 0x2b6   : > { %v2521_v50 = vadd.f32 %v2520_v44, %v2432_v46 }
 0x2b8   : > { %v2564_v62 = vadd.f32 %v2521_v50, %v2062_v37 }
 0x2ba   : > { %v2595_v21 = vadd.f32 %v2594_v57, %v2564_v62  ;;  %v2633_v34 = vmul.f32 %v2564_v62, %v2564_v62 }
 0x2bb   : > { %v2344_v47 = vpop.f32.mrf.mxu2  ;;  %v2433_v18 = vpop.f32.mrf.mxu3 }
 0x2bc   : > { %v2664_v36 = vadd.f32 %v2663_v53, %v2633_v34  ;;  %v2434_v63 = vadd.f32 %v2433_v18, %v2344_v47  ;;  %v2066_v5 = vpop.f32.mrf.mxu1  ;;  %v2525_v2 = vpop.f32.mrf.mxu0 }
 0x2bd   : > { %v2067_v58 = vadd.f32 %v2066_v5, %v4531_v54 }
 0x2be   : > { %v2523_v1 = vadd.f32 %v2522_v51, %v2434_v63 }
 0x2c0   : > { %v2565_v60 = vadd.f32 %v2523_v1, %v2064_v35 }
 0x2c2   : > { %v2596_v59 = vadd.f32 %v2595_v21, %v2565_v60  ;;  %v2634_v7 = vmul.f32 %v2565_v60, %v2565_v60  ;;  %v3462_v22 = vpack.c.bf16 %v2565_v60, %v2564_v62 }
 0x2c3   : > { %v2347_v32 = vpop.f32.mrf.mxu2  ;;  %v2436_v20 = vpop.f32.mrf.mxu3 }
 0x2c4   : > { %v2665_v48 = vadd.f32 %v2664_v36, %v2634_v7  ;;  %3490 = vst [vmem:[%s4321_s15 + $0x60] sm:$0xff] %v3462_v22   ;;  %v2437_v42 = vadd.f32 %v2436_v20, %v2347_v32  ;;  %v2068_v43 = vpop.f32.mrf.mxu1  ;;  %v2527_v40 = vpop.f32.mrf.mxu0 }
 0x2c5   : > { %v2069_v49 = vadd.f32 %v2068_v43, %v4288_v11 }
 0x2c6   : > { %v2526_v24 = vadd.f32 %v2525_v2, %v2437_v42 }
 0x2c8   : > { %v2566_v19 = vadd.f32 %v2526_v24, %v2067_v58 }
 0x2ca   : > { %v2597_v8 = vadd.f32 %v2596_v59, %v2566_v19  ;;  %v2635_v33 = vmul.f32 %v2566_v19, %v2566_v19 }
 0x2cb   : > { %v2349_v30 = vpop.f32.mrf.mxu2  ;;  %v2438_v29 = vpop.f32.mrf.mxu3 }
 0x2cc   : > { %v2666_v25 = vadd.f32 %v2665_v48, %v2635_v33  ;;  %v2439_v27 = vadd.f32 %v2438_v29, %v2349_v30  ;;  %v2071_v39 = vpop.f32.mrf.mxu1  ;;  %v2530_v14 = vpop.f32.mrf.mxu0 }
 0x2cd   : > { %v2072_v55 = vadd.f32 %v2071_v39, %v4291_v38 }
 0x2ce   : > { %v2528_v13 = vadd.f32 %v2527_v40, %v2439_v27 }
 0x2d0   : > { %v2567_v4 = vadd.f32 %v2528_v13, %v2069_v49 }
 0x2d2   : > { %v2598_v0 = vadd.f32 %v2597_v8, %v2567_v4  ;;  %v2636_v28 = vmul.f32 %v2567_v4, %v2567_v4  ;;  %v3467_v3 = vpack.c.bf16 %v2567_v4, %v2566_v19 }
 0x2d3   : > { %v2352_v12 = vpop.f32.mrf.mxu2  ;;  %v2441_v61 = vpop.f32.mrf.mxu3 }
 0x2d4   : > { %v2667_v44 = vadd.f32 %v2666_v25, %v2636_v28  ;;  %3491 = vst [vmem:[%s4321_s15 + $0x68] sm:$0xff] %v3467_v3   ;;  %v2442_v9 = vadd.f32 %v2441_v61, %v2352_v12  ;;  %v2073_v26 = vpop.f32.mrf.mxu1  ;;  %v2532_v45 = vpop.f32.mrf.mxu0 }
 0x2d5   : > { %v2074_v23 = vadd.f32 %v2073_v26, %v4298_v41 }
 0x2d6   : > { %v2531_v16 = vadd.f32 %v2530_v14, %v2442_v9 }
 0x2d8   : > { %v2568_v57 = vadd.f32 %v2531_v16, %v2072_v55 }
 0x2da   : > { %v2599_v10 = vadd.f32 %v2598_v0, %v2568_v57  ;;  %v2637_v17 = vmul.f32 %v2568_v57, %v2568_v57 }
 0x2db   : > { %v2354_v11 = vpop.f32.mrf.mxu2  ;;  %v2443_v31 = vpop.f32.mrf.mxu3 }
 0x2dc   : > { %v2668_v53 = vadd.f32 %v2667_v44, %v2637_v17  ;;  %v2444_v46 = vadd.f32 %v2443_v31, %v2354_v11  ;;  %v2076_v37 = vpop.f32.mrf.mxu1  ;;  %v2535_v38 = vpop.f32.mrf.mxu0 }
 0x2dd   : > { %v2077_v63 = vadd.f32 %v2076_v37, %v4301_v56 }
 0x2de   : > { %v2533_v51 = vadd.f32 %v2532_v45, %v2444_v46 }
 0x2e0   : > { %v2569_v6 = vadd.f32 %v2533_v51, %v2074_v23 }
 0x2e2   : > { %v2600_v50 = vadd.f32 %v2599_v10, %v2569_v6  ;;  %v2638_v62 = vmul.f32 %v2569_v6, %v2569_v6  ;;  %v3472_v21 = vpack.c.bf16 %v2569_v6, %v2568_v57 }
 0x2e3   : > { %v2357_v34 = vpop.f32.mrf.mxu2  ;;  %v2446_v47 = vpop.f32.mrf.mxu3 }
 0x2e4   : > { %v2669_v18 = vadd.f32 %v2668_v53, %v2638_v62  ;;  %3492 = vst [vmem:[%s4321_s15 + $0x70] sm:$0xff] %v3472_v21   ;;  %v2447_v36 = vadd.f32 %v2446_v47, %v2357_v34  ;;  %v2078_v41 = vpop.f32.mrf.mxu1  ;;  %v2537_v22 = vpop.f32.mrf.mxu0 }
 0x2e5   : > { %v2079_v32 = vadd.f32 %v2078_v41, %v4308_v15 }
 0x2e6   : > { %v2536_v5 = vadd.f32 %v2535_v38, %v2447_v36 }
 0x2e8   : > { %v2570_v2 = vadd.f32 %v2536_v5, %v2077_v63 }
 0x2ea   : > { %v2601_v52 = vadd.f32 %v2600_v50, %v2570_v2  ;;  %v2639_v35 = vmul.f32 %v2570_v2, %v2570_v2 }
 0x2eb   : > { %v2359_v1 = vpop.f32.mrf.mxu2  ;;  %v2448_v60 = vpop.f32.mrf.mxu3 }
 0x2ec   : > { %v2670_v59 = vadd.f32 %v2669_v18, %v2639_v35  ;;  %v2449_v7 = vadd.f32 %v2448_v60, %v2359_v1 }
 0x2ee   : > { %v2538_v20 = vadd.f32 %v2537_v22, %v2449_v7 }
 0x2f0   : > { %v2571_v48 = vadd.f32 %v2538_v20, %v2079_v32 }
 0x2f2   : > { %v2602_v42 = vadd.f32 %v2601_v52, %v2571_v48  ;;  %v2640_v43 = vmul.f32 %v2571_v48, %v2571_v48  ;;  %v3477_v40 = vpack.c.bf16 %v2571_v48, %v2570_v2 }
 0x2f4   : > { %v2603_v56 = vrot.slane %v2602_v42, 4  ;;  %v2671_v54 = vadd.f32 %v2670_v59, %v2640_v43  ;;  %3493 = vst [vmem:[%s4321_s15 + $0x78] sm:$0xff] %v3477_v40  }
 0x2f6   : > { %v2604_v58 = vadd.f32 %v2603_v56, %v2602_v42  ;;  %v2672_v24 = vrot.slane %v2671_v54, 4 }
 0x2f8   : > { %v2605_v19 = vrot.slane %v2604_v58, 2  ;;  %v2673_v8 = vadd.f32 %v2672_v24, %v2671_v54 }
 0x2fa   : > { %v2606_v33 = vadd.f32 %v2605_v19, %v2604_v58  ;;  %v2674_v30 = vrot.slane %v2673_v8, 2 }
 0x2fc   : > { %v2607_v29 = vrot.slane %v2606_v33, 1  ;;  %v2675_v25 = vadd.f32 %v2674_v30, %v2673_v8 }
 0x2fe   : > { %v2676_v27 = vrot.slane %v2675_v25, 1  ;;  %v2608_v15 = vadd.f32 %v2607_v29, %v2606_v33 }
 0x300   : > { %v2677_v39 = vadd.f32 %v2676_v27, %v2675_v25 }
 0x302   : > { %v2679_v49 = vsel %vm780_vm0, %v2608_v15, %v2677_v39 }
 0x303   : > { %2680 = vst [vmem:[%s482_s19] sm:$0x3] %v2679_v49 }
 0x304 PF: > { %s19_s2 = sadd.s32 1, %s3612_s2   ;;  %s4532_s1 = smov %s3608_s24 }
 0x305   : > { %p16_p8 = scmp.ge.s32.totalorder %s19_s2, 4   ;;  %s4533_s24 = smov %s4535_s5 }
 0x307   :  { %18 = sbr.rel (!%p16_p8) target bundleno = 2 (0x2), region = 97 }
 0x30c   :  { %2797 = vsyncpa [#allocation3], 1 }
 0x30d   :  { %2799 = vsyncpa [#allocation3 + $0x1], 1 }

</bundles_post_ra>
